<compile_context>
chip_gen: v7x
topology: tpu7x:2x2x1
jax: 0.10.0
libtpu: 0.0.40
codegen_flags: <defaults>
</compile_context>

<pallas_src>
import functools

import jax
import jax.numpy as jnp
from jax.experimental import pallas as pl
from jax.experimental.pallas import tpu as pltpu

INPUT_DIM, HIDDEN_DIM, LATENT_DIM, LATENT_NUM = 784, 400, 200, 2
HEADS_PAD = 128  # lane-dense padded width of the fused mean|logvar output slab


def _leaky_relu(x, slope=0.2):
    return jnp.where(x > 0, x, slope * x)


def _round_up(n, m):
    return ((n + m - 1) // m) * m


def vae_kernel(
    x_ref, eps_ref,
    w1_ref, b1_ref, w2_ref, b2_ref,            # encoder (weights bf16, biases f32)
    wh_ref, bh_ref,                            # fused mean|logvar head (padded to HEADS_PAD)
    wd0_ref, bd0_ref,                          # decode_input (kept f32; VPU outer-product path)
    wd1_ref, bd1_ref, wd2_ref, bd2_ref,        # decoder
    xhat_ref, heads_ref,
    *, latent_num,
):
    # --- encoder: Linear(784,400)+LeakyReLU(0.2), Linear(400,200)+LeakyReLU(0.2)
    x = x_ref[...]                               # already bf16 (cast in the wrapper)
    h = _leaky_relu(
        jnp.dot(x, w1_ref[...], preferred_element_type=jnp.float32) + b1_ref[...])
    h = _leaky_relu(
        jnp.dot(h.astype(jnp.bfloat16), w2_ref[...],
                preferred_element_type=jnp.float32) + b2_ref[...])

    # --- fused mean|logvar head: one matmul, lane-dense (tile_b, 128) output slab
    heads = jnp.dot(h.astype(jnp.bfloat16), wh_ref[...],
                    preferred_element_type=jnp.float32) + bh_ref[...]
    heads_ref[...] = heads                       # f32: mean/logvar returned at full precision

    mean = heads[:, :latent_num]
    logvar = heads[:, latent_num:2 * latent_num]

    # --- sampling: z = mean + logvar * epsilon (matches the PyTorch module exactly)
    z = mean + logvar * eps_ref[...]

    # --- decode_input: K=latent_num (=2) contraction as a VPU outer product (skip MXU)
    wd0 = wd0_ref[...]                           # (latent_num, latent_dim), f32
    d = z[:, 0:1] * wd0[0:1, :]
    for j in range(1, latent_num):               # static unrolled loop (latent_num is tiny)
        d = d + z[:, j:j + 1] * wd0[j:j + 1, :]
    d = _leaky_relu(d + bd0_ref[...])

    # --- decoder: Linear(200,400)+LReLU, Linear(400,784)+Sigmoid
    d = _leaky_relu(
        jnp.dot(d.astype(jnp.bfloat16), wd1_ref[...],
                preferred_element_type=jnp.float32) + bd1_ref[...])
    logits = jnp.dot(d.astype(jnp.bfloat16), wd2_ref[...],
                     preferred_element_type=jnp.float32) + bd2_ref[...]
    # sigmoid in f32, store bf16 (halves the largest HBM write of this mem-bound kernel)
    xhat_ref[...] = jax.nn.sigmoid(logits).astype(xhat_ref.dtype)


def prepare_params(params):
    """Cast / fuse / pad the f32 (in,out)/(1,out) params into kernel form."""
    (w1, b1, w2, b2, wm, bm, wv, bv, wd0, bd0, wd1, bd1, wd2, bd2) = params
    latent_dim, latent_num = wm.shape
    # fuse mean|logvar weights and pad the output dim to a lane-dense 128.
    wh = jnp.zeros((latent_dim, HEADS_PAD), jnp.float32)
    wh = wh.at[:, :latent_num].set(wm).at[:, latent_num:2 * latent_num].set(wv)
    bh = jnp.zeros((1, HEADS_PAD), jnp.float32)
    bh = bh.at[:, :latent_num].set(bm).at[:, latent_num:2 * latent_num].set(bv)
    return (
        w1.astype(jnp.bfloat16), b1,
        w2.astype(jnp.bfloat16), b2,
        wh.astype(jnp.bfloat16), bh,
        wd0, bd0,                              # tiny; stays f32 on the VPU path
        wd1.astype(jnp.bfloat16), bd1,
        wd2.astype(jnp.bfloat16), bd2,
    )


def _pick_tile_b(batch):
    """Batch tile: >=2 grid steps once batch >= 32 (v7x 2-TC split), capped at 512 rows."""
    if batch < 32:
        return _round_up(batch, 8)
    if batch < 256:
        return _round_up(pl.cdiv(batch, 2), 16)
    return min(512, _round_up(pl.cdiv(batch, 2), 128))


@functools.partial(jax.jit, static_argnames=("single_buffer_weights",))
def _vae_forward(x, eps, kparams, *, single_buffer_weights=True):
    """x: (B, input_dim) f32/bf16, eps: (B, latent_num) f32, kparams from prepare_params."""
    batch, input_dim = x.shape
    latent_num = eps.shape[1]

    # bf16 x stream into the kernel (no precision change: matmuls were already bf16).
    if x.dtype != jnp.bfloat16:
        x = x.astype(jnp.bfloat16)

    tile_b = _pick_tile_b(batch)
    grid = (pl.cdiv(batch, tile_b),)   # no host-side pad: partial tile rows are dropped on write

    def batch_spec(dim):
        return pl.BlockSpec((tile_b, dim), lambda i: (i, 0))

    def resident_spec(arr):
        # same block every grid step -> never re-fetched; single-buffered to reclaim VMEM.
        if single_buffer_weights:
            return pl.BlockSpec(arr.shape, lambda i: (0, 0),
                                pipeline_mode=pl.Buffered(1))
        return pl.BlockSpec(arr.shape, lambda i: (0, 0))

    in_specs = [batch_spec(input_dim), batch_spec(latent_num)]
    in_specs += [resident_spec(p) for p in kparams]

    out_specs = (batch_spec(input_dim), batch_spec(HEADS_PAD))
    out_shapes = (
        jax.ShapeDtypeStruct((batch, input_dim), jnp.bfloat16),   # x_hat (bf16 write)
        jax.ShapeDtypeStruct((batch, HEADS_PAD), jnp.float32),    # mean|logvar slab (f32)
    )

    # advisory scheduling hint for XLA
    weight_bytes = sum(int(p.size) * p.dtype.itemsize for p in kparams)
    flops = 2 * batch * sum(
        int(kparams[i].shape[0]) * int(kparams[i].shape[1]) for i in (0, 2, 4, 6, 8, 10))
    io_bytes = weight_bytes + batch * (2 * input_dim * 2 + latent_num * 4 + HEADS_PAD * 4)
    cost = pl.CostEstimate(flops=flops,
                           transcendentals=batch * input_dim,
                           bytes_accessed=io_bytes)

    kernel = functools.partial(vae_kernel, latent_num=latent_num)
    x_hat, heads = pl.pallas_call(
        kernel,
        out_shape=out_shapes,
        grid=grid,
        in_specs=in_specs,
        out_specs=out_specs,
        compiler_params=pltpu.CompilerParams(
            dimension_semantics=("parallel",),     # batch tiles shard across v7x's 2 TCs
            vmem_limit_bytes=32 * 1024 * 1024,     # few-MiB footprint; <= v7x 64 MiB physical
        ),
        cost_estimate=cost,
    )(x, eps, *kparams)

    mean = heads[:, :latent_num]
    logvar = heads[:, latent_num:2 * latent_num]
    return x_hat, mean, logvar


def vae_forward(x, eps, kparams):
    try:
        return _vae_forward(x, eps, kparams, single_buffer_weights=True)
    except Exception:
        # graceful fallback if pipeline_mode=pl.Buffered(1) is unsupported by this jax build
        return _vae_forward(x, eps, kparams, single_buffer_weights=False)


def init_params(key, input_dim=784, hidden_dim=400, latent_dim=200, latent_num=2):
    """Deterministic init. Weights stored as (in_dim, out_dim), biases as (1, out_dim)."""
    dims = [
        (input_dim, hidden_dim),   # encoder.0
        (hidden_dim, latent_dim),  # encoder.2
        (latent_dim, latent_num),  # mean_layer
        (latent_dim, latent_num),  # logvar_layer
        (latent_num, latent_dim),  # decode_input.0
        (latent_dim, hidden_dim),  # decoder.0
        (hidden_dim, input_dim),   # decoder.2
    ]
    params = []
    for (fan_in, fan_out) in dims:
        key, kw, kb = jax.random.split(key, 3)
        bound = 1.0 / jnp.sqrt(fan_in)
        w = jax.random.uniform(kw, (fan_in, fan_out), jnp.float32, -bound, bound)
        b = jax.random.uniform(kb, (1, fan_out), jnp.float32, -bound, bound)
        params.extend([w, b])
    return tuple(params)


def vae_reference(x, eps, params, bf16=True):
    """Pure-JAX reference of the same forward pass (precision-matched bf16 matmuls)."""
    (w1, b1, w2, b2, wm, bm, wv, bv, wd0, bd0, wd1, bd1, wd2, bd2) = params

    def dot(a, w):
        if bf16:
            return jnp.dot(a.astype(jnp.bfloat16), w.astype(jnp.bfloat16),
                           preferred_element_type=jnp.float32)
        return a @ w

    x = x.astype(jnp.float32)
    h = _leaky_relu(dot(x, w1) + b1)
    h = _leaky_relu(dot(h, w2) + b2)
    mean = dot(h, wm) + bm
    logvar = dot(h, wv) + bv
    z = mean + logvar * eps
    d = _leaky_relu(z @ wd0 + bd0)            # kernel keeps this tiny layer in f32 too
    d = _leaky_relu(dot(d, wd1) + bd1)
    x_hat = jax.nn.sigmoid(dot(d, wd2) + bd2)
    return x_hat, mean, logvar


if __name__ == "__main__":
    BATCH = 8

    key = jax.random.PRNGKey(0)
    k_params, k_x, k_eps = jax.random.split(key, 3)

    params = init_params(k_params, INPUT_DIM, HIDDEN_DIM, LATENT_DIM, LATENT_NUM)
    kparams = prepare_params(params)

    x = jax.random.uniform(k_x, (BATCH, INPUT_DIM), jnp.float32)       # MNIST-like pixels
    x_bf16 = x.astype(jnp.bfloat16)                                    # bf16 data stream
    eps = jax.random.normal(k_eps, (BATCH, LATENT_NUM), jnp.float32)   # randn_like(logvar)

    x_hat, mean, logvar = jax.block_until_ready(vae_forward(x_bf16, eps, kparams))

    # correctness check against a precision-matched plain-JAX reference
    r_xhat, r_mean, r_logvar = vae_reference(x, eps, params, bf16=True)
    assert jnp.allclose(x_hat.astype(jnp.float32), r_xhat, atol=5e-3, rtol=5e-3)  # bf16 output
    assert jnp.allclose(mean, r_mean, atol=1e-3, rtol=1e-3)
    assert jnp.allclose(logvar, r_logvar, atol=1e-3, rtol=1e-3)
    assert x_hat.shape == (BATCH, INPUT_DIM) and mean.shape == (BATCH, LATENT_NUM)
    assert logvar.shape == (BATCH, LATENT_NUM)

    print("KERNEL_OK")
</pallas_src>

<mosaic_0001>
module attributes {stable_mosaic.version = 11 : i64} {
  func.func @vae_kernel(%arg0: i32, %arg1: memref<8x784xbf16, #tpu.memory_space<vmem>>, %arg2: memref<8x2xf32, #tpu.memory_space<vmem>>, %arg3: memref<784x400xbf16, #tpu.memory_space<vmem>>, %arg4: memref<1x400xf32, #tpu.memory_space<vmem>>, %arg5: memref<400x200xbf16, #tpu.memory_space<vmem>>, %arg6: memref<1x200xf32, #tpu.memory_space<vmem>>, %arg7: memref<200x128xbf16, #tpu.memory_space<vmem>>, %arg8: memref<1x128xf32, #tpu.memory_space<vmem>>, %arg9: memref<2x200xf32, #tpu.memory_space<vmem>>, %arg10: memref<1x200xf32, #tpu.memory_space<vmem>>, %arg11: memref<200x400xbf16, #tpu.memory_space<vmem>>, %arg12: memref<1x400xf32, #tpu.memory_space<vmem>>, %arg13: memref<400x784xbf16, #tpu.memory_space<vmem>>, %arg14: memref<1x784xf32, #tpu.memory_space<vmem>>, %arg15: memref<8x784xbf16, #tpu.memory_space<vmem>>, %arg16: memref<8x128xf32, #tpu.memory_space<vmem>>) attributes {dimension_semantics = [#tpu.dimension_semantics<parallel>], iteration_bounds = array<i64: 1>, scalar_prefetch = 0 : i64, scratch_operands = 0 : i64, tpu.core_type = #tpu.core_type<tc>, window_params = [{transform_indices = @transform_0, window_bounds = array<i64: 8, 784>}, {transform_indices = @transform_1, window_bounds = array<i64: 8, 2>}, {pipeline_mode = #tpu.pipeline_mode<synchronous>, transform_indices = @transform_2, window_bounds = array<i64: 784, 400>}, {pipeline_mode = #tpu.pipeline_mode<synchronous>, transform_indices = @transform_3, window_bounds = array<i64: 1, 400>}, {pipeline_mode = #tpu.pipeline_mode<synchronous>, transform_indices = @transform_4, window_bounds = array<i64: 400, 200>}, {pipeline_mode = #tpu.pipeline_mode<synchronous>, transform_indices = @transform_5, window_bounds = array<i64: 1, 200>}, {pipeline_mode = #tpu.pipeline_mode<synchronous>, transform_indices = @transform_6, window_bounds = array<i64: 200, 128>}, {pipeline_mode = #tpu.pipeline_mode<synchronous>, transform_indices = @transform_7, window_bounds = array<i64: 1, 128>}, {pipeline_mode = #tpu.pipeline_mode<synchronous>, transform_indices = @transform_8, window_bounds = array<i64: 2, 200>}, {pipeline_mode = #tpu.pipeline_mode<synchronous>, transform_indices = @transform_9, window_bounds = array<i64: 1, 200>}, {pipeline_mode = #tpu.pipeline_mode<synchronous>, transform_indices = @transform_10, window_bounds = array<i64: 200, 400>}, {pipeline_mode = #tpu.pipeline_mode<synchronous>, transform_indices = @transform_11, window_bounds = array<i64: 1, 400>}, {pipeline_mode = #tpu.pipeline_mode<synchronous>, transform_indices = @transform_12, window_bounds = array<i64: 400, 784>}, {pipeline_mode = #tpu.pipeline_mode<synchronous>, transform_indices = @transform_13, window_bounds = array<i64: 1, 784>}, {transform_indices = @transform_14, window_bounds = array<i64: 8, 784>}, {transform_indices = @transform_15, window_bounds = array<i64: 8, 128>}]} {
    %c0 = arith.constant 0 : index
    %c0_0 = arith.constant 0 : index
    %0 = vector.load %arg1[%c0, %c0_0] : memref<8x784xbf16, #tpu.memory_space<vmem>>, vector<8x784xbf16>
    %c0_1 = arith.constant 0 : index
    %c0_2 = arith.constant 0 : index
    %1 = vector.load %arg3[%c0_1, %c0_2] : memref<784x400xbf16, #tpu.memory_space<vmem>>, vector<784x400xbf16>
    %cst = arith.constant dense<0.000000e+00> : vector<8x400xf32>
    %2 = tpu.matmul %0, %1, %cst {dimension_numbers = #tpu.dot_dimension_numbers<[1], [0], [0], [1], [0, 0, 1, 1], [], []>} : vector<8x784xbf16>, vector<784x400xbf16>, vector<8x400xf32> -> vector<8x400xf32>
    %c0_3 = arith.constant 0 : index
    %c0_4 = arith.constant 0 : index
    %3 = vector.load %arg4[%c0_3, %c0_4] : memref<1x400xf32, #tpu.memory_space<vmem>>, vector<1x400xf32>
    %4 = vector.broadcast %3 : vector<1x400xf32> to vector<8x400xf32>
    %5 = arith.addf %2, %4 : vector<8x400xf32>
    %cst_5 = arith.constant 0.000000e+00 : f32
    %6 = vector.broadcast %cst_5 : f32 to vector<8x400xf32>
    %7 = arith.cmpf ogt, %5, %6 : vector<8x400xf32>
    %cst_6 = arith.constant 2.000000e-01 : f32
    %8 = vector.broadcast %cst_6 : f32 to vector<8x400xf32>
    %9 = arith.mulf %8, %5 : vector<8x400xf32>
    %10 = arith.select %7, %5, %9 : vector<8x400xi1>, vector<8x400xf32>
    %11 = arith.truncf %10 : vector<8x400xf32> to vector<8x400xbf16>
    %c0_7 = arith.constant 0 : index
    %c0_8 = arith.constant 0 : index
    %12 = vector.load %arg5[%c0_7, %c0_8] : memref<400x200xbf16, #tpu.memory_space<vmem>>, vector<400x200xbf16>
    %cst_9 = arith.constant dense<0.000000e+00> : vector<8x200xf32>
    %13 = tpu.matmul %11, %12, %cst_9 {dimension_numbers = #tpu.dot_dimension_numbers<[1], [0], [0], [1], [0, 0, 1, 1], [], []>} : vector<8x400xbf16>, vector<400x200xbf16>, vector<8x200xf32> -> vector<8x200xf32>
    %c0_10 = arith.constant 0 : index
    %c0_11 = arith.constant 0 : index
    %14 = vector.load %arg6[%c0_10, %c0_11] : memref<1x200xf32, #tpu.memory_space<vmem>>, vector<1x200xf32>
    %15 = vector.broadcast %14 : vector<1x200xf32> to vector<8x200xf32>
    %16 = arith.addf %13, %15 : vector<8x200xf32>
    %cst_12 = arith.constant 0.000000e+00 : f32
    %17 = vector.broadcast %cst_12 : f32 to vector<8x200xf32>
    %18 = arith.cmpf ogt, %16, %17 : vector<8x200xf32>
    %cst_13 = arith.constant 2.000000e-01 : f32
    %19 = vector.broadcast %cst_13 : f32 to vector<8x200xf32>
    %20 = arith.mulf %19, %16 : vector<8x200xf32>
    %21 = arith.select %18, %16, %20 : vector<8x200xi1>, vector<8x200xf32>
    %22 = arith.truncf %21 : vector<8x200xf32> to vector<8x200xbf16>
    %c0_14 = arith.constant 0 : index
    %c0_15 = arith.constant 0 : index
    %23 = vector.load %arg7[%c0_14, %c0_15] : memref<200x128xbf16, #tpu.memory_space<vmem>>, vector<200x128xbf16>
    %cst_16 = arith.constant dense<0.000000e+00> : vector<8x128xf32>
    %24 = tpu.matmul %22, %23, %cst_16 {dimension_numbers = #tpu.dot_dimension_numbers<[1], [0], [0], [1], [0, 0, 1, 1], [], []>} : vector<8x200xbf16>, vector<200x128xbf16>, vector<8x128xf32> -> vector<8x128xf32>
    %c0_17 = arith.constant 0 : index
    %c0_18 = arith.constant 0 : index
    %25 = vector.load %arg8[%c0_17, %c0_18] : memref<1x128xf32, #tpu.memory_space<vmem>>, vector<1x128xf32>
    %26 = vector.broadcast %25 : vector<1x128xf32> to vector<8x128xf32>
    %27 = arith.addf %24, %26 : vector<8x128xf32>
    %c0_19 = arith.constant 0 : index
    %c0_20 = arith.constant 0 : index
    %28 = vector.load %arg16[%c0_19, %c0_20] : memref<8x128xf32, #tpu.memory_space<vmem>>, vector<8x128xf32>
    tpu.vector_store %arg16[%c0_19, %c0_20], %27 {strides = array<i32>} : memref<8x128xf32, #tpu.memory_space<vmem>>, vector<8x128xf32>,
    %29 = vector.extract_strided_slice %27 {offsets = [0, 0], sizes = [8, 2], strides = [1, 1]} : vector<8x128xf32> to vector<8x2xf32>
    %30 = vector.extract_strided_slice %27 {offsets = [0, 2], sizes = [8, 2], strides = [1, 1]} : vector<8x128xf32> to vector<8x2xf32>
    %c0_21 = arith.constant 0 : index
    %c0_22 = arith.constant 0 : index
    %31 = vector.load %arg2[%c0_21, %c0_22] : memref<8x2xf32, #tpu.memory_space<vmem>>, vector<8x2xf32>
    %32 = arith.mulf %30, %31 : vector<8x2xf32>
    %33 = arith.addf %29, %32 : vector<8x2xf32>
    %c0_23 = arith.constant 0 : index
    %c0_24 = arith.constant 0 : index
    %34 = vector.load %arg9[%c0_23, %c0_24] : memref<2x200xf32, #tpu.memory_space<vmem>>, vector<2x200xf32>
    %35 = vector.extract_strided_slice %33 {offsets = [0, 0], sizes = [8, 1], strides = [1, 1]} : vector<8x2xf32> to vector<8x1xf32>
    %36 = vector.extract_strided_slice %34 {offsets = [0, 0], sizes = [1, 200], strides = [1, 1]} : vector<2x200xf32> to vector<1x200xf32>
    %37 = vector.broadcast %35 : vector<8x1xf32> to vector<8x200xf32>
    %38 = vector.broadcast %36 : vector<1x200xf32> to vector<8x200xf32>
    %39 = arith.mulf %37, %38 : vector<8x200xf32>
    %40 = vector.extract_strided_slice %33 {offsets = [0, 1], sizes = [8, 1], strides = [1, 1]} : vector<8x2xf32> to vector<8x1xf32>
    %41 = vector.extract_strided_slice %34 {offsets = [1, 0], sizes = [1, 200], strides = [1, 1]} : vector<2x200xf32> to vector<1x200xf32>
    %42 = vector.broadcast %40 : vector<8x1xf32> to vector<8x200xf32>
    %43 = vector.broadcast %41 : vector<1x200xf32> to vector<8x200xf32>
    %44 = arith.mulf %42, %43 : vector<8x200xf32>
    %45 = arith.addf %39, %44 : vector<8x200xf32>
    %c0_25 = arith.constant 0 : index
    %c0_26 = arith.constant 0 : index
    %46 = vector.load %arg10[%c0_25, %c0_26] : memref<1x200xf32, #tpu.memory_space<vmem>>, vector<1x200xf32>
    %47 = vector.broadcast %46 : vector<1x200xf32> to vector<8x200xf32>
    %48 = arith.addf %45, %47 : vector<8x200xf32>
    %cst_27 = arith.constant 0.000000e+00 : f32
    %49 = vector.broadcast %cst_27 : f32 to vector<8x200xf32>
    %50 = arith.cmpf ogt, %48, %49 : vector<8x200xf32>
    %cst_28 = arith.constant 2.000000e-01 : f32
    %51 = vector.broadcast %cst_28 : f32 to vector<8x200xf32>
    %52 = arith.mulf %51, %48 : vector<8x200xf32>
    %53 = arith.select %50, %48, %52 : vector<8x200xi1>, vector<8x200xf32>
    %54 = arith.truncf %53 : vector<8x200xf32> to vector<8x200xbf16>
    %c0_29 = arith.constant 0 : index
    %c0_30 = arith.constant 0 : index
    %55 = vector.load %arg11[%c0_29, %c0_30] : memref<200x400xbf16, #tpu.memory_space<vmem>>, vector<200x400xbf16>
    %cst_31 = arith.constant dense<0.000000e+00> : vector<8x400xf32>
    %56 = tpu.matmul %54, %55, %cst_31 {dimension_numbers = #tpu.dot_dimension_numbers<[1], [0], [0], [1], [0, 0, 1, 1], [], []>} : vector<8x200xbf16>, vector<200x400xbf16>, vector<8x400xf32> -> vector<8x400xf32>
    %c0_32 = arith.constant 0 : index
    %c0_33 = arith.constant 0 : index
    %57 = vector.load %arg12[%c0_32, %c0_33] : memref<1x400xf32, #tpu.memory_space<vmem>>, vector<1x400xf32>
    %58 = vector.broadcast %57 : vector<1x400xf32> to vector<8x400xf32>
    %59 = arith.addf %56, %58 : vector<8x400xf32>
    %cst_34 = arith.constant 0.000000e+00 : f32
    %60 = vector.broadcast %cst_34 : f32 to vector<8x400xf32>
    %61 = arith.cmpf ogt, %59, %60 : vector<8x400xf32>
    %cst_35 = arith.constant 2.000000e-01 : f32
    %62 = vector.broadcast %cst_35 : f32 to vector<8x400xf32>
    %63 = arith.mulf %62, %59 : vector<8x400xf32>
    %64 = arith.select %61, %59, %63 : vector<8x400xi1>, vector<8x400xf32>
    %65 = arith.truncf %64 : vector<8x400xf32> to vector<8x400xbf16>
    %c0_36 = arith.constant 0 : index
    %c0_37 = arith.constant 0 : index
    %66 = vector.load %arg13[%c0_36, %c0_37] : memref<400x784xbf16, #tpu.memory_space<vmem>>, vector<400x784xbf16>
    %cst_38 = arith.constant dense<0.000000e+00> : vector<8x784xf32>
    %67 = tpu.matmul %65, %66, %cst_38 {dimension_numbers = #tpu.dot_dimension_numbers<[1], [0], [0], [1], [0, 0, 1, 1], [], []>} : vector<8x400xbf16>, vector<400x784xbf16>, vector<8x784xf32> -> vector<8x784xf32>
    %c0_39 = arith.constant 0 : index
    %c0_40 = arith.constant 0 : index
    %68 = vector.load %arg14[%c0_39, %c0_40] : memref<1x784xf32, #tpu.memory_space<vmem>>, vector<1x784xf32>
    %69 = vector.broadcast %68 : vector<1x784xf32> to vector<8x784xf32>
    %70 = arith.addf %67, %69 : vector<8x784xf32>
    %71 = arith.negf %70 : vector<8x784xf32>
    %72 = math.exp %71 : vector<8x784xf32>
    %cst_41 = arith.constant 1.000000e+00 : f32
    %73 = vector.broadcast %cst_41 : f32 to vector<8x784xf32>
    %74 = arith.addf %73, %72 : vector<8x784xf32>
    %75 = arith.divf %73, %74 : vector<8x784xf32>
    %76 = arith.truncf %75 : vector<8x784xf32> to vector<8x784xbf16>
    %c0_42 = arith.constant 0 : index
    %c0_43 = arith.constant 0 : index
    %77 = vector.load %arg15[%c0_42, %c0_43] : memref<8x784xbf16, #tpu.memory_space<vmem>>, vector<8x784xbf16>
    tpu.vector_store %arg15[%c0_42, %c0_43], %76 {strides = array<i32>} : memref<8x784xbf16, #tpu.memory_space<vmem>>, vector<8x784xbf16>,
    return
  }
  func.func @transform_0(%arg0: i32) -> (i32, i32) {
    %c0_i32 = arith.constant 0 : i32
    %c0_i32_0 = arith.constant 0 : i32
    return %arg0, %c0_i32 : i32, i32
  }
  func.func @transform_1(%arg0: i32) -> (i32, i32) {
    %c0_i32 = arith.constant 0 : i32
    %c0_i32_0 = arith.constant 0 : i32
    return %arg0, %c0_i32 : i32, i32
  }
  func.func @transform_2(%arg0: i32) -> (i32, i32) {
    %c0_i32 = arith.constant 0 : i32
    %c0_i32_0 = arith.constant 0 : i32
    %c0_i32_1 = arith.constant 0 : i32
    return %c0_i32, %c0_i32_0 : i32, i32
  }
  func.func @transform_3(%arg0: i32) -> (i32, i32) {
    %c0_i32 = arith.constant 0 : i32
    %c0_i32_0 = arith.constant 0 : i32
    %c0_i32_1 = arith.constant 0 : i32
    return %c0_i32, %c0_i32_0 : i32, i32
  }
  func.func @transform_4(%arg0: i32) -> (i32, i32) {
    %c0_i32 = arith.constant 0 : i32
    %c0_i32_0 = arith.constant 0 : i32
    %c0_i32_1 = arith.constant 0 : i32
    return %c0_i32, %c0_i32_0 : i32, i32
  }
  func.func @transform_5(%arg0: i32) -> (i32, i32) {
    %c0_i32 = arith.constant 0 : i32
    %c0_i32_0 = arith.constant 0 : i32
    %c0_i32_1 = arith.constant 0 : i32
    return %c0_i32, %c0_i32_0 : i32, i32
  }
  func.func @transform_6(%arg0: i32) -> (i32, i32) {
    %c0_i32 = arith.constant 0 : i32
    %c0_i32_0 = arith.constant 0 : i32
    %c0_i32_1 = arith.constant 0 : i32
    return %c0_i32, %c0_i32_0 : i32, i32
  }
  func.func @transform_7(%arg0: i32) -> (i32, i32) {
    %c0_i32 = arith.constant 0 : i32
    %c0_i32_0 = arith.constant 0 : i32
    %c0_i32_1 = arith.constant 0 : i32
    return %c0_i32, %c0_i32_0 : i32, i32
  }
  func.func @transform_8(%arg0: i32) -> (i32, i32) {
    %c0_i32 = arith.constant 0 : i32
    %c0_i32_0 = arith.constant 0 : i32
    %c0_i32_1 = arith.constant 0 : i32
    return %c0_i32, %c0_i32_0 : i32, i32
  }
  func.func @transform_9(%arg0: i32) -> (i32, i32) {
    %c0_i32 = arith.constant 0 : i32
    %c0_i32_0 = arith.constant 0 : i32
    %c0_i32_1 = arith.constant 0 : i32
    return %c0_i32, %c0_i32_0 : i32, i32
  }
  func.func @transform_10(%arg0: i32) -> (i32, i32) {
    %c0_i32 = arith.constant 0 : i32
    %c0_i32_0 = arith.constant 0 : i32
    %c0_i32_1 = arith.constant 0 : i32
    return %c0_i32, %c0_i32_0 : i32, i32
  }
  func.func @transform_11(%arg0: i32) -> (i32, i32) {
    %c0_i32 = arith.constant 0 : i32
    %c0_i32_0 = arith.constant 0 : i32
    %c0_i32_1 = arith.constant 0 : i32
    return %c0_i32, %c0_i32_0 : i32, i32
  }
  func.func @transform_12(%arg0: i32) -> (i32, i32) {
    %c0_i32 = arith.constant 0 : i32
    %c0_i32_0 = arith.constant 0 : i32
    %c0_i32_1 = arith.constant 0 : i32
    return %c0_i32, %c0_i32_0 : i32, i32
  }
  func.func @transform_13(%arg0: i32) -> (i32, i32) {
    %c0_i32 = arith.constant 0 : i32
    %c0_i32_0 = arith.constant 0 : i32
    %c0_i32_1 = arith.constant 0 : i32
    return %c0_i32, %c0_i32_0 : i32, i32
  }
  func.func @transform_14(%arg0: i32) -> (i32, i32) {
    %c0_i32 = arith.constant 0 : i32
    %c0_i32_0 = arith.constant 0 : i32
    return %arg0, %c0_i32 : i32, i32
  }
  func.func @transform_15(%arg0: i32) -> (i32, i32) {
    %c0_i32 = arith.constant 0 : i32
    %c0_i32_0 = arith.constant 0 : i32
    return %arg0, %c0_i32 : i32, i32
  }
}

module attributes {stable_mosaic.version = 11 : i64} {
  func.func @vae_kernel(%arg0: i32, %arg1: memref<8x784xbf16, #tpu.memory_space<vmem>>, %arg2: memref<8x2xf32, #tpu.memory_space<vmem>>, %arg3: memref<784x400xbf16, #tpu.memory_space<vmem>>, %arg4: memref<1x400xf32, #tpu.memory_space<vmem>>, %arg5: memref<400x200xbf16, #tpu.memory_space<vmem>>, %arg6: memref<1x200xf32, #tpu.memory_space<vmem>>, %arg7: memref<200x128xbf16, #tpu.memory_space<vmem>>, %arg8: memref<1x128xf32, #tpu.memory_space<vmem>>, %arg9: memref<2x200xf32, #tpu.memory_space<vmem>>, %arg10: memref<1x200xf32, #tpu.memory_space<vmem>>, %arg11: memref<200x400xbf16, #tpu.memory_space<vmem>>, %arg12: memref<1x400xf32, #tpu.memory_space<vmem>>, %arg13: memref<400x784xbf16, #tpu.memory_space<vmem>>, %arg14: memref<1x784xf32, #tpu.memory_space<vmem>>, %arg15: memref<8x784xbf16, #tpu.memory_space<vmem>>, %arg16: memref<8x128xf32, #tpu.memory_space<vmem>>) attributes {dimension_semantics = [#tpu.dimension_semantics<parallel>], iteration_bounds = array<i64: 1>, scalar_prefetch = 0 : i64, scratch_operands = 0 : i64, tpu.core_type = #tpu.core_type<tc>, window_params = [{transform_indices = @transform_0, window_bounds = array<i64: 8, 784>}, {transform_indices = @transform_1, window_bounds = array<i64: 8, 2>}, {pipeline_mode = #tpu.pipeline_mode<synchronous>, transform_indices = @transform_2, window_bounds = array<i64: 784, 400>}, {pipeline_mode = #tpu.pipeline_mode<synchronous>, transform_indices = @transform_3, window_bounds = array<i64: 1, 400>}, {pipeline_mode = #tpu.pipeline_mode<synchronous>, transform_indices = @transform_4, window_bounds = array<i64: 400, 200>}, {pipeline_mode = #tpu.pipeline_mode<synchronous>, transform_indices = @transform_5, window_bounds = array<i64: 1, 200>}, {pipeline_mode = #tpu.pipeline_mode<synchronous>, transform_indices = @transform_6, window_bounds = array<i64: 200, 128>}, {pipeline_mode = #tpu.pipeline_mode<synchronous>, transform_indices = @transform_7, window_bounds = array<i64: 1, 128>}, {pipeline_mode = #tpu.pipeline_mode<synchronous>, transform_indices = @transform_8, window_bounds = array<i64: 2, 200>}, {pipeline_mode = #tpu.pipeline_mode<synchronous>, transform_indices = @transform_9, window_bounds = array<i64: 1, 200>}, {pipeline_mode = #tpu.pipeline_mode<synchronous>, transform_indices = @transform_10, window_bounds = array<i64: 200, 400>}, {pipeline_mode = #tpu.pipeline_mode<synchronous>, transform_indices = @transform_11, window_bounds = array<i64: 1, 400>}, {pipeline_mode = #tpu.pipeline_mode<synchronous>, transform_indices = @transform_12, window_bounds = array<i64: 400, 784>}, {pipeline_mode = #tpu.pipeline_mode<synchronous>, transform_indices = @transform_13, window_bounds = array<i64: 1, 784>}, {transform_indices = @transform_14, window_bounds = array<i64: 8, 784>}, {transform_indices = @transform_15, window_bounds = array<i64: 8, 128>}]} {
    %c0 = arith.constant 0 : index
    %c0_0 = arith.constant 0 : index
    %0 = vector.load %arg1[%c0, %c0_0] : memref<8x784xbf16, #tpu.memory_space<vmem>>, vector<8x784xbf16>
    %c0_1 = arith.constant 0 : index
    %c0_2 = arith.constant 0 : index
    %1 = vector.load %arg3[%c0_1, %c0_2] : memref<784x400xbf16, #tpu.memory_space<vmem>>, vector<784x400xbf16>
    %cst = arith.constant dense<0.000000e+00> : vector<8x400xf32>
    %2 = tpu.matmul %0, %1, %cst {dimension_numbers = #tpu.dot_dimension_numbers<[1], [0], [0], [1], [0, 0, 1, 1], [], []>} : vector<8x784xbf16>, vector<784x400xbf16>, vector<8x400xf32> -> vector<8x400xf32>
    %c0_3 = arith.constant 0 : index
    %c0_4 = arith.constant 0 : index
    %3 = vector.load %arg4[%c0_3, %c0_4] : memref<1x400xf32, #tpu.memory_space<vmem>>, vector<1x400xf32>
    %4 = vector.broadcast %3 : vector<1x400xf32> to vector<8x400xf32>
    %5 = arith.addf %2, %4 : vector<8x400xf32>
    %cst_5 = arith.constant 0.000000e+00 : f32
    %6 = vector.broadcast %cst_5 : f32 to vector<8x400xf32>
    %7 = arith.cmpf ogt, %5, %6 : vector<8x400xf32>
    %cst_6 = arith.constant 2.000000e-01 : f32
    %8 = vector.broadcast %cst_6 : f32 to vector<8x400xf32>
    %9 = arith.mulf %8, %5 : vector<8x400xf32>
    %10 = arith.select %7, %5, %9 : vector<8x400xi1>, vector<8x400xf32>
    %11 = arith.truncf %10 : vector<8x400xf32> to vector<8x400xbf16>
    %c0_7 = arith.constant 0 : index
    %c0_8 = arith.constant 0 : index
    %12 = vector.load %arg5[%c0_7, %c0_8] : memref<400x200xbf16, #tpu.memory_space<vmem>>, vector<400x200xbf16>
    %cst_9 = arith.constant dense<0.000000e+00> : vector<8x200xf32>
    %13 = tpu.matmul %11, %12, %cst_9 {dimension_numbers = #tpu.dot_dimension_numbers<[1], [0], [0], [1], [0, 0, 1, 1], [], []>} : vector<8x400xbf16>, vector<400x200xbf16>, vector<8x200xf32> -> vector<8x200xf32>
    %c0_10 = arith.constant 0 : index
    %c0_11 = arith.constant 0 : index
    %14 = vector.load %arg6[%c0_10, %c0_11] : memref<1x200xf32, #tpu.memory_space<vmem>>, vector<1x200xf32>
    %15 = vector.broadcast %14 : vector<1x200xf32> to vector<8x200xf32>
    %16 = arith.addf %13, %15 : vector<8x200xf32>
    %cst_12 = arith.constant 0.000000e+00 : f32
    %17 = vector.broadcast %cst_12 : f32 to vector<8x200xf32>
    %18 = arith.cmpf ogt, %16, %17 : vector<8x200xf32>
    %cst_13 = arith.constant 2.000000e-01 : f32
    %19 = vector.broadcast %cst_13 : f32 to vector<8x200xf32>
    %20 = arith.mulf %19, %16 : vector<8x200xf32>
    %21 = arith.select %18, %16, %20 : vector<8x200xi1>, vector<8x200xf32>
    %22 = arith.truncf %21 : vector<8x200xf32> to vector<8x200xbf16>
    %c0_14 = arith.constant 0 : index
    %c0_15 = arith.constant 0 : index
    %23 = vector.load %arg7[%c0_14, %c0_15] : memref<200x128xbf16, #tpu.memory_space<vmem>>, vector<200x128xbf16>
    %cst_16 = arith.constant dense<0.000000e+00> : vector<8x128xf32>
    %24 = tpu.matmul %22, %23, %cst_16 {dimension_numbers = #tpu.dot_dimension_numbers<[1], [0], [0], [1], [0, 0, 1, 1], [], []>} : vector<8x200xbf16>, vector<200x128xbf16>, vector<8x128xf32> -> vector<8x128xf32>
    %c0_17 = arith.constant 0 : index
    %c0_18 = arith.constant 0 : index
    %25 = vector.load %arg8[%c0_17, %c0_18] : memref<1x128xf32, #tpu.memory_space<vmem>>, vector<1x128xf32>
    %26 = vector.broadcast %25 : vector<1x128xf32> to vector<8x128xf32>
    %27 = arith.addf %24, %26 : vector<8x128xf32>
    %c0_19 = arith.constant 0 : index
    %c0_20 = arith.constant 0 : index
    %28 = vector.load %arg16[%c0_19, %c0_20] : memref<8x128xf32, #tpu.memory_space<vmem>>, vector<8x128xf32>
    tpu.vector_store %arg16[%c0_19, %c0_20], %27 {strides = array<i32>} : memref<8x128xf32, #tpu.memory_space<vmem>>, vector<8x128xf32>,
    %29 = vector.extract_strided_slice %27 {offsets = [0, 0], sizes = [8, 2], strides = [1, 1]} : vector<8x128xf32> to vector<8x2xf32>
    %30 = vector.extract_strided_slice %27 {offsets = [0, 2], sizes = [8, 2], strides = [1, 1]} : vector<8x128xf32> to vector<8x2xf32>
    %c0_21 = arith.constant 0 : index
    %c0_22 = arith.constant 0 : index
    %31 = vector.load %arg2[%c0_21, %c0_22] : memref<8x2xf32, #tpu.memory_space<vmem>>, vector<8x2xf32>
    %32 = arith.mulf %30, %31 : vector<8x2xf32>
    %33 = arith.addf %29, %32 : vector<8x2xf32>
    %c0_23 = arith.constant 0 : index
    %c0_24 = arith.constant 0 : index
    %34 = vector.load %arg9[%c0_23, %c0_24] : memref<2x200xf32, #tpu.memory_space<vmem>>, vector<2x200xf32>
    %35 = vector.extract_strided_slice %33 {offsets = [0, 0], sizes = [8, 1], strides = [1, 1]} : vector<8x2xf32> to vector<8x1xf32>
    %36 = vector.extract_strided_slice %34 {offsets = [0, 0], sizes = [1, 200], strides = [1, 1]} : vector<2x200xf32> to vector<1x200xf32>
    %37 = vector.broadcast %35 : vector<8x1xf32> to vector<8x200xf32>
    %38 = vector.broadcast %36 : vector<1x200xf32> to vector<8x200xf32>
    %39 = arith.mulf %37, %38 : vector<8x200xf32>
    %40 = vector.extract_strided_slice %33 {offsets = [0, 1], sizes = [8, 1], strides = [1, 1]} : vector<8x2xf32> to vector<8x1xf32>
    %41 = vector.extract_strided_slice %34 {offsets = [1, 0], sizes = [1, 200], strides = [1, 1]} : vector<2x200xf32> to vector<1x200xf32>
    %42 = vector.broadcast %40 : vector<8x1xf32> to vector<8x200xf32>
    %43 = vector.broadcast %41 : vector<1x200xf32> to vector<8x200xf32>
    %44 = arith.mulf %42, %43 : vector<8x200xf32>
    %45 = arith.addf %39, %44 : vector<8x200xf32>
    %c0_25 = arith.constant 0 : index
    %c0_26 = arith.constant 0 : index
    %46 = vector.load %arg10[%c0_25, %c0_26] : memref<1x200xf32, #tpu.memory_space<vmem>>, vector<1x200xf32>
    %47 = vector.broadcast %46 : vector<1x200xf32> to vector<8x200xf32>
    %48 = arith.addf %45, %47 : vector<8x200xf32>
    %cst_27 = arith.constant 0.000000e+00 : f32
    %49 = vector.broadcast %cst_27 : f32 to vector<8x200xf32>
    %50 = arith.cmpf ogt, %48, %49 : vector<8x200xf32>
    %cst_28 = arith.constant 2.000000e-01 : f32
    %51 = vector.broadcast %cst_28 : f32 to vector<8x200xf32>
    %52 = arith.mulf %51, %48 : vector<8x200xf32>
    %53 = arith.select %50, %48, %52 : vector<8x200xi1>, vector<8x200xf32>
    %54 = arith.truncf %53 : vector<8x200xf32> to vector<8x200xbf16>
    %c0_29 = arith.constant 0 : index
    %c0_30 = arith.constant 0 : index
    %55 = vector.load %arg11[%c0_29, %c0_30] : memref<200x400xbf16, #tpu.memory_space<vmem>>, vector<200x400xbf16>
    %cst_31 = arith.constant dense<0.000000e+00> : vector<8x400xf32>
    %56 = tpu.matmul %54, %55, %cst_31 {dimension_numbers = #tpu.dot_dimension_numbers<[1], [0], [0], [1], [0, 0, 1, 1], [], []>} : vector<8x200xbf16>, vector<200x400xbf16>, vector<8x400xf32> -> vector<8x400xf32>
    %c0_32 = arith.constant 0 : index
    %c0_33 = arith.constant 0 : index
    %57 = vector.load %arg12[%c0_32, %c0_33] : memref<1x400xf32, #tpu.memory_space<vmem>>, vector<1x400xf32>
    %58 = vector.broadcast %57 : vector<1x400xf32> to vector<8x400xf32>
    %59 = arith.addf %56, %58 : vector<8x400xf32>
    %cst_34 = arith.constant 0.000000e+00 : f32
    %60 = vector.broadcast %cst_34 : f32 to vector<8x400xf32>
    %61 = arith.cmpf ogt, %59, %60 : vector<8x400xf32>
    %cst_35 = arith.constant 2.000000e-01 : f32
    %62 = vector.broadcast %cst_35 : f32 to vector<8x400xf32>
    %63 = arith.mulf %62, %59 : vector<8x400xf32>
    %64 = arith.select %61, %59, %63 : vector<8x400xi1>, vector<8x400xf32>
    %65 = arith.truncf %64 : vector<8x400xf32> to vector<8x400xbf16>
    %c0_36 = arith.constant 0 : index
    %c0_37 = arith.constant 0 : index
    %66 = vector.load %arg13[%c0_36, %c0_37] : memref<400x784xbf16, #tpu.memory_space<vmem>>, vector<400x784xbf16>
    %cst_38 = arith.constant dense<0.000000e+00> : vector<8x784xf32>
    %67 = tpu.matmul %65, %66, %cst_38 {dimension_numbers = #tpu.dot_dimension_numbers<[1], [0], [0], [1], [0, 0, 1, 1], [], []>} : vector<8x400xbf16>, vector<400x784xbf16>, vector<8x784xf32> -> vector<8x784xf32>
    %c0_39 = arith.constant 0 : index
    %c0_40 = arith.constant 0 : index
    %68 = vector.load %arg14[%c0_39, %c0_40] : memref<1x784xf32, #tpu.memory_space<vmem>>, vector<1x784xf32>
    %69 = vector.broadcast %68 : vector<1x784xf32> to vector<8x784xf32>
    %70 = arith.addf %67, %69 : vector<8x784xf32>
    %71 = arith.negf %70 : vector<8x784xf32>
    %72 = math.exp %71 : vector<8x784xf32>
    %cst_41 = arith.constant 1.000000e+00 : f32
    %73 = vector.broadcast %cst_41 : f32 to vector<8x784xf32>
    %74 = arith.addf %73, %72 : vector<8x784xf32>
    %75 = arith.divf %73, %74 : vector<8x784xf32>
    %76 = arith.truncf %75 : vector<8x784xf32> to vector<8x784xbf16>
    %c0_42 = arith.constant 0 : index
    %c0_43 = arith.constant 0 : index
    %77 = vector.load %arg15[%c0_42, %c0_43] : memref<8x784xbf16, #tpu.memory_space<vmem>>, vector<8x784xbf16>
    tpu.vector_store %arg15[%c0_42, %c0_43], %76 {strides = array<i32>} : memref<8x784xbf16, #tpu.memory_space<vmem>>, vector<8x784xbf16>,
    return
  }
  func.func @transform_0(%arg0: i32) -> (i32, i32) {
    %c0_i32 = arith.constant 0 : i32
    %c0_i32_0 = arith.constant 0 : i32
    return %arg0, %c0_i32 : i32, i32
  }
  func.func @transform_1(%arg0: i32) -> (i32, i32) {
    %c0_i32 = arith.constant 0 : i32
    %c0_i32_0 = arith.constant 0 : i32
    return %arg0, %c0_i32 : i32, i32
  }
  func.func @transform_2(%arg0: i32) -> (i32, i32) {
    %c0_i32 = arith.constant 0 : i32
    %c0_i32_0 = arith.constant 0 : i32
    %c0_i32_1 = arith.constant 0 : i32
    return %c0_i32, %c0_i32_0 : i32, i32
  }
  func.func @transform_3(%arg0: i32) -> (i32, i32) {
    %c0_i32 = arith.constant 0 : i32
    %c0_i32_0 = arith.constant 0 : i32
    %c0_i32_1 = arith.constant 0 : i32
    return %c0_i32, %c0_i32_0 : i32, i32
  }
  func.func @transform_4(%arg0: i32) -> (i32, i32) {
    %c0_i32 = arith.constant 0 : i32
    %c0_i32_0 = arith.constant 0 : i32
    %c0_i32_1 = arith.constant 0 : i32
    return %c0_i32, %c0_i32_0 : i32, i32
  }
  func.func @transform_5(%arg0: i32) -> (i32, i32) {
    %c0_i32 = arith.constant 0 : i32
    %c0_i32_0 = arith.constant 0 : i32
    %c0_i32_1 = arith.constant 0 : i32
    return %c0_i32, %c0_i32_0 : i32, i32
  }
  func.func @transform_6(%arg0: i32) -> (i32, i32) {
    %c0_i32 = arith.constant 0 : i32
    %c0_i32_0 = arith.constant 0 : i32
    %c0_i32_1 = arith.constant 0 : i32
    return %c0_i32, %c0_i32_0 : i32, i32
  }
  func.func @transform_7(%arg0: i32) -> (i32, i32) {
    %c0_i32 = arith.constant 0 : i32
    %c0_i32_0 = arith.constant 0 : i32
    %c0_i32_1 = arith.constant 0 : i32
    return %c0_i32, %c0_i32_0 : i32, i32
  }
  func.func @transform_8(%arg0: i32) -> (i32, i32) {
    %c0_i32 = arith.constant 0 : i32
    %c0_i32_0 = arith.constant 0 : i32
    %c0_i32_1 = arith.constant 0 : i32
    return %c0_i32, %c0_i32_0 : i32, i32
  }
  func.func @transform_9(%arg0: i32) -> (i32, i32) {
    %c0_i32 = arith.constant 0 : i32
    %c0_i32_0 = arith.constant 0 : i32
    %c0_i32_1 = arith.constant 0 : i32
    return %c0_i32, %c0_i32_0 : i32, i32
  }
  func.func @transform_10(%arg0: i32) -> (i32, i32) {
    %c0_i32 = arith.constant 0 : i32
    %c0_i32_0 = arith.constant 0 : i32
    %c0_i32_1 = arith.constant 0 : i32
    return %c0_i32, %c0_i32_0 : i32, i32
  }
  func.func @transform_11(%arg0: i32) -> (i32, i32) {
    %c0_i32 = arith.constant 0 : i32
    %c0_i32_0 = arith.constant 0 : i32
    %c0_i32_1 = arith.constant 0 : i32
    return %c0_i32, %c0_i32_0 : i32, i32
  }
  func.func @transform_12(%arg0: i32) -> (i32, i32) {
    %c0_i32 = arith.constant 0 : i32
    %c0_i32_0 = arith.constant 0 : i32
    %c0_i32_1 = arith.constant 0 : i32
    return %c0_i32, %c0_i32_0 : i32, i32
  }
  func.func @transform_13(%arg0: i32) -> (i32, i32) {
    %c0_i32 = arith.constant 0 : i32
    %c0_i32_0 = arith.constant 0 : i32
    %c0_i32_1 = arith.constant 0 : i32
    return %c0_i32, %c0_i32_0 : i32, i32
  }
  func.func @transform_14(%arg0: i32) -> (i32, i32) {
    %c0_i32 = arith.constant 0 : i32
    %c0_i32_0 = arith.constant 0 : i32
    return %arg0, %c0_i32 : i32, i32
  }
  func.func @transform_15(%arg0: i32) -> (i32, i32) {
    %c0_i32 = arith.constant 0 : i32
    %c0_i32_0 = arith.constant 0 : i32
    return %arg0, %c0_i32 : i32, i32
  }
}

</mosaic_0001>

<bundles_post_ra>
// kernel: _vae_forward.1
= control target key start
LH: loop header
LB: loop body
LE: loop exit
PB: predicated region body
PF: predicated region fallthrough
CT: control target
= control target key end

     0   :  { %v5636_v2 = vmov 0   ;;  %vm1277_vm0 = vcmask 130048   ;;  %s7381_s0 = inlined_call_operand.vmem [shape: bf16[8,784], index: 0, kind: input, shape index: {}]   ;;  %s7382_s1 = inlined_call_operand.vmem [shape: f32[8,2], index: 1, kind: input, shape index: {}]   ;;  %s7383_s2 = inlined_call_operand.vmem [shape: bf16[784,400], index: 2, kind: input, shape index: {}]   ;;  %s7384_s3 = inlined_call_operand.vmem [shape: f32[1,400], index: 3, kind: input, shape index: {}]   ;;  %s7385_s4 = inlined_call_operand.vmem [shape: bf16[400,200], index: 4, kind: input, shape index: {}]   ;;  %s7386_s5 = inlined_call_operand.vmem [shape: f32[1,200], index: 5, kind: input, shape index: {}]   ;;  %s7387_s6 = inlined_call_operand.vmem [shape: bf16[200,128], index: 6, kind: input, shape index: {}]   ;;  %s7388_s7 = inlined_call_operand.vmem [shape: f32[1,128], index: 7, kind: input, shape index: {}]   ;;  %s7389_s8 = inlined_call_operand.vmem [shape: f32[2,200], index: 8, kind: input, shape index: {}]   ;;  %s7390_s9 = inlined_call_operand.vmem [shape: f32[1,200], index: 9, kind: input, shape index: {}]   ;;  %s7391_s10 = inlined_call_operand.vmem [shape: bf16[200,400], index: 10, kind: input, shape index: {}]   ;;  %s7392_s11 = inlined_call_operand.vmem [shape: f32[1,400], index: 11, kind: input, shape index: {}]   ;;  %s7393_s12 = inlined_call_operand.vmem [shape: bf16[400,784], index: 12, kind: input, shape index: {}]   ;;  %s7394_s13 = inlined_call_operand.vmem [shape: f32[1,784], index: 13, kind: input, shape index: {}]   ;;  %s7395_s14 = inlined_call_operand.hbm [shape: bf16[8,784], index: 14, kind: output, shape index: {0}]   ;;  %s7396_s15 = inlined_call_operand.vmem [shape: f32[8,128], index: 15, kind: output, shape index: {1}]  }
   0x1   :  { %v4868_v0 = vld [vmem:[%s7383_s2 + $0x4] ss:$16 sps:$4 sm:$0xff]   ;;  %1436 = vmatprep.mubr.bf16.mxu1 %v5636_v2  ;;  %4865 = vset.pattern.permute.xlu1 %v5636_v2  ;;  %v4872_v3 = vld [vmem:[%s7383_s2] ss:$16 sps:$4 sm:$0xff]   ;;  %v4876_v6 = vld [vmem:[%s7383_s2 + $0x8] ss:$16 sps:$4 sm:$0xff]  }
   0x2   :  { %v4870_v1 = vld [vmem:[%s7383_s2 + $0x604] ss:$16 sps:$4 sm:$0xff]   ;;  %1281 = vmatprep.subr.bf16.mxu0 %v4868_v0  ;;  %v4873_v4 = vld [vmem:[%s7383_s2 + $0x600] ss:$16 sps:$4 sm:$0xff]   ;;  %v4878_v7 = vld [vmem:[%s7383_s2 + $0xc] ss:$16 sps:$4 sm:$0xff]  }
   0x3   :  { %1404 = vmatprep.subr.bf16.mxu1 %v4870_v1  ;;  %v4874_v5 = vld [vmem:[%s7383_s2 + $0x24] ss:$16 sps:$4 sm:$0xff]   ;;  %1282 = vmatpush1.bf16.msra.mxu0 %v4872_v3  ;;  %v4879_v8 = vld [vmem:[%s7383_s2 + $0x20] ss:$16 sps:$4 sm:$0xff]   ;;  %v4880_v9 = vld [vmem:[%s7381_s0 + $0x18] ss:$0 sps:$4 sm:$0xff]  }
   0x4   :  { %1405 = vmatpush1.bf16.msra.mxu1 %v4873_v4  ;;  %1283 = vmatprep.subr.bf16.mxu0 %v4874_v5  ;;  %v4881_v10 = vld [vmem:[%s7383_s2 + $0x44] ss:$16 sps:$4 sm:$0xff]   ;;  %v4883_v11 = vld [vmem:[%s7383_s2 + $0x28] ss:$16 sps:$4 sm:$0xff]   ;;  %v4885_v12 = vld [vmem:[%s7383_s2 + $0x2c] ss:$16 sps:$4 sm:$0xff]  }
   0x5   :  { %1445 = vmatprep.subr.bf16.mxu1 %v4878_v7  ;;  %v4886_v13 = vld [vmem:[%s7383_s2 + $0x40] ss:$16 sps:$4 sm:$0xff]   ;;  %v4887_v14 = vld [vmem:[%s7383_s2 + $0x64] ss:$16 sps:$4 sm:$0xff]   ;;  %v4891_v15 = vld [vmem:[%s7383_s2 + $0x4c] ss:$16 sps:$4 sm:$0xff]  }
   0x6   :  { %v4889_v16 = vld [vmem:[%s7383_s2 + $0x48] ss:$16 sps:$4 sm:$0xff]   ;;  %v4892_v17 = vld [vmem:[%s7383_s2 + $0x60] ss:$16 sps:$4 sm:$0xff]   ;;  %v4893_v18 = vld [vmem:[%s7383_s2 + $0x84] ss:$16 sps:$4 sm:$0xff]  }
   0x7   :  { %4470 = vmatmul.mubr.msk.bf16.vlgmr.msra.gmra.mrb[0].mxu1 %vm1277_vm0, %v4880_v9  ;;  %1284 = vmatpush1.bf16.msra.mxu0 %v4879_v8  ;;  %v4897_v19 = vld [vmem:[%s7383_s2 + $0x6c] ss:$16 sps:$4 sm:$0xff]   ;;  %v4895_v20 = vld [vmem:[%s7383_s2 + $0x68] ss:$16 sps:$4 sm:$0xff]   ;;  %v4898_v21 = vld [vmem:[%s7383_s2 + $0x80] ss:$16 sps:$4 sm:$0xff]  }
   0x8   :  { %1446 = vmatpush1.bf16.msra.mxu1 %v4876_v6  ;;  %1285 = vmatprep.subr.bf16.mxu0 %v4881_v10  ;;  %v4899_v22 = vld [vmem:[%s7383_s2 + $0xa4] ss:$16 sps:$4 sm:$0xff]   ;;  %v4903_v23 = vld [vmem:[%s7383_s2 + $0x8c] ss:$16 sps:$4 sm:$0xff]   ;;  %v4901_v24 = vld [vmem:[%s7383_s2 + $0x88] ss:$16 sps:$4 sm:$0xff]  }
   0x9   :  { %1447 = vmatprep.subr.bf16.mxu1 %v4885_v12  ;;  %v4904_v25 = vld [vmem:[%s7383_s2 + $0xa0] ss:$16 sps:$4 sm:$0xff]   ;;  %v4905_v26 = vld [vmem:[%s7383_s2 + $0xc4] ss:$16 sps:$4 sm:$0xff]   ;;  %v4909_v27 = vld [vmem:[%s7383_s2 + $0xac] ss:$16 sps:$4 sm:$0xff]  }
   0xa   :  { %v4907_v28 = vld [vmem:[%s7383_s2 + $0xa8] ss:$16 sps:$4 sm:$0xff]   ;;  %v4910_v29 = vld [vmem:[%s7383_s2 + $0xc0] ss:$16 sps:$4 sm:$0xff]   ;;  %v4911_v30 = vld [vmem:[%s7383_s2 + $0xe4] ss:$16 sps:$4 sm:$0xff]  }
   0xb   :  { %1286 = vmatpush1.bf16.msra.mxu0 %v4886_v13  ;;  %v4915_v31 = vld [vmem:[%s7383_s2 + $0xcc] ss:$16 sps:$4 sm:$0xff]   ;;  %v4913_v32 = vld [vmem:[%s7383_s2 + $0xc8] ss:$16 sps:$4 sm:$0xff]   ;;  %v4916_v33 = vld [vmem:[%s7383_s2 + $0xe0] ss:$16 sps:$4 sm:$0xff]  }
   0xc   :  { %1448 = vmatpush1.bf16.msra.mxu1 %v4883_v11  ;;  %1287 = vmatprep.subr.bf16.mxu0 %v4887_v14  ;;  %v4917_v34 = vld [vmem:[%s7383_s2 + $0x104] ss:$16 sps:$4 sm:$0xff]   ;;  %v4921_v35 = vld [vmem:[%s7383_s2 + $0xec] ss:$16 sps:$4 sm:$0xff]   ;;  %v4919_v36 = vld [vmem:[%s7383_s2 + $0xe8] ss:$16 sps:$4 sm:$0xff]  }
   0xd   :  { %1449 = vmatprep.subr.bf16.mxu1 %v4891_v15  ;;  %v4922_v37 = vld [vmem:[%s7383_s2 + $0x100] ss:$16 sps:$4 sm:$0xff]   ;;  %v4923_v38 = vld [vmem:[%s7383_s2 + $0x124] ss:$16 sps:$4 sm:$0xff]   ;;  %v4927_v39 = vld [vmem:[%s7383_s2 + $0x10c] ss:$16 sps:$4 sm:$0xff]  }
   0xe   :  { %v4925_v40 = vld [vmem:[%s7383_s2 + $0x108] ss:$16 sps:$4 sm:$0xff]   ;;  %v4928_v41 = vld [vmem:[%s7383_s2 + $0x120] ss:$16 sps:$4 sm:$0xff]   ;;  %v4929_v42 = vld [vmem:[%s7383_s2 + $0x144] ss:$16 sps:$4 sm:$0xff]  }
   0xf   :  { %1288 = vmatpush1.bf16.msra.mxu0 %v4892_v17  ;;  %v4933_v43 = vld [vmem:[%s7383_s2 + $0x12c] ss:$16 sps:$4 sm:$0xff]   ;;  %v4931_v44 = vld [vmem:[%s7383_s2 + $0x128] ss:$16 sps:$4 sm:$0xff]   ;;  %v4934_v45 = vld [vmem:[%s7383_s2 + $0x140] ss:$16 sps:$4 sm:$0xff]  }
  0x10   :  { %1450 = vmatpush1.bf16.msra.mxu1 %v4889_v16  ;;  %1289 = vmatprep.subr.bf16.mxu0 %v4893_v18  ;;  %v4935_v46 = vld [vmem:[%s7383_s2 + $0x164] ss:$16 sps:$4 sm:$0xff]   ;;  %v4939_v47 = vld [vmem:[%s7383_s2 + $0x14c] ss:$16 sps:$4 sm:$0xff]   ;;  %v4937_v48 = vld [vmem:[%s7383_s2 + $0x148] ss:$16 sps:$4 sm:$0xff]  }
  0x11   :  { %1451 = vmatprep.subr.bf16.mxu1 %v4897_v19  ;;  %v51_v49 = vld [vmem:[%s7381_s0] sm:$0xff]  ;;  %v4945_v53 = vld [vmem:[%s7383_s2 + $0x16c] ss:$16 sps:$4 sm:$0xff]   ;;  %v4943_v54 = vld [vmem:[%s7383_s2 + $0x168] ss:$16 sps:$4 sm:$0xff]  }
  0x12   :  { %v4940_v50 = vld [vmem:[%s7383_s2 + $0x160] ss:$16 sps:$4 sm:$0xff]   ;;  %v4941_v51 = vld [vmem:[%s7383_s2 + $0x184] ss:$16 sps:$4 sm:$0xff]   ;;  %v4268_v52 = vcombine.high %v51_v49, %v51_v49  ;;  %v4951_v57 = vld [vmem:[%s7383_s2 + $0x18c] ss:$16 sps:$4 sm:$0xff]   ;;  %v4267_v7 = vcombine.low %v51_v49, %v51_v49 }
  0x13   :  { %1290 = vmatpush1.bf16.msra.mxu0 %v4898_v21  ;;  %v4946_v55 = vld [vmem:[%s7383_s2 + $0x180] ss:$16 sps:$4 sm:$0xff]   ;;  %v4947_v56 = vld [vmem:[%s7383_s2 + $0x1a4] ss:$16 sps:$4 sm:$0xff]   ;;  %v4949_v58 = vld [vmem:[%s7383_s2 + $0x188] ss:$16 sps:$4 sm:$0xff]  }
  0x14   :  { %1452 = vmatpush1.bf16.msra.mxu1 %v4895_v20  ;;  %1291 = vmatprep.subr.bf16.mxu0 %v4899_v22  ;;  %v4952_v59 = vld [vmem:[%s7383_s2 + $0x1a0] ss:$16 sps:$4 sm:$0xff]   ;;  %v4953_v60 = vld [vmem:[%s7383_s2 + $0x1c4] ss:$16 sps:$4 sm:$0xff]   ;;  %v4957_v61 = vld [vmem:[%s7383_s2 + $0x1ac] ss:$16 sps:$4 sm:$0xff]  }
  0x15   :  { %1453 = vmatprep.subr.bf16.mxu1 %v4903_v23  ;;  %1313 = vmatprep.mubr.bf16.mxu0 %v4268_v52  ;;  %v4955_v62 = vld [vmem:[%s7383_s2 + $0x1a8] ss:$16 sps:$4 sm:$0xff]   ;;  %v4958_v63 = vld [vmem:[%s7383_s2 + $0x1c0] ss:$16 sps:$4 sm:$0xff]   ;;  %v4959_v0 = vld [vmem:[%s7383_s2 + $0x1e4] ss:$16 sps:$4 sm:$0xff]  }
  0x16   :  { %1477 = vmatprep.mubr.bf16.mxu1 %v4268_v52  ;;  %v4963_v1 = vld [vmem:[%s7383_s2 + $0x1cc] ss:$16 sps:$4 sm:$0xff]   ;;  %v4961_v3 = vld [vmem:[%s7383_s2 + $0x1c8] ss:$16 sps:$4 sm:$0xff]   ;;  %v4964_v4 = vld [vmem:[%s7383_s2 + $0x1e0] ss:$16 sps:$4 sm:$0xff]  }
  0x17   :  { %1292 = vmatpush1.bf16.msra.mxu0 %v4904_v25  ;;  %v4969_v5 = vld [vmem:[%s7383_s2 + $0x204] ss:$16 sps:$4 sm:$0xff]   ;;  %v4972_v6 = vld [vmem:[%s7383_s2 + $0x1ec] ss:$16 sps:$4 sm:$0xff]   ;;  %v4967_v8 = vld [vmem:[%s7383_s2 + $0x200] ss:$16 sps:$4 sm:$0xff]  }
  0x18   :  { %1454 = vmatpush1.bf16.msra.mxu1 %v4901_v24  ;;  %1293 = vmatprep.subr.bf16.mxu0 %v4905_v26  ;;  %v4970_v9 = vld [vmem:[%s7383_s2 + $0x1e8] ss:$16 sps:$4 sm:$0xff]   ;;  %v4975_v10 = vld [vmem:[%s7383_s2 + $0x224] ss:$16 sps:$4 sm:$0xff]   ;;  %v4978_v11 = vld [vmem:[%s7383_s2 + $0x20c] ss:$16 sps:$4 sm:$0xff]  }
  0x19   :  { %1455 = vmatprep.subr.bf16.mxu1 %v4909_v27  ;;  %v4973_v12 = vld [vmem:[%s7383_s2 + $0x220] ss:$16 sps:$4 sm:$0xff]   ;;  %v4976_v13 = vld [vmem:[%s7383_s2 + $0x208] ss:$16 sps:$4 sm:$0xff]   ;;  %v4981_v14 = vld [vmem:[%s7383_s2 + $0x244] ss:$16 sps:$4 sm:$0xff]  }
  0x1a   :  { %v4984_v15 = vld [vmem:[%s7383_s2 + $0x22c] ss:$16 sps:$4 sm:$0xff]   ;;  %v4979_v16 = vld [vmem:[%s7383_s2 + $0x240] ss:$16 sps:$4 sm:$0xff]   ;;  %v4982_v17 = vld [vmem:[%s7383_s2 + $0x228] ss:$16 sps:$4 sm:$0xff]  }
  0x1b   :  { %1294 = vmatpush1.bf16.msra.mxu0 %v4910_v29  ;;  %v4987_v18 = vld [vmem:[%s7383_s2 + $0x264] ss:$16 sps:$4 sm:$0xff]   ;;  %v4990_v19 = vld [vmem:[%s7383_s2 + $0x24c] ss:$16 sps:$4 sm:$0xff]   ;;  %v4985_v20 = vld [vmem:[%s7383_s2 + $0x260] ss:$16 sps:$4 sm:$0xff]  }
  0x1c   :  { %1456 = vmatpush1.bf16.msra.mxu1 %v4907_v28  ;;  %1295 = vmatprep.subr.bf16.mxu0 %v4911_v30  ;;  %v4988_v21 = vld [vmem:[%s7383_s2 + $0x248] ss:$16 sps:$4 sm:$0xff]   ;;  %v4993_v22 = vld [vmem:[%s7383_s2 + $0x284] ss:$16 sps:$4 sm:$0xff]   ;;  %v4996_v23 = vld [vmem:[%s7383_s2 + $0x26c] ss:$16 sps:$4 sm:$0xff]  }
  0x1d   :  { %1457 = vmatprep.subr.bf16.mxu1 %v4915_v31  ;;  %v4991_v24 = vld [vmem:[%s7383_s2 + $0x280] ss:$16 sps:$4 sm:$0xff]   ;;  %v4994_v25 = vld [vmem:[%s7383_s2 + $0x268] ss:$16 sps:$4 sm:$0xff]   ;;  %v4999_v26 = vld [vmem:[%s7383_s2 + $0x2a4] ss:$16 sps:$4 sm:$0xff]  }
  0x1e   :  { %v5002_v27 = vld [vmem:[%s7383_s2 + $0x28c] ss:$16 sps:$4 sm:$0xff]   ;;  %v4997_v28 = vld [vmem:[%s7383_s2 + $0x2a0] ss:$16 sps:$4 sm:$0xff]   ;;  %v5000_v29 = vld [vmem:[%s7383_s2 + $0x288] ss:$16 sps:$4 sm:$0xff]  }
  0x1f   :  { %1296 = vmatpush1.bf16.msra.mxu0 %v4916_v33  ;;  %v5005_v30 = vld [vmem:[%s7383_s2 + $0x2c4] ss:$16 sps:$4 sm:$0xff]   ;;  %v5008_v31 = vld [vmem:[%s7383_s2 + $0x2ac] ss:$16 sps:$4 sm:$0xff]   ;;  %v5003_v33 = vld [vmem:[%s7383_s2 + $0x2c0] ss:$16 sps:$4 sm:$0xff]  }
  0x20   :  { %1458 = vmatpush1.bf16.msra.mxu1 %v4913_v32  ;;  %1297 = vmatprep.subr.bf16.mxu0 %v4917_v34  ;;  %v6003_v32 = vld [vmem:[%s7381_s0 + $0x8] sm:$0xff]  ;;  %v5035_v52 = vld [vmem:[%s7383_s2 + $0x364] ss:$16 sps:$4 sm:$0xff]  }
  0x21   :  { %1459 = vmatprep.subr.bf16.mxu1 %v4921_v35  ;;  %v5006_v34 = vld [vmem:[%s7383_s2 + $0x2a8] ss:$16 sps:$4 sm:$0xff]   ;;  %v4270_v35 = vcombine.high %v6003_v32, %v6003_v32  ;;  %v5032_v49 = vld [vmem:[%s7383_s2 + $0x32c] ss:$16 sps:$4 sm:$0xff]  }
  0x23   :  { %1298 = vmatpush1.bf16.msra.mxu0 %v4922_v37  ;;  %v5014_v37 = vld [vmem:[%s7383_s2 + $0x2cc] ss:$16 sps:$4 sm:$0xff]  }
  0x24   :  { %1460 = vmatpush1.bf16.msra.mxu1 %v4919_v36  ;;  %1299 = vmatprep.subr.bf16.mxu0 %v4923_v38  ;;  %v5011_v36 = vld [vmem:[%s7383_s2 + $0x2e4] ss:$16 sps:$4 sm:$0xff]   ;;  %v5009_v38 = vld [vmem:[%s7383_s2 + $0x2e0] ss:$16 sps:$4 sm:$0xff]  }
  0x25   :  { %1461 = vmatprep.subr.bf16.mxu1 %v4927_v39  ;;  %v5012_v39 = vld [vmem:[%s7383_s2 + $0x2c8] ss:$16 sps:$4 sm:$0xff]  }
  0x27   :  { %1300 = vmatpush1.bf16.msra.mxu0 %v4928_v41  ;;  %v5020_v41 = vld [vmem:[%s7383_s2 + $0x2ec] ss:$16 sps:$4 sm:$0xff]  }
  0x28   :  { %1462 = vmatpush1.bf16.msra.mxu1 %v4925_v40  ;;  %1301 = vmatprep.subr.bf16.mxu0 %v4929_v42  ;;  %v5017_v40 = vld [vmem:[%s7383_s2 + $0x304] ss:$16 sps:$4 sm:$0xff]   ;;  %v5015_v42 = vld [vmem:[%s7383_s2 + $0x300] ss:$16 sps:$4 sm:$0xff]  }
  0x29   :  { %1463 = vmatprep.subr.bf16.mxu1 %v4933_v43  ;;  %v5018_v43 = vld [vmem:[%s7383_s2 + $0x2e8] ss:$16 sps:$4 sm:$0xff]  }
  0x2b   :  { %1302 = vmatpush1.bf16.msra.mxu0 %v4934_v45  ;;  %v5026_v45 = vld [vmem:[%s7383_s2 + $0x30c] ss:$16 sps:$4 sm:$0xff]  }
  0x2c   :  { %1464 = vmatpush1.bf16.msra.mxu1 %v4931_v44  ;;  %1303 = vmatprep.subr.bf16.mxu0 %v4935_v46  ;;  %v5023_v44 = vld [vmem:[%s7383_s2 + $0x324] ss:$16 sps:$4 sm:$0xff]   ;;  %v5021_v46 = vld [vmem:[%s7383_s2 + $0x320] ss:$16 sps:$4 sm:$0xff]  }
  0x2d   :  { %1465 = vmatprep.subr.bf16.mxu1 %v4939_v47  ;;  %v5024_v47 = vld [vmem:[%s7383_s2 + $0x308] ss:$16 sps:$4 sm:$0xff]  }
  0x2f   :  { %1304 = vmatpush1.bf16.msra.mxu0 %v4940_v50  ;;  %v5027_v50 = vld [vmem:[%s7383_s2 + $0x340] ss:$16 sps:$4 sm:$0xff]  }
  0x30   :  { %1466 = vmatpush1.bf16.msra.mxu1 %v4937_v48  ;;  %1305 = vmatprep.subr.bf16.mxu0 %v4941_v51  ;;  %v5029_v48 = vld [vmem:[%s7383_s2 + $0x344] ss:$16 sps:$4 sm:$0xff]   ;;  %v5030_v51 = vld [vmem:[%s7383_s2 + $0x328] ss:$16 sps:$4 sm:$0xff]  }
  0x31   :  { %1467 = vmatprep.subr.bf16.mxu1 %v4945_v53  ;;  %v5038_v53 = vld [vmem:[%s7383_s2 + $0x34c] ss:$16 sps:$4 sm:$0xff]  }
  0x33   :  { %1306 = vmatpush1.bf16.msra.mxu0 %v4946_v55  ;;  %v5036_v55 = vld [vmem:[%s7383_s2 + $0x348] ss:$16 sps:$4 sm:$0xff]  }
  0x34   :  { %1468 = vmatpush1.bf16.msra.mxu1 %v4943_v54  ;;  %1307 = vmatprep.subr.bf16.mxu0 %v4947_v56  ;;  %v5033_v54 = vld [vmem:[%s7383_s2 + $0x360] ss:$16 sps:$4 sm:$0xff]   ;;  %v5041_v56 = vld [vmem:[%s7383_s2 + $0x384] ss:$16 sps:$4 sm:$0xff]  }
  0x35   :  { %1469 = vmatprep.subr.bf16.mxu1 %v4951_v57  ;;  %v5044_v57 = vld [vmem:[%s7383_s2 + $0x36c] ss:$16 sps:$4 sm:$0xff]  }
  0x37   :  { %1308 = vmatpush1.bf16.msra.mxu0 %v4952_v59  ;;  %v5042_v59 = vld [vmem:[%s7383_s2 + $0x368] ss:$16 sps:$4 sm:$0xff]  }
  0x38   :  { %1470 = vmatpush1.bf16.msra.mxu1 %v4949_v58  ;;  %1309 = vmatprep.subr.bf16.mxu0 %v4953_v60  ;;  %v5039_v58 = vld [vmem:[%s7383_s2 + $0x380] ss:$16 sps:$4 sm:$0xff]   ;;  %v5047_v60 = vld [vmem:[%s7383_s2 + $0x3a4] ss:$16 sps:$4 sm:$0xff]  }
  0x39   :  { %1471 = vmatprep.subr.bf16.mxu1 %v4957_v61  ;;  %v5050_v61 = vld [vmem:[%s7383_s2 + $0x38c] ss:$16 sps:$4 sm:$0xff]  }
  0x3b   :  { %1310 = vmatpush1.bf16.msra.mxu0 %v4958_v63  ;;  %v5048_v63 = vld [vmem:[%s7383_s2 + $0x388] ss:$16 sps:$4 sm:$0xff]  }
  0x3c   :  { %1472 = vmatpush1.bf16.msra.mxu1 %v4955_v62  ;;  %1311 = vmatprep.subr.bf16.mxu0 %v4959_v0  ;;  %v5045_v62 = vld [vmem:[%s7383_s2 + $0x3a0] ss:$16 sps:$4 sm:$0xff]   ;;  %v5053_v0 = vld [vmem:[%s7383_s2 + $0x3c4] ss:$16 sps:$4 sm:$0xff]  }
  0x3d   :  { %1473 = vmatprep.subr.bf16.mxu1 %v4963_v1  ;;  %v5056_v1 = vld [vmem:[%s7383_s2 + $0x3ac] ss:$16 sps:$4 sm:$0xff]  }
  0x3f   :  { %1312 = vmatpush1.bf16.msra.mxu0 %v4964_v4  ;;  %v5054_v4 = vld [vmem:[%s7383_s2 + $0x3a8] ss:$16 sps:$4 sm:$0xff]  }
  0x40   :  { %1474 = vmatpush1.bf16.msra.mxu1 %v4961_v3  ;;  %1322 = vmatprep.subr.bf16.mxu0 %v4969_v5  ;;  %v5051_v3 = vld [vmem:[%s7383_s2 + $0x3c0] ss:$16 sps:$4 sm:$0xff]   ;;  %v5059_v5 = vld [vmem:[%s7383_s2 + $0x3e4] ss:$16 sps:$4 sm:$0xff]  }
  0x41   :  { %1475 = vmatprep.subr.bf16.mxu1 %v4972_v6  ;;  %v5062_v6 = vld [vmem:[%s7383_s2 + $0x3cc] ss:$16 sps:$4 sm:$0xff]  }
  0x42   :  { %1314 = vmatmul.mubr.bf16.vlgmr.msra.gmra.mrb[0].mxu0 %v4267_v7 }
  0x43   :  { %1323 = vmatpush1.bf16.msra.mxu0 %v4967_v8  ;;  %1354 = vmatprep.mubr.bf16.mxu0 %v4270_v35  ;;  %v5060_v8 = vld [vmem:[%s7383_s2 + $0x3c8] ss:$16 sps:$4 sm:$0xff]  }
  0x44   :  { %1476 = vmatpush1.bf16.msra.mxu1 %v4970_v9  ;;  %1324 = vmatprep.subr.bf16.mxu0 %v4975_v10  ;;  %v5067_v9 = vld [vmem:[%s7383_s2 + $0x404] ss:$16 sps:$4 sm:$0xff]   ;;  %v5070_v10 = vld [vmem:[%s7383_s2 + $0x3ec] ss:$16 sps:$4 sm:$0xff]  }
  0x45   :  { %1486 = vmatprep.subr.bf16.mxu1 %v4978_v11  ;;  %v4269_v11 = vcombine.low %v6003_v32, %v6003_v32  ;;  %v5097_v32 = vld [vmem:[%s7383_s2 + $0x4a4] ss:$16 sps:$4 sm:$0xff]  }
  0x47   :  { %1478 = vmatmul.mubr.bf16.vlgmr.msra.gmra.mrb[4].mxu1 %v4267_v7  ;;  %1325 = vmatpush1.bf16.msra.mxu0 %v4973_v12  ;;  %v5057_v7 = vld [vmem:[%s7383_s2 + $0x3e0] ss:$16 sps:$4 sm:$0xff]  }
  0x48   :  { %1487 = vmatpush1.bf16.msra.mxu1 %v4976_v13  ;;  %1326 = vmatprep.subr.bf16.mxu0 %v4981_v14  ;;  %v5065_v12 = vld [vmem:[%s7383_s2 + $0x400] ss:$16 sps:$4 sm:$0xff]   ;;  %v5068_v13 = vld [vmem:[%s7383_s2 + $0x3e8] ss:$16 sps:$4 sm:$0xff]   ;;  %v5073_v14 = vld [vmem:[%s7383_s2 + $0x424] ss:$16 sps:$4 sm:$0xff]  }
  0x49   :  { %1488 = vmatprep.subr.bf16.mxu1 %v4984_v15  ;;  %1518 = vmatprep.mubr.bf16.mxu1 %v4270_v35  ;;  %v5076_v15 = vld [vmem:[%s7383_s2 + $0x40c] ss:$16 sps:$4 sm:$0xff]   ;;  %v5098_v35 = vld [vmem:[%s7383_s2 + $0x488] ss:$16 sps:$4 sm:$0xff]  }
  0x4b   :  { %1327 = vmatpush1.bf16.msra.mxu0 %v4979_v16  ;;  %v6144_v16 = vld [vmem:[%s7381_s0 + $0x10] sm:$0xff] }
  0x4c   :  { %1489 = vmatpush1.bf16.msra.mxu1 %v4982_v17  ;;  %1328 = vmatprep.subr.bf16.mxu0 %v4987_v18  ;;  %v4272_v17 = vcombine.high %v6144_v16, %v6144_v16  ;;  %v5071_v18 = vld [vmem:[%s7383_s2 + $0x420] ss:$16 sps:$4 sm:$0xff]  }
  0x4d   :  { %1490 = vmatprep.subr.bf16.mxu1 %v4990_v19  ;;  %v5074_v19 = vld [vmem:[%s7383_s2 + $0x408] ss:$16 sps:$4 sm:$0xff]  }
  0x4f   :  { %1329 = vmatpush1.bf16.msra.mxu0 %v4985_v20  ;;  %v5079_v20 = vld [vmem:[%s7383_s2 + $0x444] ss:$16 sps:$4 sm:$0xff]  }
  0x50   :  { %1491 = vmatpush1.bf16.msra.mxu1 %v4988_v21  ;;  %1330 = vmatprep.subr.bf16.mxu0 %v4993_v22  ;;  %v5082_v21 = vld [vmem:[%s7383_s2 + $0x42c] ss:$16 sps:$4 sm:$0xff]   ;;  %v5077_v22 = vld [vmem:[%s7383_s2 + $0x440] ss:$16 sps:$4 sm:$0xff]  }
  0x51   :  { %1492 = vmatprep.subr.bf16.mxu1 %v4996_v23  ;;  %v5080_v23 = vld [vmem:[%s7383_s2 + $0x428] ss:$16 sps:$4 sm:$0xff]  }
  0x53   :  { %1331 = vmatpush1.bf16.msra.mxu0 %v4991_v24  ;;  %v5085_v24 = vld [vmem:[%s7383_s2 + $0x464] ss:$16 sps:$4 sm:$0xff]  }
  0x54   :  { %1493 = vmatpush1.bf16.msra.mxu1 %v4994_v25  ;;  %1332 = vmatprep.subr.bf16.mxu0 %v4999_v26  ;;  %v5088_v25 = vld [vmem:[%s7383_s2 + $0x44c] ss:$16 sps:$4 sm:$0xff]   ;;  %v5083_v26 = vld [vmem:[%s7383_s2 + $0x460] ss:$16 sps:$4 sm:$0xff]  }
  0x55   :  { %1494 = vmatprep.subr.bf16.mxu1 %v5002_v27  ;;  %v5086_v27 = vld [vmem:[%s7383_s2 + $0x448] ss:$16 sps:$4 sm:$0xff]  }
  0x57   :  { %1333 = vmatpush1.bf16.msra.mxu0 %v4997_v28  ;;  %v5091_v28 = vld [vmem:[%s7383_s2 + $0x484] ss:$16 sps:$4 sm:$0xff]  }
  0x58   :  { %1495 = vmatpush1.bf16.msra.mxu1 %v5000_v29  ;;  %1334 = vmatprep.subr.bf16.mxu0 %v5005_v30  ;;  %v5094_v29 = vld [vmem:[%s7383_s2 + $0x46c] ss:$16 sps:$4 sm:$0xff]   ;;  %v5089_v30 = vld [vmem:[%s7383_s2 + $0x480] ss:$16 sps:$4 sm:$0xff]  }
  0x59   :  { %1496 = vmatprep.subr.bf16.mxu1 %v5008_v31  ;;  %v5092_v31 = vld [vmem:[%s7383_s2 + $0x468] ss:$16 sps:$4 sm:$0xff]  }
  0x5b   :  { %1335 = vmatpush1.bf16.msra.mxu0 %v5003_v33  ;;  %v5100_v33 = vld [vmem:[%s7383_s2 + $0x48c] ss:$16 sps:$4 sm:$0xff]  }
  0x5c   :  { %1497 = vmatpush1.bf16.msra.mxu1 %v5006_v34  ;;  %1336 = vmatprep.subr.bf16.mxu0 %v5011_v36  ;;  %v5095_v34 = vld [vmem:[%s7383_s2 + $0x4a0] ss:$16 sps:$4 sm:$0xff]   ;;  %v5103_v36 = vld [vmem:[%s7383_s2 + $0x4c4] ss:$16 sps:$4 sm:$0xff]  }
  0x5d   :  { %1498 = vmatprep.subr.bf16.mxu1 %v5014_v37  ;;  %v5106_v37 = vld [vmem:[%s7383_s2 + $0x4ac] ss:$16 sps:$4 sm:$0xff]  }
  0x5f   :  { %1337 = vmatpush1.bf16.msra.mxu0 %v5009_v38  ;;  %v5101_v38 = vld [vmem:[%s7383_s2 + $0x4c0] ss:$16 sps:$4 sm:$0xff]  }
  0x60   :  { %1499 = vmatpush1.bf16.msra.mxu1 %v5012_v39  ;;  %1338 = vmatprep.subr.bf16.mxu0 %v5017_v40  ;;  %v5104_v39 = vld [vmem:[%s7383_s2 + $0x4a8] ss:$16 sps:$4 sm:$0xff]   ;;  %v5109_v40 = vld [vmem:[%s7383_s2 + $0x4e4] ss:$16 sps:$4 sm:$0xff]  }
  0x61   :  { %1500 = vmatprep.subr.bf16.mxu1 %v5020_v41  ;;  %v5112_v41 = vld [vmem:[%s7383_s2 + $0x4cc] ss:$16 sps:$4 sm:$0xff]  }
  0x63   :  { %1339 = vmatpush1.bf16.msra.mxu0 %v5015_v42  ;;  %v5107_v42 = vld [vmem:[%s7383_s2 + $0x4e0] ss:$16 sps:$4 sm:$0xff]  }
  0x64   :  { %1501 = vmatpush1.bf16.msra.mxu1 %v5018_v43  ;;  %1340 = vmatprep.subr.bf16.mxu0 %v5023_v44  ;;  %v5110_v43 = vld [vmem:[%s7383_s2 + $0x4c8] ss:$16 sps:$4 sm:$0xff]   ;;  %v5115_v44 = vld [vmem:[%s7383_s2 + $0x504] ss:$16 sps:$4 sm:$0xff]  }
  0x65   :  { %1502 = vmatprep.subr.bf16.mxu1 %v5026_v45  ;;  %v5118_v45 = vld [vmem:[%s7383_s2 + $0x4ec] ss:$16 sps:$4 sm:$0xff]  }
  0x67   :  { %1341 = vmatpush1.bf16.msra.mxu0 %v5021_v46  ;;  %v5113_v46 = vld [vmem:[%s7383_s2 + $0x500] ss:$16 sps:$4 sm:$0xff]  }
  0x68   :  { %1503 = vmatpush1.bf16.msra.mxu1 %v5024_v47  ;;  %1342 = vmatprep.subr.bf16.mxu0 %v5029_v48  ;;  %v5116_v47 = vld [vmem:[%s7383_s2 + $0x4e8] ss:$16 sps:$4 sm:$0xff]   ;;  %v5121_v48 = vld [vmem:[%s7383_s2 + $0x524] ss:$16 sps:$4 sm:$0xff]  }
  0x69   :  { %1504 = vmatprep.subr.bf16.mxu1 %v5032_v49  ;;  %v5124_v49 = vld [vmem:[%s7383_s2 + $0x50c] ss:$16 sps:$4 sm:$0xff]  }
  0x6b   :  { %1343 = vmatpush1.bf16.msra.mxu0 %v5027_v50  ;;  %v5119_v50 = vld [vmem:[%s7383_s2 + $0x520] ss:$16 sps:$4 sm:$0xff]  }
  0x6c   :  { %1505 = vmatpush1.bf16.msra.mxu1 %v5030_v51  ;;  %1344 = vmatprep.subr.bf16.mxu0 %v5035_v52  ;;  %v5122_v51 = vld [vmem:[%s7383_s2 + $0x508] ss:$16 sps:$4 sm:$0xff]   ;;  %v5127_v52 = vld [vmem:[%s7383_s2 + $0x544] ss:$16 sps:$4 sm:$0xff]  }
  0x6d   :  { %1506 = vmatprep.subr.bf16.mxu1 %v5038_v53  ;;  %v5130_v53 = vld [vmem:[%s7383_s2 + $0x52c] ss:$16 sps:$4 sm:$0xff]  }
  0x6f   :  { %1345 = vmatpush1.bf16.msra.mxu0 %v5033_v54  ;;  %v5125_v54 = vld [vmem:[%s7383_s2 + $0x540] ss:$16 sps:$4 sm:$0xff]  }
  0x70   :  { %1507 = vmatpush1.bf16.msra.mxu1 %v5036_v55  ;;  %1346 = vmatprep.subr.bf16.mxu0 %v5041_v56  ;;  %v5128_v55 = vld [vmem:[%s7383_s2 + $0x528] ss:$16 sps:$4 sm:$0xff]   ;;  %v5133_v56 = vld [vmem:[%s7383_s2 + $0x564] ss:$16 sps:$4 sm:$0xff]  }
  0x71   :  { %1508 = vmatprep.subr.bf16.mxu1 %v5044_v57  ;;  %v5136_v57 = vld [vmem:[%s7383_s2 + $0x54c] ss:$16 sps:$4 sm:$0xff]  }
  0x73   :  { %1347 = vmatpush1.bf16.msra.mxu0 %v5039_v58  ;;  %v5131_v58 = vld [vmem:[%s7383_s2 + $0x560] ss:$16 sps:$4 sm:$0xff]  }
  0x74   :  { %1509 = vmatpush1.bf16.msra.mxu1 %v5042_v59  ;;  %1348 = vmatprep.subr.bf16.mxu0 %v5047_v60  ;;  %v5134_v59 = vld [vmem:[%s7383_s2 + $0x548] ss:$16 sps:$4 sm:$0xff]   ;;  %v5139_v60 = vld [vmem:[%s7383_s2 + $0x584] ss:$16 sps:$4 sm:$0xff]  }
  0x75   :  { %1510 = vmatprep.subr.bf16.mxu1 %v5050_v61  ;;  %v5142_v61 = vld [vmem:[%s7383_s2 + $0x56c] ss:$16 sps:$4 sm:$0xff]  }
  0x77   :  { %1349 = vmatpush1.bf16.msra.mxu0 %v5045_v62  ;;  %v5137_v62 = vld [vmem:[%s7383_s2 + $0x580] ss:$16 sps:$4 sm:$0xff]  }
  0x78   :  { %1511 = vmatpush1.bf16.msra.mxu1 %v5048_v63  ;;  %1350 = vmatprep.subr.bf16.mxu0 %v5053_v0  ;;  %v5140_v63 = vld [vmem:[%s7383_s2 + $0x568] ss:$16 sps:$4 sm:$0xff]   ;;  %v5145_v0 = vld [vmem:[%s7383_s2 + $0x5a4] ss:$16 sps:$4 sm:$0xff]  }
  0x79   :  { %1512 = vmatprep.subr.bf16.mxu1 %v5056_v1  ;;  %v5148_v1 = vld [vmem:[%s7383_s2 + $0x58c] ss:$16 sps:$4 sm:$0xff]  }
  0x7b   :  { %1351 = vmatpush1.bf16.msra.mxu0 %v5051_v3  ;;  %v5143_v3 = vld [vmem:[%s7383_s2 + $0x5a0] ss:$16 sps:$4 sm:$0xff]  }
  0x7c   :  { %1513 = vmatpush1.bf16.msra.mxu1 %v5054_v4  ;;  %1352 = vmatprep.subr.bf16.mxu0 %v5059_v5  ;;  %v5146_v4 = vld [vmem:[%s7383_s2 + $0x588] ss:$16 sps:$4 sm:$0xff]   ;;  %v5151_v5 = vld [vmem:[%s7383_s2 + $0x5c4] ss:$16 sps:$4 sm:$0xff]  }
  0x7d   :  { %1514 = vmatprep.subr.bf16.mxu1 %v5062_v6  ;;  %v5154_v6 = vld [vmem:[%s7383_s2 + $0x5ac] ss:$16 sps:$4 sm:$0xff]  }
  0x7f   :  { %1353 = vmatpush1.bf16.msra.mxu0 %v5057_v7  ;;  %v5149_v7 = vld [vmem:[%s7383_s2 + $0x5c0] ss:$16 sps:$4 sm:$0xff]  }
  0x80   :  { %1515 = vmatpush1.bf16.msra.mxu1 %v5060_v8  ;;  %1363 = vmatprep.subr.bf16.mxu0 %v5067_v9  ;;  %v5152_v8 = vld [vmem:[%s7383_s2 + $0x5a8] ss:$16 sps:$4 sm:$0xff]   ;;  %v5157_v9 = vld [vmem:[%s7383_s2 + $0x5e4] ss:$16 sps:$4 sm:$0xff]  }
  0x81   :  { %1516 = vmatprep.subr.bf16.mxu1 %v5070_v10  ;;  %v5160_v10 = vld [vmem:[%s7383_s2 + $0x5cc] ss:$16 sps:$4 sm:$0xff]  }
  0x82   :  { %1355 = vmatmul.mubr.bf16.vlgmr.msra.gmra.mrb[0].mxu0 %v4269_v11 }
  0x83   :  { %1364 = vmatpush1.bf16.msra.mxu0 %v5065_v12  ;;  %1395 = vmatprep.mubr.bf16.mxu0 %v4272_v17  ;;  %v5158_v12 = vld [vmem:[%s7383_s2 + $0x5c8] ss:$16 sps:$4 sm:$0xff]  }
  0x84   :  { %1517 = vmatpush1.bf16.msra.mxu1 %v5068_v13  ;;  %1365 = vmatprep.subr.bf16.mxu0 %v5073_v14  ;;  %v5165_v13 = vld [vmem:[%s7383_s2 + $0x5ec] ss:$16 sps:$4 sm:$0xff]  }
  0x85   :  { %1527 = vmatprep.subr.bf16.mxu1 %v5076_v15  ;;  %v5171_v14 = vld [vmem:[%s7385_s4 + $0x4] ss:$8 sps:$4 sm:$0xff]   ;;  %v5163_v15 = vld [vmem:[%s7383_s2 + $0x5e8] ss:$16 sps:$4 sm:$0xff]  }
  0x87   :  { %1519 = vmatmul.mubr.bf16.vlgmr.msra.gmra.mrb[4].mxu1 %v4269_v11  ;;  %1366 = vmatpush1.bf16.msra.mxu0 %v5071_v18  ;;  %v5155_v11 = vld [vmem:[%s7383_s2 + $0x5e0] ss:$16 sps:$4 sm:$0xff]   ;;  %v4271_v18 = vcombine.low %v6144_v16, %v6144_v16 }
  0x88   :  { %1528 = vmatpush1.bf16.msra.mxu1 %v5074_v19  ;;  %1367 = vmatprep.subr.bf16.mxu0 %v5079_v20  ;;  %v5168_v19 = vld [vmem:[%s7383_s2 + $0x60c] ss:$16 sps:$4 sm:$0xff]   ;;  %v5172_v16 = vld [vmem:[%s7385_s4 + $0x10] ss:$8 sps:$4 sm:$0xff]  }
  0x89   :  { %1529 = vmatprep.subr.bf16.mxu1 %v5082_v21  ;;  %1559 = vmatprep.mubr.bf16.mxu1 %v4272_v17  ;;  %v5169_v17 = vld [vmem:[%s7385_s4] ss:$8 sps:$4 sm:$0xff]   ;;  %v5174_v20 = vld [vmem:[%s7385_s4 + $0x14] ss:$8 sps:$4 sm:$0xff]  }
  0x8a   :  { %v5166_v21 = vld [vmem:[%s7383_s2 + $0x608] ss:$16 sps:$4 sm:$0xff]  }
  0x8b   :  { %1368 = vmatpush1.bf16.msra.mxu0 %v5077_v22  ;;  %v5177_v22 = vld [vmem:[%s7385_s4 + $0x24] ss:$8 sps:$4 sm:$0xff]  }
  0x8c   :  { %1530 = vmatpush1.bf16.msra.mxu1 %v5080_v23  ;;  %1369 = vmatprep.subr.bf16.mxu0 %v5085_v24  ;;  %v5175_v23 = vld [vmem:[%s7385_s4 + $0x20] ss:$8 sps:$4 sm:$0xff]   ;;  %v5180_v24 = vld [vmem:[%s7385_s4 + $0x34] ss:$8 sps:$4 sm:$0xff]  }
  0x8d   :  { %1531 = vmatprep.subr.bf16.mxu1 %v5088_v25  ;;  %v5178_v25 = vld [vmem:[%s7385_s4 + $0x30] ss:$8 sps:$4 sm:$0xff]  }
  0x8f   :  { %1370 = vmatpush1.bf16.msra.mxu0 %v5083_v26  ;;  %v5183_v26 = vld [vmem:[%s7385_s4 + $0x44] ss:$8 sps:$4 sm:$0xff]  }
  0x90   :  { %1532 = vmatpush1.bf16.msra.mxu1 %v5086_v27  ;;  %1371 = vmatprep.subr.bf16.mxu0 %v5091_v28  ;;  %v5181_v27 = vld [vmem:[%s7385_s4 + $0x40] ss:$8 sps:$4 sm:$0xff]   ;;  %v5186_v28 = vld [vmem:[%s7385_s4 + $0x54] ss:$8 sps:$4 sm:$0xff]  }
  0x91   :  { %1533 = vmatprep.subr.bf16.mxu1 %v5094_v29  ;;  %v5611_v29 = vld [vmem:[%s7381_s0 + $0x18] ss:$0 sps:$4 sm:$0xff]  }
  0x93   :  { %1372 = vmatpush1.bf16.msra.mxu0 %v5089_v30  ;;  %v5184_v30 = vld [vmem:[%s7385_s4 + $0x50] ss:$8 sps:$4 sm:$0xff]  }
  0x94   :  { %1534 = vmatpush1.bf16.msra.mxu1 %v5092_v31  ;;  %1373 = vmatprep.subr.bf16.mxu0 %v5097_v32  ;;  %v5189_v31 = vld [vmem:[%s7385_s4 + $0x64] ss:$8 sps:$4 sm:$0xff]   ;;  %v5187_v32 = vld [vmem:[%s7385_s4 + $0x60] ss:$8 sps:$4 sm:$0xff]  }
  0x95   :  { %1535 = vmatprep.subr.bf16.mxu1 %v5100_v33  ;;  %v5192_v33 = vld [vmem:[%s7385_s4 + $0x74] ss:$8 sps:$4 sm:$0xff]  }
  0x97   :  { %1374 = vmatpush1.bf16.msra.mxu0 %v5095_v34 }
  0x98   :  { %1536 = vmatpush1.bf16.msra.mxu1 %v5098_v35  ;;  %1375 = vmatprep.subr.bf16.mxu0 %v5103_v36  ;;  %v5190_v36 = vld [vmem:[%s7385_s4 + $0x70] ss:$8 sps:$4 sm:$0xff]  }
  0x99   :  { %1537 = vmatprep.subr.bf16.mxu1 %v5106_v37 }
  0x9b   :  { %1376 = vmatpush1.bf16.msra.mxu0 %v5101_v38  ;;  %v5195_v38 = vld [vmem:[%s7385_s4 + $0x84] ss:$8 sps:$4 sm:$0xff]  }
  0x9c   :  { %1538 = vmatpush1.bf16.msra.mxu1 %v5104_v39  ;;  %1377 = vmatprep.subr.bf16.mxu0 %v5109_v40  ;;  %v5193_v40 = vld [vmem:[%s7385_s4 + $0x80] ss:$8 sps:$4 sm:$0xff]  }
  0x9d   :  { %1539 = vmatprep.subr.bf16.mxu1 %v5112_v41  ;;  %v5198_v41 = vld [vmem:[%s7385_s4 + $0x94] ss:$8 sps:$4 sm:$0xff]  }
  0x9f   :  { %1378 = vmatpush1.bf16.msra.mxu0 %v5107_v42  ;;  %v5196_v42 = vld [vmem:[%s7385_s4 + $0x90] ss:$8 sps:$4 sm:$0xff]  }
  0xa0   :  { %1540 = vmatpush1.bf16.msra.mxu1 %v5110_v43  ;;  %1379 = vmatprep.subr.bf16.mxu0 %v5115_v44  ;;  %v5201_v43 = vld [vmem:[%s7385_s4 + $0xa4] ss:$8 sps:$4 sm:$0xff]   ;;  %v5199_v44 = vld [vmem:[%s7385_s4 + $0xa0] ss:$8 sps:$4 sm:$0xff]  }
  0xa1   :  { %1541 = vmatprep.subr.bf16.mxu1 %v5118_v45  ;;  %v5204_v45 = vld [vmem:[%s7385_s4 + $0xb4] ss:$8 sps:$4 sm:$0xff]  }
  0xa3   :  { %1380 = vmatpush1.bf16.msra.mxu0 %v5113_v46  ;;  %v5202_v46 = vld [vmem:[%s7385_s4 + $0xb0] ss:$8 sps:$4 sm:$0xff]  }
  0xa4   :  { %1542 = vmatpush1.bf16.msra.mxu1 %v5116_v47  ;;  %1381 = vmatprep.subr.bf16.mxu0 %v5121_v48  ;;  %v5207_v47 = vld [vmem:[%s7385_s4 + $0xc4] ss:$8 sps:$4 sm:$0xff]   ;;  %v5205_v48 = vld [vmem:[%s7385_s4 + $0xc0] ss:$8 sps:$4 sm:$0xff]  }
  0xa5   :  { %1543 = vmatprep.subr.bf16.mxu1 %v5124_v49  ;;  %v5210_v49 = vld [vmem:[%s7385_s4 + $0xd4] ss:$8 sps:$4 sm:$0xff]  }
  0xa7   :  { %1382 = vmatpush1.bf16.msra.mxu0 %v5119_v50  ;;  %v5208_v50 = vld [vmem:[%s7385_s4 + $0xd0] ss:$8 sps:$4 sm:$0xff]  }
  0xa8   :  { %1544 = vmatpush1.bf16.msra.mxu1 %v5122_v51  ;;  %1383 = vmatprep.subr.bf16.mxu0 %v5127_v52 }
  0xa9   :  { %1545 = vmatprep.subr.bf16.mxu1 %v5130_v53 }
  0xab   :  { %1384 = vmatpush1.bf16.msra.mxu0 %v5125_v54 }
  0xac   :  { %1546 = vmatpush1.bf16.msra.mxu1 %v5128_v55  ;;  %1385 = vmatprep.subr.bf16.mxu0 %v5133_v56 }
  0xad   :  { %1547 = vmatprep.subr.bf16.mxu1 %v5136_v57 }
  0xaf   :  { %1386 = vmatpush1.bf16.msra.mxu0 %v5131_v58 }
  0xb0   :  { %1548 = vmatpush1.bf16.msra.mxu1 %v5134_v59  ;;  %1387 = vmatprep.subr.bf16.mxu0 %v5139_v60 }
  0xb1   :  { %1549 = vmatprep.subr.bf16.mxu1 %v5142_v61 }
  0xb3   :  { %1388 = vmatpush1.bf16.msra.mxu0 %v5137_v62 }
  0xb4   :  { %1550 = vmatpush1.bf16.msra.mxu1 %v5140_v63  ;;  %1389 = vmatprep.subr.bf16.mxu0 %v5145_v0 }
  0xb5   :  { %1551 = vmatprep.subr.bf16.mxu1 %v5148_v1 }
  0xb7   :  { %1390 = vmatpush1.bf16.msra.mxu0 %v5143_v3 }
  0xb8   :  { %1552 = vmatpush1.bf16.msra.mxu1 %v5146_v4  ;;  %1391 = vmatprep.subr.bf16.mxu0 %v5151_v5 }
  0xb9   :  { %1553 = vmatprep.subr.bf16.mxu1 %v5154_v6 }
  0xbb   :  { %1392 = vmatpush1.bf16.msra.mxu0 %v5149_v7 }
  0xbc   :  { %1554 = vmatpush1.bf16.msra.mxu1 %v5152_v8  ;;  %1393 = vmatprep.subr.bf16.mxu0 %v5157_v9 }
  0xbd   :  { %1555 = vmatprep.subr.bf16.mxu1 %v5160_v10 }
  0xbf   :  { %1394 = vmatpush1.bf16.msra.mxu0 %v5155_v11 }
  0xc0   :  { %1556 = vmatpush1.bf16.msra.mxu1 %v5158_v12  ;;  %1940 = vmatprep.subr.bf16.mxu0 %v5171_v14 }
  0xc1   :  { %1557 = vmatprep.subr.bf16.mxu1 %v5165_v13 }
  0xc2   :  { %1396 = vmatmul.mubr.bf16.vlgmr.msra.gmra.mrb[0].mxu0 %v4271_v18 }
  0xc3   :  { %1941 = vmatpush1.bf16.msra.mxu0 %v5169_v17 }
  0xc4   :  { %1558 = vmatpush1.bf16.msra.mxu1 %v5163_v15  ;;  %1942 = vmatprep.subr.bf16.mxu0 %v5174_v20 }
  0xc5   :  { %1568 = vmatprep.subr.bf16.mxu1 %v5168_v19 }
  0xc7   :  { %1560 = vmatmul.mubr.bf16.vlgmr.msra.gmra.mrb[4].mxu1 %v4271_v18  ;;  %1943 = vmatpush1.bf16.msra.mxu0 %v5172_v16 }
  0xc8   :  { %1569 = vmatpush1.bf16.msra.mxu1 %v5166_v21  ;;  %1600 = vmatprep.mubr.bf16.mxu1 %v5636_v2 }
  0xc9   :  { %2145 = vmatprep.subr.bf16.mxu1 %v5636_v2  ;;  %1944 = vmatprep.subr.bf16.mxu0 %v5177_v22 }
  0xcb   :  { %1945 = vmatpush1.bf16.msra.mxu0 %v5175_v23 }
  0xcc   :  { %1946 = vmatprep.subr.bf16.mxu0 %v5180_v24 }
  0xcf   :  { %1947 = vmatpush1.bf16.msra.mxu0 %v5178_v25 }
  0xd0   :  { %1948 = vmatprep.subr.bf16.mxu0 %v5183_v26 }
  0xd3   :  { %4471 = vmatmul.mubr.msk.bf16.vlgmr.msra.gmra.mrb[4].mxu1 %vm1277_vm0, %v5611_v29  ;;  %1949 = vmatpush1.bf16.msra.mxu0 %v5181_v27 }
  0xd4   :  { %1950 = vmatprep.subr.bf16.mxu0 %v5186_v28 }
  0xd7   :  { %1951 = vmatpush1.bf16.msra.mxu0 %v5184_v30 }
  0xd8   :  { %1952 = vmatprep.subr.bf16.mxu0 %v5189_v31 }
  0xda   :  { %v6387_v34 = vpop.f32.mrb[0].mxu1 }
  0xdb   :  { %v6389_v35 = vpop.f32.mrb[1].mxu1  ;;  %1953 = vmatpush1.bf16.msra.mxu0 %v5187_v32 }
  0xdc   :  { %v1442_v37 = vpop.f32.mrb[2].mxu1  ;;  %1954 = vmatprep.subr.bf16.mxu0 %v5192_v33 }
  0xdd   :  { %v1443_v39 = vpop.f32.mrb[3].mxu1 }
  0xdf   :  { %1955 = vmatpush1.bf16.msra.mxu0 %v5190_v36 }
  0xe0   :  { %1956 = vmatprep.subr.bf16.mxu0 %v5195_v38 }
  0xe3   :  { %1957 = vmatpush1.bf16.msra.mxu0 %v5193_v40 }
  0xe4   :  { %1958 = vmatprep.subr.bf16.mxu0 %v5198_v41 }
  0xe7   :  { %1959 = vmatpush1.bf16.msra.mxu0 %v5196_v42 }
  0xe8   :  { %1960 = vmatprep.subr.bf16.mxu0 %v5201_v43 }
  0xeb   :  { %1961 = vmatpush1.bf16.msra.mxu0 %v5199_v44 }
  0xec   :  { %1962 = vmatprep.subr.bf16.mxu0 %v5204_v45 }
  0xef   :  { %1963 = vmatpush1.bf16.msra.mxu0 %v5202_v46 }
  0xf0   :  { %1964 = vmatprep.subr.bf16.mxu0 %v5207_v47 }
  0xf3   :  { %1965 = vmatpush1.bf16.msra.mxu0 %v5205_v48 }
  0xf4   :  { %1966 = vmatprep.subr.bf16.mxu0 %v5210_v49 }
  0xf7   :  { %1967 = vmatpush1.bf16.msra.mxu0 %v5208_v50 }
  0xf8   :  { %21 = vsyncpa [#allocation3], 0  ;;  %v5213_v51 = vld [vmem:[%s7385_s4 + $0xe4] ss:$8 sps:$4 sm:$0xff]   ;;  %v5211_v52 = vld [vmem:[%s7385_s4 + $0xe0] ss:$8 sps:$4 sm:$0xff]   ;;  %v253_v4 = vlaneseq }
  0xf9   :  { %1968 = vmatprep.subr.bf16.mxu0 %v5213_v51  ;;  %v5216_v53 = vld [vmem:[%s7385_s4 + $0xf4] ss:$8 sps:$4 sm:$0xff]   ;;  %v5214_v54 = vld [vmem:[%s7385_s4 + $0xf0] ss:$8 sps:$4 sm:$0xff]   ;;  %v5219_v55 = vld [vmem:[%s7385_s4 + $0x104] ss:$8 sps:$4 sm:$0xff]  }
  0xfa   :  { %v5244_v56 = vld [vmem:[%s7387_s6] sm:$0xff]   ;;  %v5245_v57 = vld [vmem:[%s7387_s6 + $0x8] sm:$0xff]   ;;  %v5246_v58 = vld [vmem:[%s7387_s6 + $0x10] sm:$0xff]   ;;  %v6489_v5 = vshrl.u32 %v253_v4, 7  ;;  %vm2141_vm5 = vcmask 1043456   ;;  %s5637_s23 = smov 2  }
  0xfb   :  { %1969 = vmatpush1.bf16.msra.mxu0 %v5211_v52  ;;  %2146 = vmatpush1.bf16.msra.mxu1 %v5244_v56  ;;  %v5247_v59 = vld [vmem:[%s7387_s6 + $0x18] sm:$0xff]   ;;  %v5248_v60 = vld [vmem:[%s7387_s6 + $0x20] sm:$0xff]   ;;  %v5249_v61 = vld [vmem:[%s7387_s6 + $0x28] sm:$0xff]   ;;  %vm2137_vm8 = vcmask 588800   ;;  %vm4247_vm15 = vcmask 125952  }
  0xfc   :  { %1970 = vmatprep.subr.bf16.mxu0 %v5216_v53  ;;  %2147 = vmatprep.subr.bf16.mxu1 %v5636_v2  ;;  %v5250_v62 = vld [vmem:[%s7387_s6 + $0x30] sm:$0xff]   ;;  %v5251_v63 = vld [vmem:[%s7387_s6 + $0x38] sm:$0xff]   ;;  %v5252_v0 = vld [vmem:[%s7387_s6 + $0x40] sm:$0xff]   ;;  %v6492_v6 = vsub.s32 0, %v6489_v5  ;;  %v6500_v8 = vsub.s32 1, %v6489_v5  ;;  %v6515_v27 = vsub.s32 3, %v6489_v5 }
  0xfd   :  { %v5253_v1 = vld [vmem:[%s7387_s6 + $0x48] sm:$0xff]   ;;  %v5254_v3 = vld [vmem:[%s7387_s6 + $0x50] sm:$0xff]   ;;  %v6497_v7 = vld [vmem:[%s7384_s3] sm:$0xf]  ;;  %v6545_v45 = vsub.s32 2, %v6489_v5 }
  0xfe   :  { %v256_v9 = vrot.slane %v6497_v7, %v6492_v6  ;;  %v260_v10 = vrot.slane %v6497_v7, %v6500_v8  ;;  %v5217_v24 = vld [vmem:[%s7385_s4 + $0x100] ss:$8 sps:$4 sm:$0xff]   ;;  %v5222_v26 = vld [vmem:[%s7385_s4 + $0x114] ss:$8 sps:$4 sm:$0xff]   ;;  %v5220_v28 = vld [vmem:[%s7385_s4 + $0x110] ss:$8 sps:$4 sm:$0xff]   ;;  %v268_v29 = vrot.slane %v6497_v7, %v6515_v27 }
  0xff   :  { %1971 = vmatpush1.bf16.msra.mxu0 %v5214_v54  ;;  %2148 = vmatpush1.bf16.msra.mxu1 %v5245_v57  ;;  %v5225_v30 = vld [vmem:[%s7385_s4 + $0x124] ss:$8 sps:$4 sm:$0xff]   ;;  %v5223_v33 = vld [vmem:[%s7385_s4 + $0x120] ss:$8 sps:$4 sm:$0xff]   ;;  %v5228_v36 = vld [vmem:[%s7385_s4 + $0x134] ss:$8 sps:$4 sm:$0xff]   ;;  %v264_v48 = vrot.slane %v6497_v7, %v6545_v45 }
 0x100   :  { %1981 = vmatprep.subr.bf16.mxu0 %v5219_v55  ;;  %2149 = vmatprep.subr.bf16.mxu1 %v5636_v2  ;;  %v5226_v39 = vld [vmem:[%s7385_s4 + $0x130] ss:$8 sps:$4 sm:$0xff]   ;;  %v5231_v41 = vld [vmem:[%s7385_s4 + $0x144] ss:$8 sps:$4 sm:$0xff]   ;;  %v5229_v43 = vld [vmem:[%s7385_s4 + $0x140] ss:$8 sps:$4 sm:$0xff]  }
 0x101   :  { %v5234_v44 = vld [vmem:[%s7385_s4 + $0x154] ss:$8 sps:$4 sm:$0xff]   ;;  %v5232_v46 = vld [vmem:[%s7385_s4 + $0x150] ss:$8 sps:$4 sm:$0xff]   ;;  %v5237_v47 = vld [vmem:[%s7385_s4 + $0x164] ss:$8 sps:$4 sm:$0xff]  }
 0x102   :  { %v5235_v49 = vld [vmem:[%s7385_s4 + $0x160] ss:$8 sps:$4 sm:$0xff]   ;;  %v5240_v50 = vld [vmem:[%s7385_s4 + $0x174] ss:$8 sps:$4 sm:$0xff]   ;;  %v5238_v52 = vld [vmem:[%s7385_s4 + $0x170] ss:$8 sps:$4 sm:$0xff]  }
 0x103   :  { %2150 = vmatpush1.bf16.msra.mxu1 %v5246_v58  ;;  %v5243_v53 = vld [vmem:[%s7385_s4 + $0x184] ss:$8 sps:$4 sm:$0xff]   ;;  %v5241_v55 = vld [vmem:[%s7385_s4 + $0x180] ss:$8 sps:$4 sm:$0xff]   ;;  %v5255_v58 = vld [vmem:[%s7387_s6 + $0x58] sm:$0xff]  }
 0x104   :  { %2151 = vmatprep.subr.bf16.mxu1 %v5636_v2 }
 0x107   :  { %2152 = vmatpush1.bf16.msra.mxu1 %v5247_v59  ;;  %v5256_v59 = vld [vmem:[%s7387_s6 + $0x60] ss:$0 sps:$4 sm:$0xff]  }
 0x108   :  { %2153 = vmatprep.subr.bf16.mxu1 %v5636_v2 }
 0x10b   :  { %2154 = vmatpush1.bf16.msra.mxu1 %v5248_v60  ;;  %v2143_v60 = vsel %vm2141_vm5, %v5256_v59, 0  ;;  %v5302_v59 = vld [vmem:[%s7391_s10 + $0xe8] ss:$16 sps:$4 sm:$0xff]  }
 0x10c   :  { %2155 = vmatprep.subr.bf16.mxu1 %v5636_v2 }
 0x10f   :  { %2156 = vmatpush1.bf16.msra.mxu1 %v5249_v61  ;;  %v2186_v61 = vld [vmem:[%s7382_s1] sm:$0xff] }
 0x110   :  { %2157 = vmatprep.subr.bf16.mxu1 %v5636_v2  ;;  %2188 = vrot.lane.b32.xlu0 %v2186_v61, %s5637_s23  ;;  %v5310_v61 = vld [vmem:[%s7391_s10 + $0x10c] ss:$16 sps:$4 sm:$0xff]  }
 0x113   :  { %2158 = vmatpush1.bf16.msra.mxu1 %v5250_v62  ;;  %v1675_v62 = vld [vmem:[%s7386_s5] sm:$0x3]  ;;  %s5639_s5 = smov 126  }
 0x114   :  { %2159 = vmatprep.subr.bf16.mxu1 %v5636_v2 }
 0x117   :  { %2160 = vmatpush1.bf16.msra.mxu1 %v5251_v63  ;;  %v1680_v63 = vrot.slane %v1675_v62, %v6492_v6 }
 0x118   :  { %2161 = vmatprep.subr.bf16.mxu1 %v5636_v2 }
 0x11b   :  { %2162 = vmatpush1.bf16.msra.mxu1 %v5252_v0  ;;  %v1684_v0 = vrot.slane %v1675_v62, %v6500_v8  ;;  %v5305_v62 = vld [vmem:[%s7391_s10 + $0x100] ss:$16 sps:$4 sm:$0xff]  }
 0x11c   :  { %2163 = vmatprep.subr.bf16.mxu1 %v5636_v2 }
 0x11f   :  { %2164 = vmatpush1.bf16.msra.mxu1 %v5253_v1 }
 0x120   :  { %2165 = vmatprep.subr.bf16.mxu1 %v5636_v2 }
 0x123   :  { %2166 = vmatpush1.bf16.msra.mxu1 %v5254_v3 }
 0x124   :  { %2167 = vmatprep.subr.bf16.mxu1 %v5636_v2 }
 0x127   :  { %2168 = vmatpush1.bf16.msra.mxu1 %v5255_v58  ;;  %v5299_v58 = vld [vmem:[%s7391_s10 + $0xe0] ss:$16 sps:$4 sm:$0xff]  }
 0x128   :  { %2169 = vmatprep.subr.bf16.mxu1 %v5636_v2 }
 0x12b   :  { %2170 = vmatpush1.bf16.msra.mxu1 %v2143_v60  ;;  %v5307_v60 = vld [vmem:[%s7391_s10 + $0x104] ss:$16 sps:$4 sm:$0xff]  }
 0x195   :  { %v1397_v11 = vpop.f32.mrb[0].mxu0 }
 0x196   :  { %v4810_v12 = vadd.f32 %v1397_v11, %v256_v9  ;;  %v1399_v13 = vpop.f32.mrb[1].mxu0 }
 0x197   :  { %v4812_v14 = vadd.f32 %v1399_v13, %v260_v10  ;;  %v1401_v15 = vpop.f32.mrb[2].mxu0 }
 0x198   :  { %v4811_v17 = vadd.f32 %v4810_v12, %v6387_v34  ;;  %v1402_v18 = vpop.f32.mrb[3].mxu0 }
 0x199   :  { %v4813_v19 = vadd.f32 %v4812_v14, %v6389_v35  ;;  %v5638_v18 = vmov 1  }
 0x19a   :  { %vm1609_vm1 = vcmp.gt.f32.partialorder %v4811_v17, 0.0  ;;  %v1613_v20 = vmul.f32 0.2, %v4811_v17  ;;  %4867 = vset.pattern.permute.xlu0 %v5638_v18 }
 0x19b   :  { %v1614_v21 = vmul.f32 0.2, %v4813_v19  ;;  %vm1610_vm2 = vcmp.gt.f32.partialorder %v4813_v19, 0.0 }
 0x19c   :  { %v1617_v16 = vsel %vm1609_vm1, %v4811_v17, %v1613_v20  ;;  %v5257_v20 = vld [vmem:[%s7391_s10] ss:$16 sps:$4 sm:$0xff]  }
 0x19d   :  { %v1618_v22 = vsel %vm1610_vm2, %v4813_v19, %v1614_v21  ;;  %v1621_v25 = vpack.c.bf16 %v1617_v16, %v1617_v16  ;;  %v4523_v19 = vld [vmem:[%s7388_s7] ss:$0 sm:$0xff]  ;;  %v5259_v21 = vld [vmem:[%s7391_s10 + $0x4] ss:$16 sps:$4 sm:$0xff]   ;;  %v5260_v16 = vld [vmem:[%s7391_s10 + $0x8] ss:$16 sps:$4 sm:$0xff]  }
 0x19e   :  { %v1622_v23 = vpack.c.bf16 %v1618_v22, %v1618_v22  ;;  %2609 = vmatprep.subr.bf16.mxu1 %v5259_v21 }
 0x1a0   :  { %1972 = vmatprep.mubr.bf16.mxu0 %v1622_v23  ;;  %v2189_v23 = vpop.permute.xlu0 %2188 }
 0x1a1   :  { %1973 = vmatmul.mubr.bf16.vlgmr.msra.gmra.mrb[4].mxu0 %v1621_v25 }
 0x1a2   :  { %1982 = vmatpush1.bf16.msra.mxu0 %v5217_v24  ;;  %v5262_v24 = vld [vmem:[%s7391_s10 + $0xc] ss:$16 sps:$4 sm:$0xff]  }
 0x1a3   :  { %1983 = vmatprep.subr.bf16.mxu0 %v5222_v26 }
 0x1a6   :  { %v1602_v31 = vpop.f32.mrb[4].mxu1  ;;  %1984 = vmatpush1.bf16.msra.mxu0 %v5220_v28  ;;  %v5265_v28 = vld [vmem:[%s7391_s10 + $0x24] ss:$16 sps:$4 sm:$0xff]  }
 0x1a7   :  { %v1604_v32 = vpop.f32.mrb[5].mxu1  ;;  %1985 = vmatprep.subr.bf16.mxu0 %v5225_v30  ;;  %v4814_v51 = vadd.f32 %v1602_v31, %v264_v48  ;;  %v5263_v30 = vld [vmem:[%s7391_s10 + $0x20] ss:$16 sps:$4 sm:$0xff]   ;;  %v5268_v31 = vld [vmem:[%s7391_s10 + $0x2c] ss:$16 sps:$4 sm:$0xff]  }
 0x1a8   :  { %v4815_v34 = vadd.f32 %v1604_v32, %v268_v29  ;;  %v1606_v35 = vpop.f32.mrb[6].mxu1  ;;  %v5289_v48 = vld [vmem:[%s7391_s10 + $0xa4] ss:$16 sps:$4 sm:$0xff]  }
 0x1a9   :  { %v1607_v37 = vpop.f32.mrb[7].mxu1  ;;  %v1615_v54 = vmul.f32 0.2, %v4814_v51  ;;  %vm1611_vm4 = vcmp.gt.f32.partialorder %v4814_v51, 0.0  ;;  %v5271_v35 = vld [vmem:[%s7391_s10 + $0x44] ss:$16 sps:$4 sm:$0xff]  }
 0x1aa   :  { %vm1612_vm3 = vcmp.gt.f32.partialorder %v4815_v34, 0.0  ;;  %v1616_v38 = vmul.f32 0.2, %v4815_v34  ;;  %1986 = vmatpush1.bf16.msra.mxu0 %v5223_v33  ;;  %v5269_v37 = vld [vmem:[%s7391_s10 + $0x40] ss:$16 sps:$4 sm:$0xff]  }
 0x1ab   :  { %1987 = vmatprep.subr.bf16.mxu0 %v5228_v36  ;;  %v1619_v56 = vsel %vm1611_vm4, %v4814_v51, %v1615_v54  ;;  %v5274_v36 = vld [vmem:[%s7391_s10 + $0x4c] ss:$16 sps:$4 sm:$0xff]   ;;  %v5290_v51 = vld [vmem:[%s7391_s10 + $0xa8] ss:$16 sps:$4 sm:$0xff]   ;;  %v5293_v54 = vld [vmem:[%s7391_s10 + $0xc0] ss:$16 sps:$4 sm:$0xff]  }
 0x1ac   :  { %v1620_v40 = vsel %vm1612_vm3, %v4815_v34, %v1616_v38  ;;  %v1623_v57 = vpack.c.bf16 %v1619_v56, %v1619_v56  ;;  %v5266_v34 = vld [vmem:[%s7391_s10 + $0x28] ss:$16 sps:$4 sm:$0xff]   ;;  %v5301_v56 = vld [vmem:[%s7391_s10 + $0xe4] ss:$16 sps:$4 sm:$0xff]  }
 0x1ad   :  { %v1624_v42 = vpack.c.bf16 %v1620_v40, %v1620_v40  ;;  %v5272_v38 = vld [vmem:[%s7391_s10 + $0x48] ss:$16 sps:$4 sm:$0xff]   ;;  %v5280_v40 = vld [vmem:[%s7391_s10 + $0x6c] ss:$16 sps:$4 sm:$0xff]  }
 0x1ae   :  { %1988 = vmatpush1.bf16.msra.mxu0 %v5226_v39  ;;  %v5277_v39 = vld [vmem:[%s7391_s10 + $0x64] ss:$16 sps:$4 sm:$0xff]  }
 0x1af   :  { %4522 = vmatprep.mubr.msk.bf16.mxu0 %vm1277_vm0, %v1624_v42  ;;  %1989 = vmatprep.subr.bf16.mxu0 %v5231_v41  ;;  %v5275_v41 = vld [vmem:[%s7391_s10 + $0x60] ss:$16 sps:$4 sm:$0xff]   ;;  %v5278_v42 = vld [vmem:[%s7391_s10 + $0x68] ss:$16 sps:$4 sm:$0xff]  }
 0x1b2   :  { %1990 = vmatpush1.bf16.msra.mxu0 %v5229_v43  ;;  %v5283_v43 = vld [vmem:[%s7391_s10 + $0x84] ss:$16 sps:$4 sm:$0xff]  }
 0x1b3   :  { %1991 = vmatprep.subr.bf16.mxu0 %v5234_v44  ;;  %v5286_v44 = vld [vmem:[%s7391_s10 + $0x8c] ss:$16 sps:$4 sm:$0xff]  }
 0x1b6   :  { %1992 = vmatpush1.bf16.msra.mxu0 %v5232_v46  ;;  %v5281_v46 = vld [vmem:[%s7391_s10 + $0x80] ss:$16 sps:$4 sm:$0xff]  }
 0x1b7   :  { %1993 = vmatprep.subr.bf16.mxu0 %v5237_v47  ;;  %v5284_v47 = vld [vmem:[%s7391_s10 + $0x88] ss:$16 sps:$4 sm:$0xff]  }
 0x1ba   :  { %1994 = vmatpush1.bf16.msra.mxu0 %v5235_v49  ;;  %v5292_v49 = vld [vmem:[%s7391_s10 + $0xac] ss:$16 sps:$4 sm:$0xff]  }
 0x1bb   :  { %1995 = vmatprep.subr.bf16.mxu0 %v5240_v50  ;;  %v5287_v50 = vld [vmem:[%s7391_s10 + $0xa0] ss:$16 sps:$4 sm:$0xff]  }
 0x1be   :  { %1996 = vmatpush1.bf16.msra.mxu0 %v5238_v52  ;;  %v5295_v52 = vld [vmem:[%s7391_s10 + $0xc4] ss:$16 sps:$4 sm:$0xff]  }
 0x1bf   :  { %1997 = vmatprep.subr.bf16.mxu0 %v5243_v53  ;;  %v5298_v53 = vld [vmem:[%s7391_s10 + $0xcc] ss:$16 sps:$4 sm:$0xff]  }
 0x1c2   :  { %1998 = vmatpush1.bf16.msra.mxu0 %v5241_v55  ;;  %v5296_v55 = vld [vmem:[%s7391_s10 + $0xc8] ss:$16 sps:$4 sm:$0xff]  }
 0x1c3   :  { %2650 = vmatprep.subr.bf16.mxu0 %v5262_v24 }
 0x1c5   :  { %2014 = vmatmul.mubr.bf16.vlgmr.msra.gmra.mrb[4].mxu0 %v1623_v57  ;;  %v5304_v57 = vld [vmem:[%s7391_s10 + $0xec] ss:$16 sps:$4 sm:$0xff]  }
 0x1c6   :  { %2651 = vmatpush1.bf16.msra.mxu0 %v5260_v16 }
 0x1c7   :  { %2652 = vmatprep.subr.bf16.mxu0 %v5268_v31 }
 0x1ca   :  { %2653 = vmatpush1.bf16.msra.mxu0 %v5266_v34 }
 0x1cb   :  { %2654 = vmatprep.subr.bf16.mxu0 %v5274_v36 }
 0x1ce   :  { %2655 = vmatpush1.bf16.msra.mxu0 %v5272_v38 }
 0x1cf   :  { %2656 = vmatprep.subr.bf16.mxu0 %v5280_v40 }
 0x1d2   :  { %2657 = vmatpush1.bf16.msra.mxu0 %v5278_v42 }
 0x1d3   :  { %2658 = vmatprep.subr.bf16.mxu0 %v5286_v44 }
 0x1d6   :  { %2659 = vmatpush1.bf16.msra.mxu0 %v5284_v47 }
 0x1d7   :  { %2660 = vmatprep.subr.bf16.mxu0 %v5292_v49 }
 0x1da   :  { %2661 = vmatpush1.bf16.msra.mxu0 %v5290_v51 }
 0x1db   :  { %2662 = vmatprep.subr.bf16.mxu0 %v5298_v53 }
 0x1de   :  { %2663 = vmatpush1.bf16.msra.mxu0 %v5296_v55 }
 0x1df   :  { %2664 = vmatprep.subr.bf16.mxu0 %v5304_v57 }
 0x1e2   :  { %2665 = vmatpush1.bf16.msra.mxu0 %v5302_v59  ;;  %v5336_v59 = vld [vmem:[%s7393_s12 + $0x8] ss:$28 sps:$4 sm:$0xff]  }
 0x1e3   :  { %2666 = vmatprep.subr.bf16.mxu0 %v5310_v61  ;;  %v5344_v61 = vld [vmem:[%s7393_s12 + $0x44] ss:$28 sps:$4 sm:$0xff]  }
 0x298   :  { %v2015_v1 = vpop.f32.mrb[4].mxu0 }
 0x299   :  { %v4816_v3 = vadd.f32 %v2015_v1, %v1680_v63  ;;  %v2017_v4 = vpop.f32.mrb[5].mxu0  ;;  %v5308_v63 = vld [vmem:[%s7391_s10 + $0x108] ss:$16 sps:$4 sm:$0xff]  }
 0x29a   :  { %v4817_v7 = vadd.f32 %v2017_v4, %v1684_v0  ;;  %v2019_v9 = vpop.f32.mrb[6].mxu0  ;;  %2667 = vmatpush1.bf16.msra.mxu0 %v5308_v63  ;;  %v5316_v4 = vld [vmem:[%s7391_s10 + $0x12c] ss:$16 sps:$4 sm:$0xff]  }
 0x29b   :  { %vm2022_vm6 = vcmp.gt.f32.partialorder %v4816_v3, 0.0  ;;  %v2024_v10 = vmul.f32 0.2, %v4816_v3  ;;  %v2020_v11 = vpop.f32.mrb[7].mxu0  ;;  %v5314_v9 = vld [vmem:[%s7391_s10 + $0x128] ss:$16 sps:$4 sm:$0xff]   ;;  %2668 = vmatprep.subr.bf16.mxu0 %v5316_v4 }
 0x29c   :  { %vm2023_vm7 = vcmp.gt.f32.partialorder %v4817_v7, 0.0  ;;  %v2025_v12 = vmul.f32 0.2, %v4817_v7  ;;  %v5322_v11 = vld [vmem:[%s7391_s10 + $0x14c] ss:$16 sps:$4 sm:$0xff]  }
 0x29d   :  { %v2026_v13 = vsel %vm2022_vm6, %v4816_v3, %v2024_v10  ;;  %v5313_v3 = vld [vmem:[%s7391_s10 + $0x124] ss:$16 sps:$4 sm:$0xff]   ;;  %v5342_v63 = vld [vmem:[%s7393_s12 + $0x40] ss:$28 sps:$4 sm:$0xff]  }
 0x29e   :  { %v2027_v14 = vsel %vm2023_vm7, %v4817_v7, %v2025_v12  ;;  %v2028_v17 = vpack.c.bf16 %v2026_v13, %v2026_v13  ;;  %v5311_v7 = vld [vmem:[%s7391_s10 + $0x120] ss:$16 sps:$4 sm:$0xff]   ;;  %2669 = vmatpush1.bf16.msra.mxu0 %v5314_v9  ;;  %v5319_v10 = vld [vmem:[%s7391_s10 + $0x144] ss:$16 sps:$4 sm:$0xff]   ;;  %v5320_v13 = vld [vmem:[%s7391_s10 + $0x148] ss:$16 sps:$4 sm:$0xff]  }
 0x29f   :  { %v2029_v15 = vpack.c.bf16 %v2027_v14, %v2027_v14  ;;  %v5317_v12 = vld [vmem:[%s7391_s10 + $0x140] ss:$16 sps:$4 sm:$0xff]   ;;  %2670 = vmatprep.subr.bf16.mxu0 %v5322_v11  ;;  %v5325_v14 = vld [vmem:[%s7391_s10 + $0x164] ss:$16 sps:$4 sm:$0xff]  }
 0x2a0   :  { %v5348_v4 = vld [vmem:[%s7393_s12 + $0x78] ss:$28 sps:$4 sm:$0xff]   ;;  %v5354_v11 = vld [vmem:[%s7393_s12 + $0xb0] ss:$28 sps:$4 sm:$0xff]  }
 0x2a1   :  { %4537 = vmatprep.mubr.msk.bf16.mxu1 %vm2137_vm8, %v2029_v15  ;;  %v5328_v15 = vld [vmem:[%s7391_s10 + $0x16c] ss:$16 sps:$4 sm:$0xff]   ;;  %v5356_v9 = vld [vmem:[%s7393_s12 + $0xb4] ss:$28 sps:$4 sm:$0xff]  }
 0x2a2   :  { %2178 = vmatmul.mubr.bf16.vlgmr.msra.gmra.mrb[8].mxu1 %v2028_v17  ;;  %2671 = vmatpush1.bf16.msra.mxu0 %v5320_v13  ;;  %v5323_v17 = vld [vmem:[%s7391_s10 + $0x160] ss:$16 sps:$4 sm:$0xff]   ;;  %v5362_v13 = vld [vmem:[%s7393_s12 + $0xec] ss:$28 sps:$4 sm:$0xff]  }
 0x2a3   :  { %2610 = vmatpush1.bf16.msra.mxu1 %v5257_v20  ;;  %2672 = vmatprep.subr.bf16.mxu0 %v5328_v15  ;;  %v2321_v20 = vld [vmem:[%s7391_s10 + $0x188] sm:$0xff] }
 0x2a4   :  { %2611 = vmatprep.subr.bf16.mxu1 %v5265_v28  ;;  %v4589_v16 = vcombine.high %v2321_v20, %v2321_v20  ;;  %v5338_v28 = vld [vmem:[%s7393_s12 + $0xc] ss:$28 sps:$4 sm:$0xff]  }
 0x2a5   :  { %v5360_v15 = vld [vmem:[%s7393_s12 + $0xe8] ss:$28 sps:$4 sm:$0xff]  }
 0x2a7   :  { %2612 = vmatpush1.bf16.msra.mxu1 %v5263_v30 }
 0x2a8   :  { %2613 = vmatprep.subr.bf16.mxu1 %v5271_v35 }
 0x2ab   :  { %2614 = vmatpush1.bf16.msra.mxu1 %v5269_v37 }
 0x2ac   :  { %2615 = vmatprep.subr.bf16.mxu1 %v5277_v39  ;;  %v2250_v39 = vld [vmem:[%s7390_s9] sm:$0x3] }
 0x2ad   :  { %v2255_v40 = vrot.slane %v2250_v39, %v6492_v6 }
 0x2af   :  { %2616 = vmatpush1.bf16.msra.mxu1 %v5275_v41  ;;  %v2259_v41 = vrot.slane %v2250_v39, %v6500_v8  ;;  %v5393_v39 = vld [vmem:[%s7393_s12 + $0x230] ss:$28 sps:$4 sm:$0xff]  }
 0x2b0   :  { %2617 = vmatprep.subr.bf16.mxu1 %v5283_v43 }
 0x2b3   :  { %2618 = vmatpush1.bf16.msra.mxu1 %v5281_v46 }
 0x2b4   :  { %2619 = vmatprep.subr.bf16.mxu1 %v5289_v48 }
 0x2b7   :  { %2620 = vmatpush1.bf16.msra.mxu1 %v5287_v50 }
 0x2b8   :  { %2621 = vmatprep.subr.bf16.mxu1 %v5295_v52 }
 0x2bb   :  { %2622 = vmatpush1.bf16.msra.mxu1 %v5293_v54 }
 0x2bc   :  { %2623 = vmatprep.subr.bf16.mxu1 %v5301_v56 }
 0x2bf   :  { %2624 = vmatpush1.bf16.msra.mxu1 %v5299_v58  ;;  %v5333_v58 = vld [vmem:[%s7393_s12] ss:$28 sps:$4 sm:$0xff]  }
 0x2c0   :  { %2625 = vmatprep.subr.bf16.mxu1 %v5307_v60  ;;  %v5341_v60 = vld [vmem:[%s7393_s12 + $0x3c] ss:$28 sps:$4 sm:$0xff]  }
 0x2c3   :  { %2626 = vmatpush1.bf16.msra.mxu1 %v5305_v62  ;;  %v5339_v62 = vld [vmem:[%s7393_s12 + $0x38] ss:$28 sps:$4 sm:$0xff]  }
 0x2c4   :  { %2627 = vmatprep.subr.bf16.mxu1 %v5313_v3  ;;  %v5345_v3 = vld [vmem:[%s7393_s12 + $0x70] ss:$28 sps:$4 sm:$0xff]  }
 0x2c7   :  { %2628 = vmatpush1.bf16.msra.mxu1 %v5311_v7  ;;  %v5353_v7 = vld [vmem:[%s7393_s12 + $0xac] ss:$28 sps:$4 sm:$0xff]  }
 0x2c8   :  { %2629 = vmatprep.subr.bf16.mxu1 %v5319_v10  ;;  %v5351_v10 = vld [vmem:[%s7393_s12 + $0xa8] ss:$28 sps:$4 sm:$0xff]  }
 0x2cb   :  { %2630 = vmatpush1.bf16.msra.mxu1 %v5317_v12  ;;  %v5359_v12 = vld [vmem:[%s7393_s12 + $0xe4] ss:$28 sps:$4 sm:$0xff]  }
 0x2cc   :  { %2631 = vmatprep.subr.bf16.mxu1 %v5325_v14  ;;  %v5357_v14 = vld [vmem:[%s7393_s12 + $0xe0] ss:$28 sps:$4 sm:$0xff]  }
 0x2cf   :  { %2632 = vmatpush1.bf16.msra.mxu1 %v5323_v17  ;;  %v5365_v17 = vld [vmem:[%s7393_s12 + $0x11c] ss:$28 sps:$4 sm:$0xff]  }
 0x375   :  { %v2179_v22 = vpop.f32.mrb[8].mxu1 }
 0x376   :  { %v6603_v25 = vadd.f32 %v4523_v19, %v2179_v22  ;;  %v2181_v26 = vpop.f32.mrb[9].mxu1  ;;  %v2320_v19 = vld [vmem:[%s7391_s10 + $0x180] sm:$0xff] }
 0x377   :  { %v2182_v29 = vpop.f32.mrb[10].mxu1  ;;  %v4587_v21 = vcombine.high %v2320_v19, %v2320_v19  ;;  %v4586_v22 = vcombine.low %v2320_v19, %v2320_v19  ;;  %v5335_v26 = vld [vmem:[%s7393_s12 + $0x4] ss:$28 sps:$4 sm:$0xff]   ;;  %v5363_v19 = vld [vmem:[%s7393_s12 + $0x118] ss:$28 sps:$4 sm:$0xff]  }
 0x378   :  { %2185 = vst [vmem:[%s7396_s15] sm:$0xff] %v6603_v25  ;;  %v2191_v32 = vmul.f32 %v2189_v23, %v6603_v25  ;;  %v2183_v33 = vpop.f32.mrb[11].mxu1  ;;  %v4588_v23 = vcombine.low %v2321_v20, %v2321_v20  ;;  %v2197_v29 = vld [vmem:[%s7389_s8] sm:$0xf] }
 0x379   :  { %4590 = vmatprep.subr.msk.bf16.mxu1 %vm2141_vm5, %v4587_v21  ;;  %v2598_v24 = vsel %vm2141_vm5, %v4586_v22, 0  ;;  %v2207_v30 = vrot.slane %v2197_v29, %v6492_v6  ;;  %v2211_v31 = vrot.slane %v2197_v29, %v6545_v45  ;;  %v2235_v33 = vrot.slane %v2197_v29, %v6515_v27  ;;  %v5366_v20 = vld [vmem:[%s7393_s12 + $0x120] ss:$28 sps:$4 sm:$0xff]   ;;  %v5371_v21 = vld [vmem:[%s7393_s12 + $0x154] ss:$28 sps:$4 sm:$0xff]  }
 0x37a   :  { %2193 = vrot.lane.b32.xlu0 %v2191_v32, %s5639_s5  ;;  %2634 = vmatpush1.bf16.msra.mxu1 %v2598_v24  ;;  %v2231_v32 = vrot.slane %v2197_v29, %v6500_v8  ;;  %v5369_v22 = vld [vmem:[%s7393_s12 + $0x150] ss:$28 sps:$4 sm:$0xff]   ;;  %v5383_v29 = vld [vmem:[%s7393_s12 + $0x1c4] ss:$28 sps:$4 sm:$0xff]  }
 0x37b   :  { %3847 = vmatprep.subr.bf16.mxu1 %v5335_v26  ;;  %v2217_v35 = vrot.slane %v2207_v30, %v6492_v6  ;;  %v2221_v36 = vrot.slane %v2211_v31, %v6492_v6  ;;  %v2245_v38 = vrot.slane %v2235_v33, %v6500_v8  ;;  %v5377_v24 = vld [vmem:[%s7393_s12 + $0x18c] ss:$28 sps:$4 sm:$0xff]   ;;  %v5381_v31 = vld [vmem:[%s7393_s12 + $0x1c0] ss:$28 sps:$4 sm:$0xff]  }
 0x37c   :  { %v2241_v37 = vrot.slane %v2231_v32, %v6500_v8  ;;  %v5375_v26 = vld [vmem:[%s7393_s12 + $0x188] ss:$28 sps:$4 sm:$0xff]   ;;  %v5389_v33 = vld [vmem:[%s7393_s12 + $0x1fc] ss:$28 sps:$4 sm:$0xff]  }
 0x37d   :  { %v5386_v30 = vld [vmem:[%s7393_s12 + $0x1cc] ss:$28 sps:$4 sm:$0xff]  }
 0x37e   :  { %v5384_v32 = vld [vmem:[%s7393_s12 + $0x1c8] ss:$28 sps:$4 sm:$0xff]  }
 0x3ec   :  { %v2194_v0 = vpop.permute.xlu0 %2193 }
 0x3ed   :  { %v2196_v1 = vadd.f32 %v2194_v0, %v6603_v25  ;;  %v2604_v25 = vsel %vm2141_vm5, %v4588_v23, 0  ;;  %v5347_v0 = vld [vmem:[%s7393_s12 + $0x74] ss:$28 sps:$4 sm:$0xff]  }
 0x3ee   :  { %v5372_v23 = vld [vmem:[%s7393_s12 + $0x158] ss:$28 sps:$4 sm:$0xff]  }
 0x3ef   :  { %2200 = vperm.xlu1 %4865, %v2196_v1  }
 0x3f3   :  { %4866 = vset.pattern.permute.xlu1 %v5638_v18  ;;  %v5326_v18 = vld [vmem:[%s7391_s10 + $0x168] ss:$16 sps:$4 sm:$0xff]  }
 0x3f4   :  { %2225 = vperm.xlu1 %4866, %v2196_v1   ;;  %2673 = vmatpush1.bf16.msra.mxu0 %v5326_v18  ;;  %v5350_v1 = vld [vmem:[%s7393_s12 + $0x7c] ss:$28 sps:$4 sm:$0xff]   ;;  %v5368_v18 = vld [vmem:[%s7393_s12 + $0x124] ss:$28 sps:$4 sm:$0xff]  }
 0x3f5   :  { %4592 = vmatprep.subr.msk.bf16.mxu0 %vm2141_vm5, %v4589_v16  ;;  %v5374_v16 = vld [vmem:[%s7393_s12 + $0x15c] ss:$28 sps:$4 sm:$0xff]  }
 0x3f8   :  { %2675 = vmatpush1.bf16.msra.mxu0 %v2604_v25  ;;  %v5380_v25 = vld [vmem:[%s7393_s12 + $0x194] ss:$28 sps:$4 sm:$0xff]  }
 0x3f9   :  { %3929 = vmatprep.subr.bf16.mxu0 %v5338_v28  ;;  %v5378_v28 = vld [vmem:[%s7393_s12 + $0x190] ss:$28 sps:$4 sm:$0xff]  }
 0x46e   :  { %v2201_v34 = vpop.permute.xlu1 %2200 }
 0x46f   :  { %v2222_v43 = vmul.f32 %v2217_v35, %v2201_v34  ;;  %v2223_v44 = vmul.f32 %v2221_v36, %v2201_v34  ;;  %v5392_v34 = vld [vmem:[%s7393_s12 + $0x204] ss:$28 sps:$4 sm:$0xff]   ;;  %v5387_v35 = vld [vmem:[%s7393_s12 + $0x1f8] ss:$28 sps:$4 sm:$0xff]  }
 0x470   :  { %v5390_v36 = vld [vmem:[%s7393_s12 + $0x200] ss:$28 sps:$4 sm:$0xff]  }
 0x473   :  { %v2226_v42 = vpop.permute.xlu1 %2225 }
 0x474   :  { %v2246_v46 = vmul.f32 %v2241_v37, %v2226_v42  ;;  %v2247_v47 = vmul.f32 %v2245_v38, %v2226_v42  ;;  %v5395_v37 = vld [vmem:[%s7393_s12 + $0x234] ss:$28 sps:$4 sm:$0xff]   ;;  %v5398_v38 = vld [vmem:[%s7393_s12 + $0x23c] ss:$28 sps:$4 sm:$0xff]  }
 0x475   :  { %v5404_v42 = vld [vmem:[%s7393_s12 + $0x274] ss:$28 sps:$4 sm:$0xff]  }
 0x476   :  { %v2248_v48 = vadd.f32 %v2246_v46, %v2222_v43  ;;  %v2249_v49 = vadd.f32 %v2247_v47, %v2223_v44  ;;  %v5399_v43 = vld [vmem:[%s7393_s12 + $0x268] ss:$28 sps:$4 sm:$0xff]   ;;  %v5402_v44 = vld [vmem:[%s7393_s12 + $0x270] ss:$28 sps:$4 sm:$0xff]  }
 0x477   :  { %v5407_v46 = vld [vmem:[%s7393_s12 + $0x2a4] ss:$28 sps:$4 sm:$0xff]   ;;  %v5410_v47 = vld [vmem:[%s7393_s12 + $0x2ac] ss:$28 sps:$4 sm:$0xff]  }
 0x478   :  { %v2262_v50 = vadd.f32 %v2255_v40, %v2248_v48  ;;  %v2263_v51 = vadd.f32 %v2259_v41, %v2249_v49  ;;  %v5396_v40 = vld [vmem:[%s7393_s12 + $0x238] ss:$28 sps:$4 sm:$0xff]   ;;  %v5401_v41 = vld [vmem:[%s7393_s12 + $0x26c] ss:$28 sps:$4 sm:$0xff]   ;;  %v5405_v48 = vld [vmem:[%s7393_s12 + $0x2a0] ss:$28 sps:$4 sm:$0xff]  }
 0x479   :  { %v5408_v49 = vld [vmem:[%s7393_s12 + $0x2a8] ss:$28 sps:$4 sm:$0xff]  }
 0x47a   :  { %vm2264_vm9 = vcmp.gt.f32.partialorder %v2262_v50, 0.0  ;;  %vm2265_vm10 = vcmp.gt.f32.partialorder %v2263_v51, 0.0  ;;  %v2266_v52 = vmul.f32 0.2, %v2262_v50  ;;  %v2267_v53 = vmul.f32 0.2, %v2263_v51 }
 0x47c   :  { %v2269_v54 = vsel %vm2265_vm10, %v2263_v51, %v2267_v53  ;;  %v2268_v55 = vsel %vm2264_vm9, %v2262_v50, %v2266_v52  ;;  %v5413_v50 = vld [vmem:[%s7393_s12 + $0x2dc] ss:$28 sps:$4 sm:$0xff]   ;;  %v5416_v51 = vld [vmem:[%s7393_s12 + $0x2e4] ss:$28 sps:$4 sm:$0xff]  }
 0x47d   :  { %v2271_v56 = vpack.c.bf16 %v2269_v54, %v2269_v54  ;;  %v2270_v57 = vpack.c.bf16 %v2268_v55, %v2268_v55  ;;  %v5411_v52 = vld [vmem:[%s7393_s12 + $0x2d8] ss:$28 sps:$4 sm:$0xff]   ;;  %v5414_v53 = vld [vmem:[%s7393_s12 + $0x2e0] ss:$28 sps:$4 sm:$0xff]  }
 0x47e   :  { %v5419_v54 = vld [vmem:[%s7393_s12 + $0x314] ss:$28 sps:$4 sm:$0xff]   ;;  %v5422_v55 = vld [vmem:[%s7393_s12 + $0x31c] ss:$28 sps:$4 sm:$0xff]  }
 0x47f   :  { %4591 = vmatprep.mubr.msk.bf16.mxu1 %vm2137_vm8, %v2271_v56  ;;  %4593 = vmatprep.mubr.msk.bf16.mxu0 %vm2137_vm8, %v2271_v56  ;;  %v5417_v56 = vld [vmem:[%s7393_s12 + $0x310] ss:$28 sps:$4 sm:$0xff]  }
 0x480   :  { %2642 = vmatmul.mubr.bf16.vlgmr.msra.gmra.mrb[12].mxu1 %v2270_v57  ;;  %2683 = vmatmul.mubr.bf16.vlgmr.msra.gmra.mrb[8].mxu0 %v2270_v57  ;;  %v5420_v57 = vld [vmem:[%s7393_s12 + $0x318] ss:$28 sps:$4 sm:$0xff]  }
 0x481   :  { %3848 = vmatpush1.bf16.msra.mxu1 %v5333_v58  ;;  %3930 = vmatpush1.bf16.msra.mxu0 %v5336_v59  ;;  %v5425_v58 = vld [vmem:[%s7393_s12 + $0x34c] ss:$28 sps:$4 sm:$0xff]   ;;  %v5428_v59 = vld [vmem:[%s7393_s12 + $0x354] ss:$28 sps:$4 sm:$0xff]  }
 0x482   :  { %3849 = vmatprep.subr.bf16.mxu1 %v5341_v60  ;;  %3931 = vmatprep.subr.bf16.mxu0 %v5344_v61  ;;  %v5423_v60 = vld [vmem:[%s7393_s12 + $0x348] ss:$28 sps:$4 sm:$0xff]   ;;  %v5426_v61 = vld [vmem:[%s7393_s12 + $0x350] ss:$28 sps:$4 sm:$0xff]  }
 0x485   :  { %3850 = vmatpush1.bf16.msra.mxu1 %v5339_v62  ;;  %3932 = vmatpush1.bf16.msra.mxu0 %v5342_v63  ;;  %v5431_v62 = vld [vmem:[%s7393_s12 + $0x384] ss:$28 sps:$4 sm:$0xff]   ;;  %v5434_v63 = vld [vmem:[%s7393_s12 + $0x38c] ss:$28 sps:$4 sm:$0xff]  }
 0x486   :  { %3851 = vmatprep.subr.bf16.mxu1 %v5347_v0  ;;  %3933 = vmatprep.subr.bf16.mxu0 %v5350_v1  ;;  %v6973_v0 = vld [vmem:[%s7392_s11] sm:$0xf] }
 0x487   :  { %v2327_v1 = vrot.slane %v6973_v0, %v6492_v6 }
 0x489   :  { %3852 = vmatpush1.bf16.msra.mxu1 %v5345_v3  ;;  %3934 = vmatpush1.bf16.msra.mxu0 %v5348_v4  ;;  %v2331_v3 = vrot.slane %v6973_v0, %v6500_v8  ;;  %v2339_v4 = vrot.slane %v6973_v0, %v6515_v27 }
 0x48a   :  { %3853 = vmatprep.subr.bf16.mxu1 %v5353_v7  ;;  %3935 = vmatprep.subr.bf16.mxu0 %v5356_v9 }
 0x48d   :  { %3854 = vmatpush1.bf16.msra.mxu1 %v5351_v10  ;;  %3936 = vmatpush1.bf16.msra.mxu0 %v5354_v11 }
 0x48e   :  { %3855 = vmatprep.subr.bf16.mxu1 %v5359_v12  ;;  %3937 = vmatprep.subr.bf16.mxu0 %v5362_v13 }
 0x491   :  { %3856 = vmatpush1.bf16.msra.mxu1 %v5357_v14  ;;  %3938 = vmatpush1.bf16.msra.mxu0 %v5360_v15 }
 0x492   :  { %3857 = vmatprep.subr.bf16.mxu1 %v5365_v17  ;;  %3939 = vmatprep.subr.bf16.mxu0 %v5368_v18 }
 0x495   :  { %3858 = vmatpush1.bf16.msra.mxu1 %v5363_v19  ;;  %3940 = vmatpush1.bf16.msra.mxu0 %v5366_v20 }
 0x496   :  { %3859 = vmatprep.subr.bf16.mxu1 %v5371_v21  ;;  %3941 = vmatprep.subr.bf16.mxu0 %v5374_v16 }
 0x499   :  { %3860 = vmatpush1.bf16.msra.mxu1 %v5369_v22  ;;  %3942 = vmatpush1.bf16.msra.mxu0 %v5372_v23 }
 0x49a   :  { %3861 = vmatprep.subr.bf16.mxu1 %v5377_v24  ;;  %3943 = vmatprep.subr.bf16.mxu0 %v5380_v25 }
 0x49d   :  { %3862 = vmatpush1.bf16.msra.mxu1 %v5375_v26  ;;  %3944 = vmatpush1.bf16.msra.mxu0 %v5378_v28  ;;  %v5429_v26 = vld [vmem:[%s7393_s12 + $0x380] ss:$28 sps:$4 sm:$0xff]   ;;  %v5432_v28 = vld [vmem:[%s7393_s12 + $0x388] ss:$28 sps:$4 sm:$0xff]  }
 0x49e   :  { %3863 = vmatprep.subr.bf16.mxu1 %v5383_v29  ;;  %3945 = vmatprep.subr.bf16.mxu0 %v5386_v30  ;;  %v5437_v30 = vld [vmem:[%s7393_s12 + $0x3bc] ss:$28 sps:$4 sm:$0xff]  }
 0x4a1   :  { %3864 = vmatpush1.bf16.msra.mxu1 %v5381_v31  ;;  %3946 = vmatpush1.bf16.msra.mxu0 %v5384_v32  ;;  %v5440_v31 = vld [vmem:[%s7393_s12 + $0x3c4] ss:$28 sps:$4 sm:$0xff]  }
 0x4a2   :  { %3865 = vmatprep.subr.bf16.mxu1 %v5389_v33  ;;  %3947 = vmatprep.subr.bf16.mxu0 %v5392_v34  ;;  %v5435_v33 = vld [vmem:[%s7393_s12 + $0x3b8] ss:$28 sps:$4 sm:$0xff]   ;;  %v5438_v34 = vld [vmem:[%s7393_s12 + $0x3c0] ss:$28 sps:$4 sm:$0xff]  }
 0x4a5   :  { %3866 = vmatpush1.bf16.msra.mxu1 %v5387_v35  ;;  %3948 = vmatpush1.bf16.msra.mxu0 %v5390_v36  ;;  %v5443_v35 = vld [vmem:[%s7393_s12 + $0x3f4] ss:$28 sps:$4 sm:$0xff]   ;;  %v5446_v36 = vld [vmem:[%s7393_s12 + $0x3fc] ss:$28 sps:$4 sm:$0xff]  }
 0x4a6   :  { %3867 = vmatprep.subr.bf16.mxu1 %v5395_v37  ;;  %3949 = vmatprep.subr.bf16.mxu0 %v5398_v38  ;;  %v5441_v37 = vld [vmem:[%s7393_s12 + $0x3f0] ss:$28 sps:$4 sm:$0xff]   ;;  %v5444_v38 = vld [vmem:[%s7393_s12 + $0x3f8] ss:$28 sps:$4 sm:$0xff]  }
 0x4a9   :  { %3868 = vmatpush1.bf16.msra.mxu1 %v5393_v39  ;;  %3950 = vmatpush1.bf16.msra.mxu0 %v5396_v40  ;;  %v5449_v39 = vld [vmem:[%s7393_s12 + $0x42c] ss:$28 sps:$4 sm:$0xff]   ;;  %v5452_v40 = vld [vmem:[%s7393_s12 + $0x434] ss:$28 sps:$4 sm:$0xff]  }
 0x4aa   :  { %3869 = vmatprep.subr.bf16.mxu1 %v5401_v41  ;;  %3951 = vmatprep.subr.bf16.mxu0 %v5404_v42  ;;  %v5447_v41 = vld [vmem:[%s7393_s12 + $0x428] ss:$28 sps:$4 sm:$0xff]   ;;  %v5450_v42 = vld [vmem:[%s7393_s12 + $0x430] ss:$28 sps:$4 sm:$0xff]  }
 0x4ad   :  { %3870 = vmatpush1.bf16.msra.mxu1 %v5399_v43  ;;  %3952 = vmatpush1.bf16.msra.mxu0 %v5402_v44  ;;  %v5455_v43 = vld [vmem:[%s7393_s12 + $0x464] ss:$28 sps:$4 sm:$0xff]   ;;  %v5458_v44 = vld [vmem:[%s7393_s12 + $0x46c] ss:$28 sps:$4 sm:$0xff]  }
 0x4ae   :  { %3871 = vmatprep.subr.bf16.mxu1 %v5407_v46  ;;  %3953 = vmatprep.subr.bf16.mxu0 %v5410_v47  ;;  %v5453_v46 = vld [vmem:[%s7393_s12 + $0x460] ss:$28 sps:$4 sm:$0xff]   ;;  %v5456_v47 = vld [vmem:[%s7393_s12 + $0x468] ss:$28 sps:$4 sm:$0xff]  }
 0x4b1   :  { %3872 = vmatpush1.bf16.msra.mxu1 %v5405_v48  ;;  %3954 = vmatpush1.bf16.msra.mxu0 %v5408_v49  ;;  %v5461_v48 = vld [vmem:[%s7393_s12 + $0x49c] ss:$28 sps:$4 sm:$0xff]   ;;  %v5464_v49 = vld [vmem:[%s7393_s12 + $0x4a4] ss:$28 sps:$4 sm:$0xff]  }
 0x4b2   :  { %3873 = vmatprep.subr.bf16.mxu1 %v5413_v50  ;;  %3955 = vmatprep.subr.bf16.mxu0 %v5416_v51  ;;  %v5459_v50 = vld [vmem:[%s7393_s12 + $0x498] ss:$28 sps:$4 sm:$0xff]   ;;  %v5462_v51 = vld [vmem:[%s7393_s12 + $0x4a0] ss:$28 sps:$4 sm:$0xff]  }
 0x4b5   :  { %3874 = vmatpush1.bf16.msra.mxu1 %v5411_v52  ;;  %3956 = vmatpush1.bf16.msra.mxu0 %v5414_v53  ;;  %v5467_v52 = vld [vmem:[%s7393_s12 + $0x4d4] ss:$28 sps:$4 sm:$0xff]   ;;  %v5470_v53 = vld [vmem:[%s7393_s12 + $0x4dc] ss:$28 sps:$4 sm:$0xff]  }
 0x4b6   :  { %3875 = vmatprep.subr.bf16.mxu1 %v5419_v54  ;;  %3957 = vmatprep.subr.bf16.mxu0 %v5422_v55  ;;  %v2335_v54 = vrot.slane %v6973_v0, %v6545_v45  ;;  %v5465_v55 = vld [vmem:[%s7393_s12 + $0x4d0] ss:$28 sps:$4 sm:$0xff]  }
 0x4b9   :  { %3876 = vmatpush1.bf16.msra.mxu1 %v5417_v56  ;;  %3958 = vmatpush1.bf16.msra.mxu0 %v5420_v57  ;;  %v5468_v56 = vld [vmem:[%s7393_s12 + $0x4d8] ss:$28 sps:$4 sm:$0xff]   ;;  %v5473_v57 = vld [vmem:[%s7393_s12 + $0x50c] ss:$28 sps:$4 sm:$0xff]  }
 0x4ba   :  { %3877 = vmatprep.subr.bf16.mxu1 %v5425_v58  ;;  %3959 = vmatprep.subr.bf16.mxu0 %v5428_v59  ;;  %v5476_v58 = vld [vmem:[%s7393_s12 + $0x514] ss:$28 sps:$4 sm:$0xff]  }
 0x4bd   :  { %3878 = vmatpush1.bf16.msra.mxu1 %v5423_v60  ;;  %3960 = vmatpush1.bf16.msra.mxu0 %v5426_v61  ;;  %v5471_v60 = vld [vmem:[%s7393_s12 + $0x508] ss:$28 sps:$4 sm:$0xff]   ;;  %v5474_v61 = vld [vmem:[%s7393_s12 + $0x510] ss:$28 sps:$4 sm:$0xff]  }
 0x4be   :  { %3888 = vmatprep.subr.bf16.mxu1 %v5431_v62  ;;  %3970 = vmatprep.subr.bf16.mxu0 %v5434_v63  ;;  %v5479_v62 = vld [vmem:[%s7393_s12 + $0x544] ss:$28 sps:$4 sm:$0xff]   ;;  %v5482_v63 = vld [vmem:[%s7393_s12 + $0x54c] ss:$28 sps:$4 sm:$0xff]  }
 0x553   :  { %v2643_v7 = vpop.f32.mrb[12].mxu1  ;;  %v6981_v9 = vpop.f32.mrb[8].mxu0 }
 0x554   :  { %v2644_v10 = vadd.f32 %v2643_v7, %v2327_v1  ;;  %v2645_v11 = vpop.f32.mrb[13].mxu1  ;;  %v2686_v12 = vpop.f32.mrb[9].mxu0  ;;  %v2685_v59 = vadd.f32 %v6981_v9, %v2335_v54  ;;  %v5477_v1 = vld [vmem:[%s7393_s12 + $0x540] ss:$28 sps:$4 sm:$0xff]   ;;  %v5486_v7 = vld [vmem:[%s7393_s12 + $0x1d8] ss:$28 sps:$4 sm:$0xff]  }
 0x555   :  { %v2646_v13 = vadd.f32 %v2645_v11, %v2331_v3  ;;  %v2687_v14 = vadd.f32 %v2686_v12, %v2339_v4  ;;  %v2647_v15 = vpop.f32.mrb[14].mxu1  ;;  %v2688_v17 = vpop.f32.mrb[10].mxu0  ;;  %v5480_v3 = vld [vmem:[%s7393_s12 + $0x548] ss:$28 sps:$4 sm:$0xff]   ;;  %v5485_v4 = vld [vmem:[%s7393_s12 + $0x14] ss:$28 sps:$4 sm:$0xff]  }
 0x556   :  { %vm2691_vm11 = vcmp.gt.f32.partialorder %v2644_v10, 0.0  ;;  %v2695_v18 = vmul.f32 0.2, %v2644_v10  ;;  %v2648_v16 = vpop.f32.mrb[15].mxu1  ;;  %v2689_v22 = vpop.f32.mrb[11].mxu0  ;;  %vm2693_vm14 = vcmp.gt.f32.partialorder %v2685_v59, 0.0 }
 0x557   :  { %vm2692_vm12 = vcmp.gt.f32.partialorder %v2646_v13, 0.0  ;;  %v2696_v19 = vmul.f32 0.2, %v2646_v13  ;;  %vm2694_vm13 = vcmp.gt.f32.partialorder %v2687_v14, 0.0  ;;  %v2698_v20 = vmul.f32 0.2, %v2687_v14 }
 0x558   :  { %v2699_v21 = vsel %vm2691_vm11, %v2644_v10, %v2695_v18  ;;  %v2697_v0 = vmul.f32 0.2, %v2685_v59  ;;  %v5483_v10 = vld [vmem:[%s7393_s12 + $0x10] ss:$28 sps:$4 sm:$0xff]   ;;  %v5487_v12 = vld [vmem:[%s7393_s12 + $0x18] ss:$28 sps:$4 sm:$0xff]  }
 0x559   :  { %v2700_v23 = vsel %vm2692_vm12, %v2646_v13, %v2696_v19  ;;  %v2702_v25 = vsel %vm2694_vm13, %v2687_v14, %v2698_v20  ;;  %v6991_v29 = vpack.c.bf16 %v2699_v21, %v2699_v21  ;;  %v5490_v13 = vld [vmem:[%s7393_s12 + $0x4c] ss:$28 sps:$4 sm:$0xff]   ;;  %v5495_v18 = vld [vmem:[%s7393_s12 + $0x84] ss:$28 sps:$4 sm:$0xff]   ;;  %v5500_v16 = vld [vmem:[%s7393_s12 + $0xbc] ss:$28 sps:$4 sm:$0xff]  }
 0x55a   :  { %v6983_v24 = vpack.c.bf16 %v2700_v23, %v2700_v23  ;;  %v7001_v32 = vpack.c.bf16 %v2702_v25, %v2702_v25  ;;  %v2701_v9 = vsel %vm2693_vm14, %v2685_v59, %v2697_v0  ;;  %v5491_v14 = vld [vmem:[%s7393_s12 + $0x210] ss:$28 sps:$4 sm:$0xff]   ;;  %v5488_v15 = vld [vmem:[%s7393_s12 + $0x48] ss:$28 sps:$4 sm:$0xff]   ;;  %v5493_v20 = vld [vmem:[%s7393_s12 + $0x80] ss:$28 sps:$4 sm:$0xff]  }
 0x55b   :  { %v7111_v11 = vpack.c.bf16 %v2701_v9, %v2701_v9  ;;  %v5492_v17 = vld [vmem:[%s7393_s12 + $0x50] ss:$28 sps:$4 sm:$0xff]   ;;  %v5496_v19 = vld [vmem:[%s7393_s12 + $0x248] ss:$28 sps:$4 sm:$0xff]   ;;  %v5501_v22 = vld [vmem:[%s7393_s12 + $0x280] ss:$28 sps:$4 sm:$0xff]  }
 0x55c   :  { %3879 = vmatprep.mubr.bf16.mxu1 %v6983_v24  ;;  %3961 = vmatprep.mubr.bf16.mxu0 %v6983_v24  ;;  %v5497_v21 = vld [vmem:[%s7393_s12 + $0x88] ss:$28 sps:$4 sm:$0xff]   ;;  %v5498_v23 = vld [vmem:[%s7393_s12 + $0xb8] ss:$28 sps:$4 sm:$0xff]   ;;  %v5547_v0 = vld [vmem:[%s7393_s12 + $0x320] ss:$28 sps:$4 sm:$0xff]  }
 0x55d   :  { %3880 = vmatmul.mubr.bf16.vlgmr.msra.gmra.mrb[16].mxu1 %v6991_v29  ;;  %3962 = vmatmul.mubr.bf16.vlgmr.msra.gmra.mrb[12].mxu0 %v6991_v29  ;;  %v5505_v25 = vld [vmem:[%s7393_s12 + $0xf4] ss:$28 sps:$4 sm:$0xff]   ;;  %v5537_v54 = vld [vmem:[%s7393_s12 + $0x27c] ss:$28 sps:$4 sm:$0xff]  }
 0x55e   :  { %3889 = vmatpush1.bf16.msra.mxu1 %v5429_v26  ;;  %3971 = vmatpush1.bf16.msra.mxu0 %v5432_v28  ;;  %v5506_v26 = vld [vmem:[%s7393_s12 + $0x2b8] ss:$28 sps:$4 sm:$0xff]   ;;  %v5503_v28 = vld [vmem:[%s7393_s12 + $0xf0] ss:$28 sps:$4 sm:$0xff]  }
 0x55f   :  { %4769 = vmatprep.mubr.msk.bf16.mxu1 %vm1277_vm0, %v7001_v32  ;;  %4770 = vmatprep.mubr.msk.bf16.mxu0 %vm1277_vm0, %v7001_v32  ;;  %v5542_v59 = vld [vmem:[%s7393_s12 + $0x478] ss:$28 sps:$4 sm:$0xff]  }
 0x560   :  { %3890 = vmatprep.subr.bf16.mxu1 %v5437_v30  ;;  %3972 = vmatprep.subr.bf16.mxu0 %v5440_v31  ;;  %v5507_v30 = vld [vmem:[%s7393_s12 + $0xf8] ss:$28 sps:$4 sm:$0xff]   ;;  %v5510_v31 = vld [vmem:[%s7393_s12 + $0x12c] ss:$28 sps:$4 sm:$0xff]  }
 0x561   :  { %v5557_v9 = vld [vmem:[%s7393_s12 + $0x394] ss:$28 sps:$4 sm:$0xff]  }
 0x562   :  { %3891 = vmatpush1.bf16.msra.mxu1 %v5435_v33  ;;  %3973 = vmatpush1.bf16.msra.mxu0 %v5438_v34  ;;  %v5511_v33 = vld [vmem:[%s7393_s12 + $0x2f0] ss:$28 sps:$4 sm:$0xff]   ;;  %v5508_v34 = vld [vmem:[%s7393_s12 + $0x128] ss:$28 sps:$4 sm:$0xff]  }
 0x563   :  { %3892 = vmatprep.subr.bf16.mxu1 %v5443_v35  ;;  %3974 = vmatprep.subr.bf16.mxu0 %v5446_v36  ;;  %v5512_v35 = vld [vmem:[%s7393_s12 + $0x130] ss:$28 sps:$4 sm:$0xff]   ;;  %v5515_v36 = vld [vmem:[%s7393_s12 + $0x164] ss:$28 sps:$4 sm:$0xff]  }
 0x566   :  { %3893 = vmatpush1.bf16.msra.mxu1 %v5441_v37  ;;  %3975 = vmatpush1.bf16.msra.mxu0 %v5444_v38  ;;  %v5516_v37 = vld [vmem:[%s7393_s12 + $0x328] ss:$28 sps:$4 sm:$0xff]   ;;  %v5513_v38 = vld [vmem:[%s7393_s12 + $0x160] ss:$28 sps:$4 sm:$0xff]  }
 0x567   :  { %3894 = vmatprep.subr.bf16.mxu1 %v5449_v39  ;;  %3976 = vmatprep.subr.bf16.mxu0 %v5452_v40  ;;  %v5517_v39 = vld [vmem:[%s7393_s12 + $0x168] ss:$28 sps:$4 sm:$0xff]   ;;  %v5520_v40 = vld [vmem:[%s7393_s12 + $0x19c] ss:$28 sps:$4 sm:$0xff]  }
 0x56a   :  { %3895 = vmatpush1.bf16.msra.mxu1 %v5447_v41  ;;  %3977 = vmatpush1.bf16.msra.mxu0 %v5450_v42  ;;  %v5521_v41 = vld [vmem:[%s7393_s12 + $0x360] ss:$28 sps:$4 sm:$0xff]   ;;  %v5518_v42 = vld [vmem:[%s7393_s12 + $0x198] ss:$28 sps:$4 sm:$0xff]  }
 0x56b   :  { %3896 = vmatprep.subr.bf16.mxu1 %v5455_v43  ;;  %3978 = vmatprep.subr.bf16.mxu0 %v5458_v44  ;;  %v5522_v43 = vld [vmem:[%s7393_s12 + $0x1a0] ss:$28 sps:$4 sm:$0xff]   ;;  %v5525_v44 = vld [vmem:[%s7393_s12 + $0x1d4] ss:$28 sps:$4 sm:$0xff]  }
 0x56e   :  { %3897 = vmatpush1.bf16.msra.mxu1 %v5453_v46  ;;  %3979 = vmatpush1.bf16.msra.mxu0 %v5456_v47  ;;  %v5523_v46 = vld [vmem:[%s7393_s12 + $0x1d0] ss:$28 sps:$4 sm:$0xff]   ;;  %v5526_v47 = vld [vmem:[%s7393_s12 + $0x398] ss:$28 sps:$4 sm:$0xff]  }
 0x56f   :  { %3898 = vmatprep.subr.bf16.mxu1 %v5461_v48  ;;  %3980 = vmatprep.subr.bf16.mxu0 %v5464_v49  ;;  %v5529_v48 = vld [vmem:[%s7393_s12 + $0x20c] ss:$28 sps:$4 sm:$0xff]  }
 0x570   :  { %v5527_v49 = vld [vmem:[%s7393_s12 + $0x208] ss:$28 sps:$4 sm:$0xff]  }
 0x572   :  { %3899 = vmatpush1.bf16.msra.mxu1 %v5459_v50  ;;  %3981 = vmatpush1.bf16.msra.mxu0 %v5462_v51  ;;  %v5530_v50 = vld [vmem:[%s7393_s12 + $0x3d0] ss:$28 sps:$4 sm:$0xff]   ;;  %v5533_v51 = vld [vmem:[%s7393_s12 + $0x244] ss:$28 sps:$4 sm:$0xff]  }
 0x573   :  { %3900 = vmatprep.subr.bf16.mxu1 %v5467_v52  ;;  %3982 = vmatprep.subr.bf16.mxu0 %v5470_v53  ;;  %v5531_v52 = vld [vmem:[%s7393_s12 + $0x240] ss:$28 sps:$4 sm:$0xff]   ;;  %v5534_v53 = vld [vmem:[%s7393_s12 + $0x408] ss:$28 sps:$4 sm:$0xff]  }
 0x576   :  { %3901 = vmatpush1.bf16.msra.mxu1 %v5465_v55  ;;  %3983 = vmatpush1.bf16.msra.mxu0 %v5468_v56  ;;  %v5535_v55 = vld [vmem:[%s7393_s12 + $0x278] ss:$28 sps:$4 sm:$0xff]   ;;  %v5538_v56 = vld [vmem:[%s7393_s12 + $0x440] ss:$28 sps:$4 sm:$0xff]  }
 0x577   :  { %3902 = vmatprep.subr.bf16.mxu1 %v5473_v57  ;;  %3984 = vmatprep.subr.bf16.mxu0 %v5476_v58  ;;  %v5541_v57 = vld [vmem:[%s7393_s12 + $0x2b4] ss:$28 sps:$4 sm:$0xff]  }
 0x578   :  { %v5539_v58 = vld [vmem:[%s7393_s12 + $0x2b0] ss:$28 sps:$4 sm:$0xff]  }
 0x57a   :  { %3903 = vmatpush1.bf16.msra.mxu1 %v5471_v60  ;;  %3985 = vmatpush1.bf16.msra.mxu0 %v5474_v61  ;;  %v5545_v60 = vld [vmem:[%s7393_s12 + $0x2ec] ss:$28 sps:$4 sm:$0xff]  }
 0x57b   :  { %3904 = vmatprep.subr.bf16.mxu1 %v5479_v62  ;;  %3986 = vmatprep.subr.bf16.mxu0 %v5482_v63  ;;  %v5543_v61 = vld [vmem:[%s7393_s12 + $0x2e8] ss:$28 sps:$4 sm:$0xff]   ;;  %v5546_v62 = vld [vmem:[%s7393_s12 + $0x4b0] ss:$28 sps:$4 sm:$0xff]  }
 0x57c   :  { %v5549_v63 = vld [vmem:[%s7393_s12 + $0x324] ss:$28 sps:$4 sm:$0xff]  }
 0x57e   :  { %3905 = vmatpush1.bf16.msra.mxu1 %v5477_v1  ;;  %3987 = vmatpush1.bf16.msra.mxu0 %v5480_v3  ;;  %v5550_v1 = vld [vmem:[%s7393_s12 + $0x4e8] ss:$28 sps:$4 sm:$0xff]   ;;  %v5553_v3 = vld [vmem:[%s7393_s12 + $0x35c] ss:$28 sps:$4 sm:$0xff]  }
 0x57f   :  { %4011 = vmatprep.subr.bf16.mxu1 %v5485_v4  ;;  %4788 = vmatprep.subr.bf16.mxu0 %v5486_v7  ;;  %v5551_v4 = vld [vmem:[%s7393_s12 + $0x358] ss:$28 sps:$4 sm:$0xff]   ;;  %v5554_v7 = vld [vmem:[%s7393_s12 + $0x520] ss:$28 sps:$4 sm:$0xff]  }
 0x581   :  { %3921 = vmatmul.mubr.bf16.vlgmr.msra.gmra.mrb[16].mxu1 %v7111_v11  ;;  %4003 = vmatmul.mubr.bf16.vlgmr.msra.gmra.mrb[12].mxu0 %v7111_v11 }
 0x582   :  { %4012 = vmatpush1.bf16.msra.mxu1 %v5483_v10  ;;  %4043 = vmatprep.mubr.bf16.mxu1 %v6983_v24  ;;  %v5555_v10 = vld [vmem:[%s7393_s12 + $0x390] ss:$28 sps:$4 sm:$0xff]  }
 0x583   :  { %4789 = vmatpush3.bf16.msra.mxu0 %v5487_v12  ;;  %4125 = vmatprep.mubr.bf16.mxu0 %v6983_v24  ;;  %v5502_v24 = vld [vmem:[%s7393_s12 + $0xc0] ss:$28 sps:$4 sm:$0xff]   ;;  %v5558_v12 = vld [vmem:[%s7393_s12 + $0x558] ss:$28 sps:$4 sm:$0xff]  }
 0x584   :  { %4013 = vmatprep.subr.bf16.mxu1 %v5490_v13  ;;  %4790 = vmatprep.subr.bf16.mxu0 %v5491_v14  ;;  %v5561_v13 = vld [vmem:[%s7393_s12 + $0x3cc] ss:$28 sps:$4 sm:$0xff]  }
 0x585   :  { %v5559_v14 = vld [vmem:[%s7393_s12 + $0x3c8] ss:$28 sps:$4 sm:$0xff]  }
 0x586   :  { %4014 = vmatpush1.bf16.msra.mxu1 %v5488_v15  ;;  %v5564_v15 = vld [vmem:[%s7393_s12 + $0x404] ss:$28 sps:$4 sm:$0xff]  }
 0x587   :  { %4791 = vmatpush3.bf16.msra.mxu0 %v5492_v17  ;;  %4015 = vmatprep.subr.bf16.mxu1 %v5495_v18  ;;  %v5570_v17 = vld [vmem:[%s7393_s12 + $0x474] ss:$28 sps:$4 sm:$0xff]  }
 0x588   :  { %4792 = vmatprep.subr.bf16.mxu0 %v5496_v19  ;;  %v5568_v18 = vld [vmem:[%s7393_s12 + $0x470] ss:$28 sps:$4 sm:$0xff]  }
 0x589   :  { %v5573_v19 = vld [vmem:[%s7393_s12 + $0x4ac] ss:$28 sps:$4 sm:$0xff]  }
 0x58a   :  { %4016 = vmatpush1.bf16.msra.mxu1 %v5493_v20  ;;  %v5571_v20 = vld [vmem:[%s7393_s12 + $0x4a8] ss:$28 sps:$4 sm:$0xff]  }
 0x58b   :  { %4793 = vmatpush3.bf16.msra.mxu0 %v5497_v21  ;;  %4017 = vmatprep.subr.bf16.mxu1 %v5500_v16  ;;  %v5576_v21 = vld [vmem:[%s7393_s12 + $0x4e4] ss:$28 sps:$4 sm:$0xff]  }
 0x58c   :  { %4794 = vmatprep.subr.bf16.mxu0 %v5501_v22  ;;  %v5574_v16 = vld [vmem:[%s7393_s12 + $0x4e0] ss:$28 sps:$4 sm:$0xff]  }
 0x58d   :  { %v5579_v22 = vld [vmem:[%s7393_s12 + $0x51c] ss:$28 sps:$4 sm:$0xff]  }
 0x58e   :  { %4018 = vmatpush1.bf16.msra.mxu1 %v5498_v23  ;;  %v5577_v23 = vld [vmem:[%s7393_s12 + $0x518] ss:$28 sps:$4 sm:$0xff]  }
 0x58f   :  { %4795 = vmatpush3.bf16.msra.mxu0 %v5502_v24  ;;  %4019 = vmatprep.subr.bf16.mxu1 %v5505_v25  ;;  %v5582_v24 = vld [vmem:[%s7393_s12 + $0x554] ss:$28 sps:$4 sm:$0xff]  }
 0x590   :  { %4796 = vmatprep.subr.bf16.mxu0 %v5506_v26  ;;  %v5580_v25 = vld [vmem:[%s7393_s12 + $0x550] ss:$28 sps:$4 sm:$0xff]   ;;  %v7353_v26 = vld [vmem:[%s7394_s13] sm:$0x7f] }
 0x592   :  { %4020 = vmatpush1.bf16.msra.mxu1 %v5503_v28  ;;  %v2912_v28 = vrot.slane %v7353_v26, %v6492_v6 }
 0x593   :  { %4797 = vmatpush3.bf16.msra.mxu0 %v5507_v30  ;;  %4021 = vmatprep.subr.bf16.mxu1 %v5510_v31  ;;  %v2920_v30 = vrot.slane %v7353_v26, %v6545_v45  ;;  %v2916_v31 = vrot.slane %v7353_v26, %v6500_v8 }
 0x594   :  { %4798 = vmatprep.subr.bf16.mxu0 %v5511_v33  ;;  %v2924_v33 = vrot.slane %v7353_v26, %v6515_v27 }
 0x596   :  { %4022 = vmatpush1.bf16.msra.mxu1 %v5508_v34 }
 0x597   :  { %4799 = vmatpush3.bf16.msra.mxu0 %v5512_v35  ;;  %4023 = vmatprep.subr.bf16.mxu1 %v5515_v36 }
 0x598   :  { %4800 = vmatprep.subr.bf16.mxu0 %v5516_v37 }
 0x59a   :  { %4024 = vmatpush1.bf16.msra.mxu1 %v5513_v38 }
 0x59b   :  { %4801 = vmatpush3.bf16.msra.mxu0 %v5517_v39  ;;  %4025 = vmatprep.subr.bf16.mxu1 %v5520_v40 }
 0x59c   :  { %4802 = vmatprep.subr.bf16.mxu0 %v5521_v41 }
 0x59e   :  { %4026 = vmatpush1.bf16.msra.mxu1 %v5518_v42 }
 0x59f   :  { %4803 = vmatpush3.bf16.msra.mxu0 %v5522_v43  ;;  %4027 = vmatprep.subr.bf16.mxu1 %v5525_v44 }
 0x5a0   :  { %4133 = vmatprep.subr.bf16.mxu0 %v5636_v2 }
 0x5a2   :  { %4126 = vmatmul.mubr.bf16.vlgmr.msra.gmra.mrb[16].mxu0 %v6991_v29  ;;  %4028 = vmatpush1.bf16.msra.mxu1 %v5523_v46 }
 0x5a3   :  { %4134 = vmatpush1.bf16.msra.mxu0 %v5526_v47  ;;  %4772 = vmatprep.mubr.msk.bf16.mxu0 %vm1277_vm0, %v7001_v32 }
 0x5a4   :  { %4029 = vmatprep.subr.bf16.mxu1 %v5529_v48  ;;  %4135 = vmatprep.subr.bf16.mxu0 %v5636_v2 }
 0x5a6   :  { %4030 = vmatpush1.bf16.msra.mxu1 %v5527_v49 }
 0x5a7   :  { %4136 = vmatpush1.bf16.msra.mxu0 %v5530_v50  ;;  %4031 = vmatprep.subr.bf16.mxu1 %v5533_v51 }
 0x5a8   :  { %4137 = vmatprep.subr.bf16.mxu0 %v5636_v2 }
 0x5aa   :  { %4032 = vmatpush1.bf16.msra.mxu1 %v5531_v52 }
 0x5ab   :  { %4138 = vmatpush1.bf16.msra.mxu0 %v5534_v53  ;;  %4033 = vmatprep.subr.bf16.mxu1 %v5537_v54 }
 0x5ac   :  { %4139 = vmatprep.subr.bf16.mxu0 %v5636_v2 }
 0x5ae   :  { %4034 = vmatpush1.bf16.msra.mxu1 %v5535_v55 }
 0x5af   :  { %4140 = vmatpush1.bf16.msra.mxu0 %v5538_v56  ;;  %4035 = vmatprep.subr.bf16.mxu1 %v5541_v57 }
 0x5b0   :  { %4141 = vmatprep.subr.bf16.mxu0 %v5636_v2 }
 0x5b2   :  { %4036 = vmatpush1.bf16.msra.mxu1 %v5539_v58 }
 0x5b3   :  { %4142 = vmatpush1.bf16.msra.mxu0 %v5542_v59  ;;  %4037 = vmatprep.subr.bf16.mxu1 %v5545_v60 }
 0x5b4   :  { %4143 = vmatprep.subr.bf16.mxu0 %v5636_v2 }
 0x5b6   :  { %4038 = vmatpush1.bf16.msra.mxu1 %v5543_v61 }
 0x5b7   :  { %4144 = vmatpush1.bf16.msra.mxu0 %v5546_v62  ;;  %4039 = vmatprep.subr.bf16.mxu1 %v5549_v63 }
 0x5b8   :  { %4145 = vmatprep.subr.bf16.mxu0 %v5636_v2 }
 0x5ba   :  { %4040 = vmatpush1.bf16.msra.mxu1 %v5547_v0 }
 0x5bb   :  { %4146 = vmatpush1.bf16.msra.mxu0 %v5550_v1  ;;  %4041 = vmatprep.subr.bf16.mxu1 %v5553_v3  ;;  %v2935_v1 = vsub.s32 6, %v6489_v5 }
 0x5bc   :  { %4147 = vmatprep.subr.bf16.mxu0 %v5636_v2 }
 0x5bd   :  { %v2936_v3 = vrot.slane %v7353_v26, %v2935_v1 }
 0x5be   :  { %4042 = vmatpush1.bf16.msra.mxu1 %v5551_v4 }
 0x5bf   :  { %4148 = vmatpush1.bf16.msra.mxu0 %v5554_v7  ;;  %4052 = vmatprep.subr.bf16.mxu1 %v5557_v9 }
 0x5c0   :  { %4149 = vmatprep.subr.bf16.mxu0 %v5636_v2  ;;  %v5562_v2 = vld [vmem:[%s7393_s12 + $0x400] ss:$28 sps:$4 sm:$0xff]  }
 0x5c1   :  { %4044 = vmatmul.mubr.bf16.vlgmr.msra.gmra.mrb[20].mxu1 %v6991_v29  ;;  %v5567_v29 = vld [vmem:[%s7393_s12 + $0x43c] ss:$28 sps:$4 sm:$0xff]  }
 0x5c2   :  { %4053 = vmatpush1.bf16.msra.mxu1 %v5555_v10  ;;  %4771 = vmatprep.mubr.msk.bf16.mxu1 %vm1277_vm0, %v7001_v32  ;;  %v5565_v32 = vld [vmem:[%s7393_s12 + $0x438] ss:$28 sps:$4 sm:$0xff]   ;;  %s5640_s12 = smov [#allocation2]  }
 0x5c3   :  { %4150 = vmatpush1.bf16.msra.mxu0 %v5558_v12  ;;  %4054 = vmatprep.subr.bf16.mxu1 %v5561_v13  ;;  %s4255_s13 = sshll.u32 %s5640_s12, 4  ;;  %s4256_s13 = int_to_ptr.vmem [resolvable:$true] %s4255_s13 }
 0x5c4   :  { %s5612_s29 = scalar_lea.vmem %s4256_s13, 448  ;;  %p5617_p1 = scmp.lt.s32.totalorder %s4256_s13, %s4256_s13 }
 0x5c5   :  { %p5613_p0 = scmp.ne.s32.totalorder %s4256_s13, %s5612_s29  ;;  %p5618_p2 = scmp.lt.s32.totalorder %s5612_s29, %s5612_s29 }
 0x5c6   :  { %4166 = vmatmul.mubr.bf16.vlgmr.msra.gmra.mrb[20].mxu0 %v7111_v11  ;;  %4055 = vmatpush1.bf16.msra.mxu1 %v5559_v14 }
 0x5c7   :  { %4056 = vmatprep.subr.bf16.mxu1 %v5564_v15  ;;  %p5619_p3 = por %p5618_p2, %p5617_p1 }
 0x5c9   :  { %p5620_p4 = pnand %p5619_p3, %p5613_p0 }
 0x5ca   :  { %4057 = vmatpush1.bf16.msra.mxu1 %v5562_v2 }
 0x5cb   :  { %4058 = vmatprep.subr.bf16.mxu1 %v5567_v29  ;;  %v2927_v29 = vsub.s32 4, %v6489_v5 }
 0x5ce   :  { %4059 = vmatpush1.bf16.msra.mxu1 %v5565_v32  ;;  %v2931_v32 = vsub.s32 5, %v6489_v5 }
 0x5cf   :  { %4060 = vmatprep.subr.bf16.mxu1 %v5570_v17 }
 0x5d2   :  { %4061 = vmatpush1.bf16.msra.mxu1 %v5568_v18  ;;  %v2928_v18 = vrot.slane %v7353_v26, %v2927_v29 }
 0x5d3   :  { %4062 = vmatprep.subr.bf16.mxu1 %v5573_v19 }
 0x5d6   :  { %4063 = vmatpush1.bf16.msra.mxu1 %v5571_v20  ;;  %v2932_v20 = vrot.slane %v7353_v26, %v2931_v32 }
 0x5d7   :  { %4064 = vmatprep.subr.bf16.mxu1 %v5576_v21 }
 0x5da   :  { %4065 = vmatpush1.bf16.msra.mxu1 %v5574_v16 }
 0x5db   :  { %4066 = vmatprep.subr.bf16.mxu1 %v5579_v22 }
 0x5de   :  { %4067 = vmatpush1.bf16.msra.mxu1 %v5577_v23 }
 0x5df   :  { %4068 = vmatprep.subr.bf16.mxu1 %v5582_v24 }
 0x5e2   :  { %4069 = vmatpush1.bf16.msra.mxu1 %v5580_v25 }
 0x5e5   :  { %4085 = vmatmul.mubr.bf16.vlgmr.msra.gmra.mrb[20].mxu1 %v7111_v11 }
 0x654   :  { %v3922_v34 = vpop.f32.mrb[16].mxu1  ;;  %v4004_v35 = vpop.f32.mrb[12].mxu0 }
 0x655   :  { %v4818_v11 = vadd.f32 %v3922_v34, %v2912_v28  ;;  %v4820_v36 = vadd.f32 %v4004_v35, %v2920_v30  ;;  %v3924_v37 = vpop.f32.mrb[17].mxu1  ;;  %v4006_v38 = vpop.f32.mrb[13].mxu0 }
 0x656   :  { %v4819_v39 = vadd.f32 %v3924_v37, %v2916_v31  ;;  %v4821_v40 = vadd.f32 %v4006_v38, %v2924_v33  ;;  %v3926_v41 = vpop.f32.mrb[18].mxu1  ;;  %v4008_v42 = vpop.f32.mrb[14].mxu0 }
 0x657   :  { %v4773_v6 = vmul.f32 -1.442695, %v4818_v11  ;;  %v4775_v43 = vmul.f32 -1.442695, %v4820_v36  ;;  %v3927_v44 = vpop.f32.mrb[19].mxu1  ;;  %v4009_v45 = vpop.f32.mrb[15].mxu0 }
 0x658   :  { %v4774_v46 = vmul.f32 -1.442695, %v4819_v39  ;;  %v4776_v47 = vmul.f32 -1.442695, %v4821_v40 }
 0x659   :  { %5583 = vpow2.f32 %v4773_v6 }
 0x65a   :  { %5585 = vpow2.f32 %v4775_v43 }
 0x65b   :  { %5587 = vpow2.f32 %v4774_v46 }
 0x65c   :  { %5589 = vpow2.f32 %v4776_v47 }
 0x663   :  { %v5584_v8 = vpop.eup %5583 }
 0x664   :  { %v5586_v27 = vpop.eup %5585  ;;  %v4194_v48 = vadd.f32 1.0, %v5584_v8 }
 0x665   :  { %v5588_v49 = vpop.eup %5587  ;;  %v4196_v50 = vadd.f32 1.0, %v5586_v27 }
 0x666   :  { %v5590_v51 = vpop.eup %5589  ;;  %5591 = vrcp.f32 %v4194_v48  ;;  %v4195_v52 = vadd.f32 1.0, %v5588_v49 }
 0x667   :  { %5593 = vrcp.f32 %v4196_v50  ;;  %v4197_v53 = vadd.f32 1.0, %v5590_v51 }
 0x668   :  { %5595 = vrcp.f32 %v4195_v52 }
 0x669   :  { %5597 = vrcp.f32 %v4197_v53 }
 0x670   :  { %v5592_v54 = vpop.eup %5591 }
 0x671   :  { %v5594_v55 = vpop.eup %5593 }
 0x672   :  { %v5596_v56 = vpop.eup %5595 }
 0x673   :  { %v5598_v57 = vpop.eup %5597  ;;  %v4784_v58 = vpack.c.bf16 %v5596_v56, %v5592_v54 }
 0x674   :  { %v4785_v59 = vpack.c.bf16 %v5598_v57, %v5594_v55 }
 0x675   :  { %v4804_v60 = vpop.f32.mrb[16].mxu0  ;;  %4244 = vst [vmem:[#allocation2] sm:$0xff] %v4784_v58 }
 0x676   :  { %v4805_v61 = vpop.f32.mrb[17].mxu0  ;;  %4245 = vst [vmem:[#allocation2 + $0x8] sm:$0xff] %v4785_v59 }
 0x677   :  { %v4806_v62 = vadd.f32 %v4805_v61, %v4804_v60  ;;  %v4807_v63 = vpop.f32.mrb[18].mxu0 }
 0x678   :  { %v4808_v0 = vpop.f32.mrb[19].mxu0 }
 0x679   :  { %v4128_v4 = vadd.f32 %v4806_v62, %v2936_v3 }
 0x699   :  { %v4167_v7 = vpop.f32.mrb[20].mxu0 }
 0x69a   :  { %v4168_v9 = vadd.f32 %v4167_v7, %v4128_v4  ;;  %v4169_v10 = vpop.f32.mrb[21].mxu0 }
 0x69b   :  { %v4170_v12 = vpop.f32.mrb[22].mxu0 }
 0x69c   :  { %v4779_v13 = vmul.f32 -1.442695, %v4168_v9  ;;  %v4171_v14 = vpop.f32.mrb[23].mxu0 }
 0x69e   :  { %5599 = vpow2.f32 %v4779_v13 }
 0x6a8   :  { %v5600_v15 = vpop.eup %5599 }
 0x6a9   :  { %v4200_v2 = vadd.f32 1.0, %v5600_v15 }
 0x6ab   :  { %5601 = vrcp.f32 %v4200_v2 }
 0x6b5   :  { %v5602_v17 = vpop.eup %5601 }
 0x6b6   :  { %v4787_v19 = vpack.c.bf16 %v5602_v17, %v5602_v17 }
 0x6b8   :  { %v4086_v21 = vpop.f32.mrb[20].mxu1  ;;  %4248 = vst.msk [vmem:[#allocation2 + $0x18] sm:$0xf] %vm4247_vm15, %v4787_v19 }
 0x6b9   :  { %v4822_v16 = vadd.f32 %v4086_v21, %v2928_v18  ;;  %v4088_v22 = vpop.f32.mrb[21].mxu1 }
 0x6ba   :  { %v4823_v23 = vadd.f32 %v4088_v22, %v2932_v20  ;;  %v4090_v24 = vpop.f32.mrb[22].mxu1 }
 0x6bb   :  { %v4777_v25 = vmul.f32 -1.442695, %v4822_v16  ;;  %v4091_v28 = vpop.f32.mrb[23].mxu1 }
 0x6bc   :  { %v4778_v30 = vmul.f32 -1.442695, %v4823_v23 }
 0x6bd   :  { %5603 = vpow2.f32 %v4777_v25 }
 0x6be   :  { %5605 = vpow2.f32 %v4778_v30 }
 0x6c7   :  { %v5604_v31 = vpop.eup %5603 }
 0x6c8   :  { %v5606_v5 = vpop.eup %5605  ;;  %v4198_v33 = vadd.f32 1.0, %v5604_v31 }
 0x6c9   :  { %v4199_v34 = vadd.f32 1.0, %v5606_v5 }
 0x6ca   :  { %5607 = vrcp.f32 %v4198_v33 }
 0x6cb   :  { %5609 = vrcp.f32 %v4199_v34 }
 0x6d4   :  { %v5608_v26 = vpop.eup %5607 }
 0x6d5   :  { %v5610_v35 = vpop.eup %5609 }
 0x6d6   :  { %v4786_v11 = vpack.c.bf16 %v5610_v35, %v5608_v26 }
 0x6d8   :  { %4246 = vst [vmem:[#allocation2 + $0x10] sm:$0xff] %v4786_v11 }
 0x6d9   :  { %5623 = shalt.err (!%p5620_p4)
}
 0x6da   :  { %s5624_s10 = scalar_lea.hbm %s7395_s14, 448 }
 0x6db   :  { %p5625_p5 = scmp.ne.s32.totalorder %s7395_s14, %s5624_s10  ;;  %p5628_p6 = scmp.lt.u32.totalorder %s5624_s10, %s7395_s14 }
 0x6dd   :  { %p5630_p7 = pnand %p5628_p6, %p5625_p5 }
 0x6df   :  { %5633 = shalt.err (!%p5630_p7)
}
 0x6e0   :  { %4258 = dma.vmem_to_hbm [thread:$0]  %s4256_s13, 448, %s7395_s14, [#allocation3]  }
 0x6e1   :  { %5634 = dma.done.wait [#allocation3], 448  }
 0x6e2   :  { %5635 = vsyncadd [#allocation3], 4294966848 }
 0x6e3   :  { %4266 = vsyncpa [#allocation3], 1 }

// kernel: _vae_forward.1
= control target key start
LH: loop header
LB: loop body
LE: loop exit
PB: predicated region body
PF: predicated region fallthrough
CT: control target
= control target key end

     0   :  { %v5636_v2 = vmov 0   ;;  %vm1277_vm0 = vcmask 130048   ;;  %s7381_s0 = inlined_call_operand.vmem [shape: bf16[8,784], index: 0, kind: input, shape index: {}]   ;;  %s7382_s1 = inlined_call_operand.vmem [shape: f32[8,2], index: 1, kind: input, shape index: {}]   ;;  %s7383_s2 = inlined_call_operand.vmem [shape: bf16[784,400], index: 2, kind: input, shape index: {}]   ;;  %s7384_s3 = inlined_call_operand.vmem [shape: f32[1,400], index: 3, kind: input, shape index: {}]   ;;  %s7385_s4 = inlined_call_operand.vmem [shape: bf16[400,200], index: 4, kind: input, shape index: {}]   ;;  %s7386_s5 = inlined_call_operand.vmem [shape: f32[1,200], index: 5, kind: input, shape index: {}]   ;;  %s7387_s6 = inlined_call_operand.vmem [shape: bf16[200,128], index: 6, kind: input, shape index: {}]   ;;  %s7388_s7 = inlined_call_operand.vmem [shape: f32[1,128], index: 7, kind: input, shape index: {}]   ;;  %s7389_s8 = inlined_call_operand.vmem [shape: f32[2,200], index: 8, kind: input, shape index: {}]   ;;  %s7390_s9 = inlined_call_operand.vmem [shape: f32[1,200], index: 9, kind: input, shape index: {}]   ;;  %s7391_s10 = inlined_call_operand.vmem [shape: bf16[200,400], index: 10, kind: input, shape index: {}]   ;;  %s7392_s11 = inlined_call_operand.vmem [shape: f32[1,400], index: 11, kind: input, shape index: {}]   ;;  %s7393_s12 = inlined_call_operand.vmem [shape: bf16[400,784], index: 12, kind: input, shape index: {}]   ;;  %s7394_s13 = inlined_call_operand.vmem [shape: f32[1,784], index: 13, kind: input, shape index: {}]   ;;  %s7395_s14 = inlined_call_operand.hbm [shape: bf16[8,784], index: 14, kind: output, shape index: {0}]   ;;  %s7396_s15 = inlined_call_operand.vmem [shape: f32[8,128], index: 15, kind: output, shape index: {1}]  }
   0x1   :  { %v4868_v0 = vld [vmem:[%s7383_s2 + $0x4] ss:$16 sps:$4 sm:$0xff]   ;;  %1436 = vmatprep.mubr.bf16.mxu1 %v5636_v2  ;;  %4865 = vset.pattern.permute.xlu1 %v5636_v2  ;;  %v4872_v3 = vld [vmem:[%s7383_s2] ss:$16 sps:$4 sm:$0xff]   ;;  %v4876_v6 = vld [vmem:[%s7383_s2 + $0x8] ss:$16 sps:$4 sm:$0xff]  }
   0x2   :  { %v4870_v1 = vld [vmem:[%s7383_s2 + $0x604] ss:$16 sps:$4 sm:$0xff]   ;;  %1281 = vmatprep.subr.bf16.mxu0 %v4868_v0  ;;  %v4873_v4 = vld [vmem:[%s7383_s2 + $0x600] ss:$16 sps:$4 sm:$0xff]   ;;  %v4878_v7 = vld [vmem:[%s7383_s2 + $0xc] ss:$16 sps:$4 sm:$0xff]  }
   0x3   :  { %1404 = vmatprep.subr.bf16.mxu1 %v4870_v1  ;;  %v4874_v5 = vld [vmem:[%s7383_s2 + $0x24] ss:$16 sps:$4 sm:$0xff]   ;;  %1282 = vmatpush1.bf16.msra.mxu0 %v4872_v3  ;;  %v4879_v8 = vld [vmem:[%s7383_s2 + $0x20] ss:$16 sps:$4 sm:$0xff]   ;;  %v4880_v9 = vld [vmem:[%s7381_s0 + $0x18] ss:$0 sps:$4 sm:$0xff]  }
   0x4   :  { %1405 = vmatpush1.bf16.msra.mxu1 %v4873_v4  ;;  %1283 = vmatprep.subr.bf16.mxu0 %v4874_v5  ;;  %v4881_v10 = vld [vmem:[%s7383_s2 + $0x44] ss:$16 sps:$4 sm:$0xff]   ;;  %v4883_v11 = vld [vmem:[%s7383_s2 + $0x28] ss:$16 sps:$4 sm:$0xff]   ;;  %v4885_v12 = vld [vmem:[%s7383_s2 + $0x2c] ss:$16 sps:$4 sm:$0xff]  }
   0x5   :  { %1445 = vmatprep.subr.bf16.mxu1 %v4878_v7  ;;  %v4886_v13 = vld [vmem:[%s7383_s2 + $0x40] ss:$16 sps:$4 sm:$0xff]   ;;  %v4887_v14 = vld [vmem:[%s7383_s2 + $0x64] ss:$16 sps:$4 sm:$0xff]   ;;  %v4891_v15 = vld [vmem:[%s7383_s2 + $0x4c] ss:$16 sps:$4 sm:$0xff]  }
   0x6   :  { %v4889_v16 = vld [vmem:[%s7383_s2 + $0x48] ss:$16 sps:$4 sm:$0xff]   ;;  %v4892_v17 = vld [vmem:[%s7383_s2 + $0x60] ss:$16 sps:$4 sm:$0xff]   ;;  %v4893_v18 = vld [vmem:[%s7383_s2 + $0x84] ss:$16 sps:$4 sm:$0xff]  }
   0x7   :  { %4470 = vmatmul.mubr.msk.bf16.vlgmr.msra.gmra.mrb[0].mxu1 %vm1277_vm0, %v4880_v9  ;;  %1284 = vmatpush1.bf16.msra.mxu0 %v4879_v8  ;;  %v4897_v19 = vld [vmem:[%s7383_s2 + $0x6c] ss:$16 sps:$4 sm:$0xff]   ;;  %v4895_v20 = vld [vmem:[%s7383_s2 + $0x68] ss:$16 sps:$4 sm:$0xff]   ;;  %v4898_v21 = vld [vmem:[%s7383_s2 + $0x80] ss:$16 sps:$4 sm:$0xff]  }
   0x8   :  { %1446 = vmatpush1.bf16.msra.mxu1 %v4876_v6  ;;  %1285 = vmatprep.subr.bf16.mxu0 %v4881_v10  ;;  %v4899_v22 = vld [vmem:[%s7383_s2 + $0xa4] ss:$16 sps:$4 sm:$0xff]   ;;  %v4903_v23 = vld [vmem:[%s7383_s2 + $0x8c] ss:$16 sps:$4 sm:$0xff]   ;;  %v4901_v24 = vld [vmem:[%s7383_s2 + $0x88] ss:$16 sps:$4 sm:$0xff]  }
   0x9   :  { %1447 = vmatprep.subr.bf16.mxu1 %v4885_v12  ;;  %v4904_v25 = vld [vmem:[%s7383_s2 + $0xa0] ss:$16 sps:$4 sm:$0xff]   ;;  %v4905_v26 = vld [vmem:[%s7383_s2 + $0xc4] ss:$16 sps:$4 sm:$0xff]   ;;  %v4909_v27 = vld [vmem:[%s7383_s2 + $0xac] ss:$16 sps:$4 sm:$0xff]  }
   0xa   :  { %v4907_v28 = vld [vmem:[%s7383_s2 + $0xa8] ss:$16 sps:$4 sm:$0xff]   ;;  %v4910_v29 = vld [vmem:[%s7383_s2 + $0xc0] ss:$16 sps:$4 sm:$0xff]   ;;  %v4911_v30 = vld [vmem:[%s7383_s2 + $0xe4] ss:$16 sps:$4 sm:$0xff]  }
   0xb   :  { %1286 = vmatpush1.bf16.msra.mxu0 %v4886_v13  ;;  %v4915_v31 = vld [vmem:[%s7383_s2 + $0xcc] ss:$16 sps:$4 sm:$0xff]   ;;  %v4913_v32 = vld [vmem:[%s7383_s2 + $0xc8] ss:$16 sps:$4 sm:$0xff]   ;;  %v4916_v33 = vld [vmem:[%s7383_s2 + $0xe0] ss:$16 sps:$4 sm:$0xff]  }
   0xc   :  { %1448 = vmatpush1.bf16.msra.mxu1 %v4883_v11  ;;  %1287 = vmatprep.subr.bf16.mxu0 %v4887_v14  ;;  %v4917_v34 = vld [vmem:[%s7383_s2 + $0x104] ss:$16 sps:$4 sm:$0xff]   ;;  %v4921_v35 = vld [vmem:[%s7383_s2 + $0xec] ss:$16 sps:$4 sm:$0xff]   ;;  %v4919_v36 = vld [vmem:[%s7383_s2 + $0xe8] ss:$16 sps:$4 sm:$0xff]  }
   0xd   :  { %1449 = vmatprep.subr.bf16.mxu1 %v4891_v15  ;;  %v4922_v37 = vld [vmem:[%s7383_s2 + $0x100] ss:$16 sps:$4 sm:$0xff]   ;;  %v4923_v38 = vld [vmem:[%s7383_s2 + $0x124] ss:$16 sps:$4 sm:$0xff]   ;;  %v4927_v39 = vld [vmem:[%s7383_s2 + $0x10c] ss:$16 sps:$4 sm:$0xff]  }
   0xe   :  { %v4925_v40 = vld [vmem:[%s7383_s2 + $0x108] ss:$16 sps:$4 sm:$0xff]   ;;  %v4928_v41 = vld [vmem:[%s7383_s2 + $0x120] ss:$16 sps:$4 sm:$0xff]   ;;  %v4929_v42 = vld [vmem:[%s7383_s2 + $0x144] ss:$16 sps:$4 sm:$0xff]  }
   0xf   :  { %1288 = vmatpush1.bf16.msra.mxu0 %v4892_v17  ;;  %v4933_v43 = vld [vmem:[%s7383_s2 + $0x12c] ss:$16 sps:$4 sm:$0xff]   ;;  %v4931_v44 = vld [vmem:[%s7383_s2 + $0x128] ss:$16 sps:$4 sm:$0xff]   ;;  %v4934_v45 = vld [vmem:[%s7383_s2 + $0x140] ss:$16 sps:$4 sm:$0xff]  }
  0x10   :  { %1450 = vmatpush1.bf16.msra.mxu1 %v4889_v16  ;;  %1289 = vmatprep.subr.bf16.mxu0 %v4893_v18  ;;  %v4935_v46 = vld [vmem:[%s7383_s2 + $0x164] ss:$16 sps:$4 sm:$0xff]   ;;  %v4939_v47 = vld [vmem:[%s7383_s2 + $0x14c] ss:$16 sps:$4 sm:$0xff]   ;;  %v4937_v48 = vld [vmem:[%s7383_s2 + $0x148] ss:$16 sps:$4 sm:$0xff]  }
  0x11   :  { %1451 = vmatprep.subr.bf16.mxu1 %v4897_v19  ;;  %v51_v49 = vld [vmem:[%s7381_s0] sm:$0xff]  ;;  %v4945_v53 = vld [vmem:[%s7383_s2 + $0x16c] ss:$16 sps:$4 sm:$0xff]   ;;  %v4943_v54 = vld [vmem:[%s7383_s2 + $0x168] ss:$16 sps:$4 sm:$0xff]  }
  0x12   :  { %v4940_v50 = vld [vmem:[%s7383_s2 + $0x160] ss:$16 sps:$4 sm:$0xff]   ;;  %v4941_v51 = vld [vmem:[%s7383_s2 + $0x184] ss:$16 sps:$4 sm:$0xff]   ;;  %v4268_v52 = vcombine.high %v51_v49, %v51_v49  ;;  %v4951_v57 = vld [vmem:[%s7383_s2 + $0x18c] ss:$16 sps:$4 sm:$0xff]   ;;  %v4267_v7 = vcombine.low %v51_v49, %v51_v49 }
  0x13   :  { %1290 = vmatpush1.bf16.msra.mxu0 %v4898_v21  ;;  %v4946_v55 = vld [vmem:[%s7383_s2 + $0x180] ss:$16 sps:$4 sm:$0xff]   ;;  %v4947_v56 = vld [vmem:[%s7383_s2 + $0x1a4] ss:$16 sps:$4 sm:$0xff]   ;;  %v4949_v58 = vld [vmem:[%s7383_s2 + $0x188] ss:$16 sps:$4 sm:$0xff]  }
  0x14   :  { %1452 = vmatpush1.bf16.msra.mxu1 %v4895_v20  ;;  %1291 = vmatprep.subr.bf16.mxu0 %v4899_v22  ;;  %v4952_v59 = vld [vmem:[%s7383_s2 + $0x1a0] ss:$16 sps:$4 sm:$0xff]   ;;  %v4953_v60 = vld [vmem:[%s7383_s2 + $0x1c4] ss:$16 sps:$4 sm:$0xff]   ;;  %v4957_v61 = vld [vmem:[%s7383_s2 + $0x1ac] ss:$16 sps:$4 sm:$0xff]  }
  0x15   :  { %1453 = vmatprep.subr.bf16.mxu1 %v4903_v23  ;;  %1313 = vmatprep.mubr.bf16.mxu0 %v4268_v52  ;;  %v4955_v62 = vld [vmem:[%s7383_s2 + $0x1a8] ss:$16 sps:$4 sm:$0xff]   ;;  %v4958_v63 = vld [vmem:[%s7383_s2 + $0x1c0] ss:$16 sps:$4 sm:$0xff]   ;;  %v4959_v0 = vld [vmem:[%s7383_s2 + $0x1e4] ss:$16 sps:$4 sm:$0xff]  }
  0x16   :  { %1477 = vmatprep.mubr.bf16.mxu1 %v4268_v52  ;;  %v4963_v1 = vld [vmem:[%s7383_s2 + $0x1cc] ss:$16 sps:$4 sm:$0xff]   ;;  %v4961_v3 = vld [vmem:[%s7383_s2 + $0x1c8] ss:$16 sps:$4 sm:$0xff]   ;;  %v4964_v4 = vld [vmem:[%s7383_s2 + $0x1e0] ss:$16 sps:$4 sm:$0xff]  }
  0x17   :  { %1292 = vmatpush1.bf16.msra.mxu0 %v4904_v25  ;;  %v4969_v5 = vld [vmem:[%s7383_s2 + $0x204] ss:$16 sps:$4 sm:$0xff]   ;;  %v4972_v6 = vld [vmem:[%s7383_s2 + $0x1ec] ss:$16 sps:$4 sm:$0xff]   ;;  %v4967_v8 = vld [vmem:[%s7383_s2 + $0x200] ss:$16 sps:$4 sm:$0xff]  }
  0x18   :  { %1454 = vmatpush1.bf16.msra.mxu1 %v4901_v24  ;;  %1293 = vmatprep.subr.bf16.mxu0 %v4905_v26  ;;  %v4970_v9 = vld [vmem:[%s7383_s2 + $0x1e8] ss:$16 sps:$4 sm:$0xff]   ;;  %v4975_v10 = vld [vmem:[%s7383_s2 + $0x224] ss:$16 sps:$4 sm:$0xff]   ;;  %v4978_v11 = vld [vmem:[%s7383_s2 + $0x20c] ss:$16 sps:$4 sm:$0xff]  }
  0x19   :  { %1455 = vmatprep.subr.bf16.mxu1 %v4909_v27  ;;  %v4973_v12 = vld [vmem:[%s7383_s2 + $0x220] ss:$16 sps:$4 sm:$0xff]   ;;  %v4976_v13 = vld [vmem:[%s7383_s2 + $0x208] ss:$16 sps:$4 sm:$0xff]   ;;  %v4981_v14 = vld [vmem:[%s7383_s2 + $0x244] ss:$16 sps:$4 sm:$0xff]  }
  0x1a   :  { %v4984_v15 = vld [vmem:[%s7383_s2 + $0x22c] ss:$16 sps:$4 sm:$0xff]   ;;  %v4979_v16 = vld [vmem:[%s7383_s2 + $0x240] ss:$16 sps:$4 sm:$0xff]   ;;  %v4982_v17 = vld [vmem:[%s7383_s2 + $0x228] ss:$16 sps:$4 sm:$0xff]  }
  0x1b   :  { %1294 = vmatpush1.bf16.msra.mxu0 %v4910_v29  ;;  %v4987_v18 = vld [vmem:[%s7383_s2 + $0x264] ss:$16 sps:$4 sm:$0xff]   ;;  %v4990_v19 = vld [vmem:[%s7383_s2 + $0x24c] ss:$16 sps:$4 sm:$0xff]   ;;  %v4985_v20 = vld [vmem:[%s7383_s2 + $0x260] ss:$16 sps:$4 sm:$0xff]  }
  0x1c   :  { %1456 = vmatpush1.bf16.msra.mxu1 %v4907_v28  ;;  %1295 = vmatprep.subr.bf16.mxu0 %v4911_v30  ;;  %v4988_v21 = vld [vmem:[%s7383_s2 + $0x248] ss:$16 sps:$4 sm:$0xff]   ;;  %v4993_v22 = vld [vmem:[%s7383_s2 + $0x284] ss:$16 sps:$4 sm:$0xff]   ;;  %v4996_v23 = vld [vmem:[%s7383_s2 + $0x26c] ss:$16 sps:$4 sm:$0xff]  }
  0x1d   :  { %1457 = vmatprep.subr.bf16.mxu1 %v4915_v31  ;;  %v4991_v24 = vld [vmem:[%s7383_s2 + $0x280] ss:$16 sps:$4 sm:$0xff]   ;;  %v4994_v25 = vld [vmem:[%s7383_s2 + $0x268] ss:$16 sps:$4 sm:$0xff]   ;;  %v4999_v26 = vld [vmem:[%s7383_s2 + $0x2a4] ss:$16 sps:$4 sm:$0xff]  }
  0x1e   :  { %v5002_v27 = vld [vmem:[%s7383_s2 + $0x28c] ss:$16 sps:$4 sm:$0xff]   ;;  %v4997_v28 = vld [vmem:[%s7383_s2 + $0x2a0] ss:$16 sps:$4 sm:$0xff]   ;;  %v5000_v29 = vld [vmem:[%s7383_s2 + $0x288] ss:$16 sps:$4 sm:$0xff]  }
  0x1f   :  { %1296 = vmatpush1.bf16.msra.mxu0 %v4916_v33  ;;  %v5005_v30 = vld [vmem:[%s7383_s2 + $0x2c4] ss:$16 sps:$4 sm:$0xff]   ;;  %v5008_v31 = vld [vmem:[%s7383_s2 + $0x2ac] ss:$16 sps:$4 sm:$0xff]   ;;  %v5003_v33 = vld [vmem:[%s7383_s2 + $0x2c0] ss:$16 sps:$4 sm:$0xff]  }
  0x20   :  { %1458 = vmatpush1.bf16.msra.mxu1 %v4913_v32  ;;  %1297 = vmatprep.subr.bf16.mxu0 %v4917_v34  ;;  %v6003_v32 = vld [vmem:[%s7381_s0 + $0x8] sm:$0xff]  ;;  %v5035_v52 = vld [vmem:[%s7383_s2 + $0x364] ss:$16 sps:$4 sm:$0xff]  }
  0x21   :  { %1459 = vmatprep.subr.bf16.mxu1 %v4921_v35  ;;  %v5006_v34 = vld [vmem:[%s7383_s2 + $0x2a8] ss:$16 sps:$4 sm:$0xff]   ;;  %v4270_v35 = vcombine.high %v6003_v32, %v6003_v32  ;;  %v5032_v49 = vld [vmem:[%s7383_s2 + $0x32c] ss:$16 sps:$4 sm:$0xff]  }
  0x23   :  { %1298 = vmatpush1.bf16.msra.mxu0 %v4922_v37  ;;  %v5014_v37 = vld [vmem:[%s7383_s2 + $0x2cc] ss:$16 sps:$4 sm:$0xff]  }
  0x24   :  { %1460 = vmatpush1.bf16.msra.mxu1 %v4919_v36  ;;  %1299 = vmatprep.subr.bf16.mxu0 %v4923_v38  ;;  %v5011_v36 = vld [vmem:[%s7383_s2 + $0x2e4] ss:$16 sps:$4 sm:$0xff]   ;;  %v5009_v38 = vld [vmem:[%s7383_s2 + $0x2e0] ss:$16 sps:$4 sm:$0xff]  }
  0x25   :  { %1461 = vmatprep.subr.bf16.mxu1 %v4927_v39  ;;  %v5012_v39 = vld [vmem:[%s7383_s2 + $0x2c8] ss:$16 sps:$4 sm:$0xff]  }
  0x27   :  { %1300 = vmatpush1.bf16.msra.mxu0 %v4928_v41  ;;  %v5020_v41 = vld [vmem:[%s7383_s2 + $0x2ec] ss:$16 sps:$4 sm:$0xff]  }
  0x28   :  { %1462 = vmatpush1.bf16.msra.mxu1 %v4925_v40  ;;  %1301 = vmatprep.subr.bf16.mxu0 %v4929_v42  ;;  %v5017_v40 = vld [vmem:[%s7383_s2 + $0x304] ss:$16 sps:$4 sm:$0xff]   ;;  %v5015_v42 = vld [vmem:[%s7383_s2 + $0x300] ss:$16 sps:$4 sm:$0xff]  }
  0x29   :  { %1463 = vmatprep.subr.bf16.mxu1 %v4933_v43  ;;  %v5018_v43 = vld [vmem:[%s7383_s2 + $0x2e8] ss:$16 sps:$4 sm:$0xff]  }
  0x2b   :  { %1302 = vmatpush1.bf16.msra.mxu0 %v4934_v45  ;;  %v5026_v45 = vld [vmem:[%s7383_s2 + $0x30c] ss:$16 sps:$4 sm:$0xff]  }
  0x2c   :  { %1464 = vmatpush1.bf16.msra.mxu1 %v4931_v44  ;;  %1303 = vmatprep.subr.bf16.mxu0 %v4935_v46  ;;  %v5023_v44 = vld [vmem:[%s7383_s2 + $0x324] ss:$16 sps:$4 sm:$0xff]   ;;  %v5021_v46 = vld [vmem:[%s7383_s2 + $0x320] ss:$16 sps:$4 sm:$0xff]  }
  0x2d   :  { %1465 = vmatprep.subr.bf16.mxu1 %v4939_v47  ;;  %v5024_v47 = vld [vmem:[%s7383_s2 + $0x308] ss:$16 sps:$4 sm:$0xff]  }
  0x2f   :  { %1304 = vmatpush1.bf16.msra.mxu0 %v4940_v50  ;;  %v5027_v50 = vld [vmem:[%s7383_s2 + $0x340] ss:$16 sps:$4 sm:$0xff]  }
  0x30   :  { %1466 = vmatpush1.bf16.msra.mxu1 %v4937_v48  ;;  %1305 = vmatprep.subr.bf16.mxu0 %v4941_v51  ;;  %v5029_v48 = vld [vmem:[%s7383_s2 + $0x344] ss:$16 sps:$4 sm:$0xff]   ;;  %v5030_v51 = vld [vmem:[%s7383_s2 + $0x328] ss:$16 sps:$4 sm:$0xff]  }
  0x31   :  { %1467 = vmatprep.subr.bf16.mxu1 %v4945_v53  ;;  %v5038_v53 = vld [vmem:[%s7383_s2 + $0x34c] ss:$16 sps:$4 sm:$0xff]  }
  0x33   :  { %1306 = vmatpush1.bf16.msra.mxu0 %v4946_v55  ;;  %v5036_v55 = vld [vmem:[%s7383_s2 + $0x348] ss:$16 sps:$4 sm:$0xff]  }
  0x34   :  { %1468 = vmatpush1.bf16.msra.mxu1 %v4943_v54  ;;  %1307 = vmatprep.subr.bf16.mxu0 %v4947_v56  ;;  %v5033_v54 = vld [vmem:[%s7383_s2 + $0x360] ss:$16 sps:$4 sm:$0xff]   ;;  %v5041_v56 = vld [vmem:[%s7383_s2 + $0x384] ss:$16 sps:$4 sm:$0xff]  }
  0x35   :  { %1469 = vmatprep.subr.bf16.mxu1 %v4951_v57  ;;  %v5044_v57 = vld [vmem:[%s7383_s2 + $0x36c] ss:$16 sps:$4 sm:$0xff]  }
  0x37   :  { %1308 = vmatpush1.bf16.msra.mxu0 %v4952_v59  ;;  %v5042_v59 = vld [vmem:[%s7383_s2 + $0x368] ss:$16 sps:$4 sm:$0xff]  }
  0x38   :  { %1470 = vmatpush1.bf16.msra.mxu1 %v4949_v58  ;;  %1309 = vmatprep.subr.bf16.mxu0 %v4953_v60  ;;  %v5039_v58 = vld [vmem:[%s7383_s2 + $0x380] ss:$16 sps:$4 sm:$0xff]   ;;  %v5047_v60 = vld [vmem:[%s7383_s2 + $0x3a4] ss:$16 sps:$4 sm:$0xff]  }
  0x39   :  { %1471 = vmatprep.subr.bf16.mxu1 %v4957_v61  ;;  %v5050_v61 = vld [vmem:[%s7383_s2 + $0x38c] ss:$16 sps:$4 sm:$0xff]  }
  0x3b   :  { %1310 = vmatpush1.bf16.msra.mxu0 %v4958_v63  ;;  %v5048_v63 = vld [vmem:[%s7383_s2 + $0x388] ss:$16 sps:$4 sm:$0xff]  }
  0x3c   :  { %1472 = vmatpush1.bf16.msra.mxu1 %v4955_v62  ;;  %1311 = vmatprep.subr.bf16.mxu0 %v4959_v0  ;;  %v5045_v62 = vld [vmem:[%s7383_s2 + $0x3a0] ss:$16 sps:$4 sm:$0xff]   ;;  %v5053_v0 = vld [vmem:[%s7383_s2 + $0x3c4] ss:$16 sps:$4 sm:$0xff]  }
  0x3d   :  { %1473 = vmatprep.subr.bf16.mxu1 %v4963_v1  ;;  %v5056_v1 = vld [vmem:[%s7383_s2 + $0x3ac] ss:$16 sps:$4 sm:$0xff]  }
  0x3f   :  { %1312 = vmatpush1.bf16.msra.mxu0 %v4964_v4  ;;  %v5054_v4 = vld [vmem:[%s7383_s2 + $0x3a8] ss:$16 sps:$4 sm:$0xff]  }
  0x40   :  { %1474 = vmatpush1.bf16.msra.mxu1 %v4961_v3  ;;  %1322 = vmatprep.subr.bf16.mxu0 %v4969_v5  ;;  %v5051_v3 = vld [vmem:[%s7383_s2 + $0x3c0] ss:$16 sps:$4 sm:$0xff]   ;;  %v5059_v5 = vld [vmem:[%s7383_s2 + $0x3e4] ss:$16 sps:$4 sm:$0xff]  }
  0x41   :  { %1475 = vmatprep.subr.bf16.mxu1 %v4972_v6  ;;  %v5062_v6 = vld [vmem:[%s7383_s2 + $0x3cc] ss:$16 sps:$4 sm:$0xff]  }
  0x42   :  { %1314 = vmatmul.mubr.bf16.vlgmr.msra.gmra.mrb[0].mxu0 %v4267_v7 }
  0x43   :  { %1323 = vmatpush1.bf16.msra.mxu0 %v4967_v8  ;;  %1354 = vmatprep.mubr.bf16.mxu0 %v4270_v35  ;;  %v5060_v8 = vld [vmem:[%s7383_s2 + $0x3c8] ss:$16 sps:$4 sm:$0xff]  }
  0x44   :  { %1476 = vmatpush1.bf16.msra.mxu1 %v4970_v9  ;;  %1324 = vmatprep.subr.bf16.mxu0 %v4975_v10  ;;  %v5067_v9 = vld [vmem:[%s7383_s2 + $0x404] ss:$16 sps:$4 sm:$0xff]   ;;  %v5070_v10 = vld [vmem:[%s7383_s2 + $0x3ec] ss:$16 sps:$4 sm:$0xff]  }
  0x45   :  { %1486 = vmatprep.subr.bf16.mxu1 %v4978_v11  ;;  %v4269_v11 = vcombine.low %v6003_v32, %v6003_v32  ;;  %v5097_v32 = vld [vmem:[%s7383_s2 + $0x4a4] ss:$16 sps:$4 sm:$0xff]  }
  0x47   :  { %1478 = vmatmul.mubr.bf16.vlgmr.msra.gmra.mrb[4].mxu1 %v4267_v7  ;;  %1325 = vmatpush1.bf16.msra.mxu0 %v4973_v12  ;;  %v5057_v7 = vld [vmem:[%s7383_s2 + $0x3e0] ss:$16 sps:$4 sm:$0xff]  }
  0x48   :  { %1487 = vmatpush1.bf16.msra.mxu1 %v4976_v13  ;;  %1326 = vmatprep.subr.bf16.mxu0 %v4981_v14  ;;  %v5065_v12 = vld [vmem:[%s7383_s2 + $0x400] ss:$16 sps:$4 sm:$0xff]   ;;  %v5068_v13 = vld [vmem:[%s7383_s2 + $0x3e8] ss:$16 sps:$4 sm:$0xff]   ;;  %v5073_v14 = vld [vmem:[%s7383_s2 + $0x424] ss:$16 sps:$4 sm:$0xff]  }
  0x49   :  { %1488 = vmatprep.subr.bf16.mxu1 %v4984_v15  ;;  %1518 = vmatprep.mubr.bf16.mxu1 %v4270_v35  ;;  %v5076_v15 = vld [vmem:[%s7383_s2 + $0x40c] ss:$16 sps:$4 sm:$0xff]   ;;  %v5098_v35 = vld [vmem:[%s7383_s2 + $0x488] ss:$16 sps:$4 sm:$0xff]  }
  0x4b   :  { %1327 = vmatpush1.bf16.msra.mxu0 %v4979_v16  ;;  %v6144_v16 = vld [vmem:[%s7381_s0 + $0x10] sm:$0xff] }
  0x4c   :  { %1489 = vmatpush1.bf16.msra.mxu1 %v4982_v17  ;;  %1328 = vmatprep.subr.bf16.mxu0 %v4987_v18  ;;  %v4272_v17 = vcombine.high %v6144_v16, %v6144_v16  ;;  %v5071_v18 = vld [vmem:[%s7383_s2 + $0x420] ss:$16 sps:$4 sm:$0xff]  }
  0x4d   :  { %1490 = vmatprep.subr.bf16.mxu1 %v4990_v19  ;;  %v5074_v19 = vld [vmem:[%s7383_s2 + $0x408] ss:$16 sps:$4 sm:$0xff]  }
  0x4f   :  { %1329 = vmatpush1.bf16.msra.mxu0 %v4985_v20  ;;  %v5079_v20 = vld [vmem:[%s7383_s2 + $0x444] ss:$16 sps:$4 sm:$0xff]  }
  0x50   :  { %1491 = vmatpush1.bf16.msra.mxu1 %v4988_v21  ;;  %1330 = vmatprep.subr.bf16.mxu0 %v4993_v22  ;;  %v5082_v21 = vld [vmem:[%s7383_s2 + $0x42c] ss:$16 sps:$4 sm:$0xff]   ;;  %v5077_v22 = vld [vmem:[%s7383_s2 + $0x440] ss:$16 sps:$4 sm:$0xff]  }
  0x51   :  { %1492 = vmatprep.subr.bf16.mxu1 %v4996_v23  ;;  %v5080_v23 = vld [vmem:[%s7383_s2 + $0x428] ss:$16 sps:$4 sm:$0xff]  }
  0x53   :  { %1331 = vmatpush1.bf16.msra.mxu0 %v4991_v24  ;;  %v5085_v24 = vld [vmem:[%s7383_s2 + $0x464] ss:$16 sps:$4 sm:$0xff]  }
  0x54   :  { %1493 = vmatpush1.bf16.msra.mxu1 %v4994_v25  ;;  %1332 = vmatprep.subr.bf16.mxu0 %v4999_v26  ;;  %v5088_v25 = vld [vmem:[%s7383_s2 + $0x44c] ss:$16 sps:$4 sm:$0xff]   ;;  %v5083_v26 = vld [vmem:[%s7383_s2 + $0x460] ss:$16 sps:$4 sm:$0xff]  }
  0x55   :  { %1494 = vmatprep.subr.bf16.mxu1 %v5002_v27  ;;  %v5086_v27 = vld [vmem:[%s7383_s2 + $0x448] ss:$16 sps:$4 sm:$0xff]  }
  0x57   :  { %1333 = vmatpush1.bf16.msra.mxu0 %v4997_v28  ;;  %v5091_v28 = vld [vmem:[%s7383_s2 + $0x484] ss:$16 sps:$4 sm:$0xff]  }
  0x58   :  { %1495 = vmatpush1.bf16.msra.mxu1 %v5000_v29  ;;  %1334 = vmatprep.subr.bf16.mxu0 %v5005_v30  ;;  %v5094_v29 = vld [vmem:[%s7383_s2 + $0x46c] ss:$16 sps:$4 sm:$0xff]   ;;  %v5089_v30 = vld [vmem:[%s7383_s2 + $0x480] ss:$16 sps:$4 sm:$0xff]  }
  0x59   :  { %1496 = vmatprep.subr.bf16.mxu1 %v5008_v31  ;;  %v5092_v31 = vld [vmem:[%s7383_s2 + $0x468] ss:$16 sps:$4 sm:$0xff]  }
  0x5b   :  { %1335 = vmatpush1.bf16.msra.mxu0 %v5003_v33  ;;  %v5100_v33 = vld [vmem:[%s7383_s2 + $0x48c] ss:$16 sps:$4 sm:$0xff]  }
  0x5c   :  { %1497 = vmatpush1.bf16.msra.mxu1 %v5006_v34  ;;  %1336 = vmatprep.subr.bf16.mxu0 %v5011_v36  ;;  %v5095_v34 = vld [vmem:[%s7383_s2 + $0x4a0] ss:$16 sps:$4 sm:$0xff]   ;;  %v5103_v36 = vld [vmem:[%s7383_s2 + $0x4c4] ss:$16 sps:$4 sm:$0xff]  }
  0x5d   :  { %1498 = vmatprep.subr.bf16.mxu1 %v5014_v37  ;;  %v5106_v37 = vld [vmem:[%s7383_s2 + $0x4ac] ss:$16 sps:$4 sm:$0xff]  }
  0x5f   :  { %1337 = vmatpush1.bf16.msra.mxu0 %v5009_v38  ;;  %v5101_v38 = vld [vmem:[%s7383_s2 + $0x4c0] ss:$16 sps:$4 sm:$0xff]  }
  0x60   :  { %1499 = vmatpush1.bf16.msra.mxu1 %v5012_v39  ;;  %1338 = vmatprep.subr.bf16.mxu0 %v5017_v40  ;;  %v5104_v39 = vld [vmem:[%s7383_s2 + $0x4a8] ss:$16 sps:$4 sm:$0xff]   ;;  %v5109_v40 = vld [vmem:[%s7383_s2 + $0x4e4] ss:$16 sps:$4 sm:$0xff]  }
  0x61   :  { %1500 = vmatprep.subr.bf16.mxu1 %v5020_v41  ;;  %v5112_v41 = vld [vmem:[%s7383_s2 + $0x4cc] ss:$16 sps:$4 sm:$0xff]  }
  0x63   :  { %1339 = vmatpush1.bf16.msra.mxu0 %v5015_v42  ;;  %v5107_v42 = vld [vmem:[%s7383_s2 + $0x4e0] ss:$16 sps:$4 sm:$0xff]  }
  0x64   :  { %1501 = vmatpush1.bf16.msra.mxu1 %v5018_v43  ;;  %1340 = vmatprep.subr.bf16.mxu0 %v5023_v44  ;;  %v5110_v43 = vld [vmem:[%s7383_s2 + $0x4c8] ss:$16 sps:$4 sm:$0xff]   ;;  %v5115_v44 = vld [vmem:[%s7383_s2 + $0x504] ss:$16 sps:$4 sm:$0xff]  }
  0x65   :  { %1502 = vmatprep.subr.bf16.mxu1 %v5026_v45  ;;  %v5118_v45 = vld [vmem:[%s7383_s2 + $0x4ec] ss:$16 sps:$4 sm:$0xff]  }
  0x67   :  { %1341 = vmatpush1.bf16.msra.mxu0 %v5021_v46  ;;  %v5113_v46 = vld [vmem:[%s7383_s2 + $0x500] ss:$16 sps:$4 sm:$0xff]  }
  0x68   :  { %1503 = vmatpush1.bf16.msra.mxu1 %v5024_v47  ;;  %1342 = vmatprep.subr.bf16.mxu0 %v5029_v48  ;;  %v5116_v47 = vld [vmem:[%s7383_s2 + $0x4e8] ss:$16 sps:$4 sm:$0xff]   ;;  %v5121_v48 = vld [vmem:[%s7383_s2 + $0x524] ss:$16 sps:$4 sm:$0xff]  }
  0x69   :  { %1504 = vmatprep.subr.bf16.mxu1 %v5032_v49  ;;  %v5124_v49 = vld [vmem:[%s7383_s2 + $0x50c] ss:$16 sps:$4 sm:$0xff]  }
  0x6b   :  { %1343 = vmatpush1.bf16.msra.mxu0 %v5027_v50  ;;  %v5119_v50 = vld [vmem:[%s7383_s2 + $0x520] ss:$16 sps:$4 sm:$0xff]  }
  0x6c   :  { %1505 = vmatpush1.bf16.msra.mxu1 %v5030_v51  ;;  %1344 = vmatprep.subr.bf16.mxu0 %v5035_v52  ;;  %v5122_v51 = vld [vmem:[%s7383_s2 + $0x508] ss:$16 sps:$4 sm:$0xff]   ;;  %v5127_v52 = vld [vmem:[%s7383_s2 + $0x544] ss:$16 sps:$4 sm:$0xff]  }
  0x6d   :  { %1506 = vmatprep.subr.bf16.mxu1 %v5038_v53  ;;  %v5130_v53 = vld [vmem:[%s7383_s2 + $0x52c] ss:$16 sps:$4 sm:$0xff]  }
  0x6f   :  { %1345 = vmatpush1.bf16.msra.mxu0 %v5033_v54  ;;  %v5125_v54 = vld [vmem:[%s7383_s2 + $0x540] ss:$16 sps:$4 sm:$0xff]  }
  0x70   :  { %1507 = vmatpush1.bf16.msra.mxu1 %v5036_v55  ;;  %1346 = vmatprep.subr.bf16.mxu0 %v5041_v56  ;;  %v5128_v55 = vld [vmem:[%s7383_s2 + $0x528] ss:$16 sps:$4 sm:$0xff]   ;;  %v5133_v56 = vld [vmem:[%s7383_s2 + $0x564] ss:$16 sps:$4 sm:$0xff]  }
  0x71   :  { %1508 = vmatprep.subr.bf16.mxu1 %v5044_v57  ;;  %v5136_v57 = vld [vmem:[%s7383_s2 + $0x54c] ss:$16 sps:$4 sm:$0xff]  }
  0x73   :  { %1347 = vmatpush1.bf16.msra.mxu0 %v5039_v58  ;;  %v5131_v58 = vld [vmem:[%s7383_s2 + $0x560] ss:$16 sps:$4 sm:$0xff]  }
  0x74   :  { %1509 = vmatpush1.bf16.msra.mxu1 %v5042_v59  ;;  %1348 = vmatprep.subr.bf16.mxu0 %v5047_v60  ;;  %v5134_v59 = vld [vmem:[%s7383_s2 + $0x548] ss:$16 sps:$4 sm:$0xff]   ;;  %v5139_v60 = vld [vmem:[%s7383_s2 + $0x584] ss:$16 sps:$4 sm:$0xff]  }
  0x75   :  { %1510 = vmatprep.subr.bf16.mxu1 %v5050_v61  ;;  %v5142_v61 = vld [vmem:[%s7383_s2 + $0x56c] ss:$16 sps:$4 sm:$0xff]  }
  0x77   :  { %1349 = vmatpush1.bf16.msra.mxu0 %v5045_v62  ;;  %v5137_v62 = vld [vmem:[%s7383_s2 + $0x580] ss:$16 sps:$4 sm:$0xff]  }
  0x78   :  { %1511 = vmatpush1.bf16.msra.mxu1 %v5048_v63  ;;  %1350 = vmatprep.subr.bf16.mxu0 %v5053_v0  ;;  %v5140_v63 = vld [vmem:[%s7383_s2 + $0x568] ss:$16 sps:$4 sm:$0xff]   ;;  %v5145_v0 = vld [vmem:[%s7383_s2 + $0x5a4] ss:$16 sps:$4 sm:$0xff]  }
  0x79   :  { %1512 = vmatprep.subr.bf16.mxu1 %v5056_v1  ;;  %v5148_v1 = vld [vmem:[%s7383_s2 + $0x58c] ss:$16 sps:$4 sm:$0xff]  }
  0x7b   :  { %1351 = vmatpush1.bf16.msra.mxu0 %v5051_v3  ;;  %v5143_v3 = vld [vmem:[%s7383_s2 + $0x5a0] ss:$16 sps:$4 sm:$0xff]  }
  0x7c   :  { %1513 = vmatpush1.bf16.msra.mxu1 %v5054_v4  ;;  %1352 = vmatprep.subr.bf16.mxu0 %v5059_v5  ;;  %v5146_v4 = vld [vmem:[%s7383_s2 + $0x588] ss:$16 sps:$4 sm:$0xff]   ;;  %v5151_v5 = vld [vmem:[%s7383_s2 + $0x5c4] ss:$16 sps:$4 sm:$0xff]  }
  0x7d   :  { %1514 = vmatprep.subr.bf16.mxu1 %v5062_v6  ;;  %v5154_v6 = vld [vmem:[%s7383_s2 + $0x5ac] ss:$16 sps:$4 sm:$0xff]  }
  0x7f   :  { %1353 = vmatpush1.bf16.msra.mxu0 %v5057_v7  ;;  %v5149_v7 = vld [vmem:[%s7383_s2 + $0x5c0] ss:$16 sps:$4 sm:$0xff]  }
  0x80   :  { %1515 = vmatpush1.bf16.msra.mxu1 %v5060_v8  ;;  %1363 = vmatprep.subr.bf16.mxu0 %v5067_v9  ;;  %v5152_v8 = vld [vmem:[%s7383_s2 + $0x5a8] ss:$16 sps:$4 sm:$0xff]   ;;  %v5157_v9 = vld [vmem:[%s7383_s2 + $0x5e4] ss:$16 sps:$4 sm:$0xff]  }
  0x81   :  { %1516 = vmatprep.subr.bf16.mxu1 %v5070_v10  ;;  %v5160_v10 = vld [vmem:[%s7383_s2 + $0x5cc] ss:$16 sps:$4 sm:$0xff]  }
  0x82   :  { %1355 = vmatmul.mubr.bf16.vlgmr.msra.gmra.mrb[0].mxu0 %v4269_v11 }
  0x83   :  { %1364 = vmatpush1.bf16.msra.mxu0 %v5065_v12  ;;  %1395 = vmatprep.mubr.bf16.mxu0 %v4272_v17  ;;  %v5158_v12 = vld [vmem:[%s7383_s2 + $0x5c8] ss:$16 sps:$4 sm:$0xff]  }
  0x84   :  { %1517 = vmatpush1.bf16.msra.mxu1 %v5068_v13  ;;  %1365 = vmatprep.subr.bf16.mxu0 %v5073_v14  ;;  %v5165_v13 = vld [vmem:[%s7383_s2 + $0x5ec] ss:$16 sps:$4 sm:$0xff]  }
  0x85   :  { %1527 = vmatprep.subr.bf16.mxu1 %v5076_v15  ;;  %v5171_v14 = vld [vmem:[%s7385_s4 + $0x4] ss:$8 sps:$4 sm:$0xff]   ;;  %v5163_v15 = vld [vmem:[%s7383_s2 + $0x5e8] ss:$16 sps:$4 sm:$0xff]  }
  0x87   :  { %1519 = vmatmul.mubr.bf16.vlgmr.msra.gmra.mrb[4].mxu1 %v4269_v11  ;;  %1366 = vmatpush1.bf16.msra.mxu0 %v5071_v18  ;;  %v5155_v11 = vld [vmem:[%s7383_s2 + $0x5e0] ss:$16 sps:$4 sm:$0xff]   ;;  %v4271_v18 = vcombine.low %v6144_v16, %v6144_v16 }
  0x88   :  { %1528 = vmatpush1.bf16.msra.mxu1 %v5074_v19  ;;  %1367 = vmatprep.subr.bf16.mxu0 %v5079_v20  ;;  %v5168_v19 = vld [vmem:[%s7383_s2 + $0x60c] ss:$16 sps:$4 sm:$0xff]   ;;  %v5172_v16 = vld [vmem:[%s7385_s4 + $0x10] ss:$8 sps:$4 sm:$0xff]  }
  0x89   :  { %1529 = vmatprep.subr.bf16.mxu1 %v5082_v21  ;;  %1559 = vmatprep.mubr.bf16.mxu1 %v4272_v17  ;;  %v5169_v17 = vld [vmem:[%s7385_s4] ss:$8 sps:$4 sm:$0xff]   ;;  %v5174_v20 = vld [vmem:[%s7385_s4 + $0x14] ss:$8 sps:$4 sm:$0xff]  }
  0x8a   :  { %v5166_v21 = vld [vmem:[%s7383_s2 + $0x608] ss:$16 sps:$4 sm:$0xff]  }
  0x8b   :  { %1368 = vmatpush1.bf16.msra.mxu0 %v5077_v22  ;;  %v5177_v22 = vld [vmem:[%s7385_s4 + $0x24] ss:$8 sps:$4 sm:$0xff]  }
  0x8c   :  { %1530 = vmatpush1.bf16.msra.mxu1 %v5080_v23  ;;  %1369 = vmatprep.subr.bf16.mxu0 %v5085_v24  ;;  %v5175_v23 = vld [vmem:[%s7385_s4 + $0x20] ss:$8 sps:$4 sm:$0xff]   ;;  %v5180_v24 = vld [vmem:[%s7385_s4 + $0x34] ss:$8 sps:$4 sm:$0xff]  }
  0x8d   :  { %1531 = vmatprep.subr.bf16.mxu1 %v5088_v25  ;;  %v5178_v25 = vld [vmem:[%s7385_s4 + $0x30] ss:$8 sps:$4 sm:$0xff]  }
  0x8f   :  { %1370 = vmatpush1.bf16.msra.mxu0 %v5083_v26  ;;  %v5183_v26 = vld [vmem:[%s7385_s4 + $0x44] ss:$8 sps:$4 sm:$0xff]  }
  0x90   :  { %1532 = vmatpush1.bf16.msra.mxu1 %v5086_v27  ;;  %1371 = vmatprep.subr.bf16.mxu0 %v5091_v28  ;;  %v5181_v27 = vld [vmem:[%s7385_s4 + $0x40] ss:$8 sps:$4 sm:$0xff]   ;;  %v5186_v28 = vld [vmem:[%s7385_s4 + $0x54] ss:$8 sps:$4 sm:$0xff]  }
  0x91   :  { %1533 = vmatprep.subr.bf16.mxu1 %v5094_v29  ;;  %v5611_v29 = vld [vmem:[%s7381_s0 + $0x18] ss:$0 sps:$4 sm:$0xff]  }
  0x93   :  { %1372 = vmatpush1.bf16.msra.mxu0 %v5089_v30  ;;  %v5184_v30 = vld [vmem:[%s7385_s4 + $0x50] ss:$8 sps:$4 sm:$0xff]  }
  0x94   :  { %1534 = vmatpush1.bf16.msra.mxu1 %v5092_v31  ;;  %1373 = vmatprep.subr.bf16.mxu0 %v5097_v32  ;;  %v5189_v31 = vld [vmem:[%s7385_s4 + $0x64] ss:$8 sps:$4 sm:$0xff]   ;;  %v5187_v32 = vld [vmem:[%s7385_s4 + $0x60] ss:$8 sps:$4 sm:$0xff]  }
  0x95   :  { %1535 = vmatprep.subr.bf16.mxu1 %v5100_v33  ;;  %v5192_v33 = vld [vmem:[%s7385_s4 + $0x74] ss:$8 sps:$4 sm:$0xff]  }
  0x97   :  { %1374 = vmatpush1.bf16.msra.mxu0 %v5095_v34 }
  0x98   :  { %1536 = vmatpush1.bf16.msra.mxu1 %v5098_v35  ;;  %1375 = vmatprep.subr.bf16.mxu0 %v5103_v36  ;;  %v5190_v36 = vld [vmem:[%s7385_s4 + $0x70] ss:$8 sps:$4 sm:$0xff]  }
  0x99   :  { %1537 = vmatprep.subr.bf16.mxu1 %v5106_v37 }
  0x9b   :  { %1376 = vmatpush1.bf16.msra.mxu0 %v5101_v38  ;;  %v5195_v38 = vld [vmem:[%s7385_s4 + $0x84] ss:$8 sps:$4 sm:$0xff]  }
  0x9c   :  { %1538 = vmatpush1.bf16.msra.mxu1 %v5104_v39  ;;  %1377 = vmatprep.subr.bf16.mxu0 %v5109_v40  ;;  %v5193_v40 = vld [vmem:[%s7385_s4 + $0x80] ss:$8 sps:$4 sm:$0xff]  }
  0x9d   :  { %1539 = vmatprep.subr.bf16.mxu1 %v5112_v41  ;;  %v5198_v41 = vld [vmem:[%s7385_s4 + $0x94] ss:$8 sps:$4 sm:$0xff]  }
  0x9f   :  { %1378 = vmatpush1.bf16.msra.mxu0 %v5107_v42  ;;  %v5196_v42 = vld [vmem:[%s7385_s4 + $0x90] ss:$8 sps:$4 sm:$0xff]  }
  0xa0   :  { %1540 = vmatpush1.bf16.msra.mxu1 %v5110_v43  ;;  %1379 = vmatprep.subr.bf16.mxu0 %v5115_v44  ;;  %v5201_v43 = vld [vmem:[%s7385_s4 + $0xa4] ss:$8 sps:$4 sm:$0xff]   ;;  %v5199_v44 = vld [vmem:[%s7385_s4 + $0xa0] ss:$8 sps:$4 sm:$0xff]  }
  0xa1   :  { %1541 = vmatprep.subr.bf16.mxu1 %v5118_v45  ;;  %v5204_v45 = vld [vmem:[%s7385_s4 + $0xb4] ss:$8 sps:$4 sm:$0xff]  }
  0xa3   :  { %1380 = vmatpush1.bf16.msra.mxu0 %v5113_v46  ;;  %v5202_v46 = vld [vmem:[%s7385_s4 + $0xb0] ss:$8 sps:$4 sm:$0xff]  }
  0xa4   :  { %1542 = vmatpush1.bf16.msra.mxu1 %v5116_v47  ;;  %1381 = vmatprep.subr.bf16.mxu0 %v5121_v48  ;;  %v5207_v47 = vld [vmem:[%s7385_s4 + $0xc4] ss:$8 sps:$4 sm:$0xff]   ;;  %v5205_v48 = vld [vmem:[%s7385_s4 + $0xc0] ss:$8 sps:$4 sm:$0xff]  }
  0xa5   :  { %1543 = vmatprep.subr.bf16.mxu1 %v5124_v49  ;;  %v5210_v49 = vld [vmem:[%s7385_s4 + $0xd4] ss:$8 sps:$4 sm:$0xff]  }
  0xa7   :  { %1382 = vmatpush1.bf16.msra.mxu0 %v5119_v50  ;;  %v5208_v50 = vld [vmem:[%s7385_s4 + $0xd0] ss:$8 sps:$4 sm:$0xff]  }
  0xa8   :  { %1544 = vmatpush1.bf16.msra.mxu1 %v5122_v51  ;;  %1383 = vmatprep.subr.bf16.mxu0 %v5127_v52 }
  0xa9   :  { %1545 = vmatprep.subr.bf16.mxu1 %v5130_v53 }
  0xab   :  { %1384 = vmatpush1.bf16.msra.mxu0 %v5125_v54 }
  0xac   :  { %1546 = vmatpush1.bf16.msra.mxu1 %v5128_v55  ;;  %1385 = vmatprep.subr.bf16.mxu0 %v5133_v56 }
  0xad   :  { %1547 = vmatprep.subr.bf16.mxu1 %v5136_v57 }
  0xaf   :  { %1386 = vmatpush1.bf16.msra.mxu0 %v5131_v58 }
  0xb0   :  { %1548 = vmatpush1.bf16.msra.mxu1 %v5134_v59  ;;  %1387 = vmatprep.subr.bf16.mxu0 %v5139_v60 }
  0xb1   :  { %1549 = vmatprep.subr.bf16.mxu1 %v5142_v61 }
  0xb3   :  { %1388 = vmatpush1.bf16.msra.mxu0 %v5137_v62 }
  0xb4   :  { %1550 = vmatpush1.bf16.msra.mxu1 %v5140_v63  ;;  %1389 = vmatprep.subr.bf16.mxu0 %v5145_v0 }
  0xb5   :  { %1551 = vmatprep.subr.bf16.mxu1 %v5148_v1 }
  0xb7   :  { %1390 = vmatpush1.bf16.msra.mxu0 %v5143_v3 }
  0xb8   :  { %1552 = vmatpush1.bf16.msra.mxu1 %v5146_v4  ;;  %1391 = vmatprep.subr.bf16.mxu0 %v5151_v5 }
  0xb9   :  { %1553 = vmatprep.subr.bf16.mxu1 %v5154_v6 }
  0xbb   :  { %1392 = vmatpush1.bf16.msra.mxu0 %v5149_v7 }
  0xbc   :  { %1554 = vmatpush1.bf16.msra.mxu1 %v5152_v8  ;;  %1393 = vmatprep.subr.bf16.mxu0 %v5157_v9 }
  0xbd   :  { %1555 = vmatprep.subr.bf16.mxu1 %v5160_v10 }
  0xbf   :  { %1394 = vmatpush1.bf16.msra.mxu0 %v5155_v11 }
  0xc0   :  { %1556 = vmatpush1.bf16.msra.mxu1 %v5158_v12  ;;  %1940 = vmatprep.subr.bf16.mxu0 %v5171_v14 }
  0xc1   :  { %1557 = vmatprep.subr.bf16.mxu1 %v5165_v13 }
  0xc2   :  { %1396 = vmatmul.mubr.bf16.vlgmr.msra.gmra.mrb[0].mxu0 %v4271_v18 }
  0xc3   :  { %1941 = vmatpush1.bf16.msra.mxu0 %v5169_v17 }
  0xc4   :  { %1558 = vmatpush1.bf16.msra.mxu1 %v5163_v15  ;;  %1942 = vmatprep.subr.bf16.mxu0 %v5174_v20 }
  0xc5   :  { %1568 = vmatprep.subr.bf16.mxu1 %v5168_v19 }
  0xc7   :  { %1560 = vmatmul.mubr.bf16.vlgmr.msra.gmra.mrb[4].mxu1 %v4271_v18  ;;  %1943 = vmatpush1.bf16.msra.mxu0 %v5172_v16 }
  0xc8   :  { %1569 = vmatpush1.bf16.msra.mxu1 %v5166_v21  ;;  %1600 = vmatprep.mubr.bf16.mxu1 %v5636_v2 }
  0xc9   :  { %2145 = vmatprep.subr.bf16.mxu1 %v5636_v2  ;;  %1944 = vmatprep.subr.bf16.mxu0 %v5177_v22 }
  0xcb   :  { %1945 = vmatpush1.bf16.msra.mxu0 %v5175_v23 }
  0xcc   :  { %1946 = vmatprep.subr.bf16.mxu0 %v5180_v24 }
  0xcf   :  { %1947 = vmatpush1.bf16.msra.mxu0 %v5178_v25 }
  0xd0   :  { %1948 = vmatprep.subr.bf16.mxu0 %v5183_v26 }
  0xd3   :  { %4471 = vmatmul.mubr.msk.bf16.vlgmr.msra.gmra.mrb[4].mxu1 %vm1277_vm0, %v5611_v29  ;;  %1949 = vmatpush1.bf16.msra.mxu0 %v5181_v27 }
  0xd4   :  { %1950 = vmatprep.subr.bf16.mxu0 %v5186_v28 }
  0xd7   :  { %1951 = vmatpush1.bf16.msra.mxu0 %v5184_v30 }
  0xd8   :  { %1952 = vmatprep.subr.bf16.mxu0 %v5189_v31 }
  0xda   :  { %v6387_v34 = vpop.f32.mrb[0].mxu1 }
  0xdb   :  { %v6389_v35 = vpop.f32.mrb[1].mxu1  ;;  %1953 = vmatpush1.bf16.msra.mxu0 %v5187_v32 }
  0xdc   :  { %v1442_v37 = vpop.f32.mrb[2].mxu1  ;;  %1954 = vmatprep.subr.bf16.mxu0 %v5192_v33 }
  0xdd   :  { %v1443_v39 = vpop.f32.mrb[3].mxu1 }
  0xdf   :  { %1955 = vmatpush1.bf16.msra.mxu0 %v5190_v36 }
  0xe0   :  { %1956 = vmatprep.subr.bf16.mxu0 %v5195_v38 }
  0xe3   :  { %1957 = vmatpush1.bf16.msra.mxu0 %v5193_v40 }
  0xe4   :  { %1958 = vmatprep.subr.bf16.mxu0 %v5198_v41 }
  0xe7   :  { %1959 = vmatpush1.bf16.msra.mxu0 %v5196_v42 }
  0xe8   :  { %1960 = vmatprep.subr.bf16.mxu0 %v5201_v43 }
  0xeb   :  { %1961 = vmatpush1.bf16.msra.mxu0 %v5199_v44 }
  0xec   :  { %1962 = vmatprep.subr.bf16.mxu0 %v5204_v45 }
  0xef   :  { %1963 = vmatpush1.bf16.msra.mxu0 %v5202_v46 }
  0xf0   :  { %1964 = vmatprep.subr.bf16.mxu0 %v5207_v47 }
  0xf3   :  { %1965 = vmatpush1.bf16.msra.mxu0 %v5205_v48 }
  0xf4   :  { %1966 = vmatprep.subr.bf16.mxu0 %v5210_v49 }
  0xf7   :  { %1967 = vmatpush1.bf16.msra.mxu0 %v5208_v50 }
  0xf8   :  { %21 = vsyncpa [#allocation3], 0  ;;  %v5213_v51 = vld [vmem:[%s7385_s4 + $0xe4] ss:$8 sps:$4 sm:$0xff]   ;;  %v5211_v52 = vld [vmem:[%s7385_s4 + $0xe0] ss:$8 sps:$4 sm:$0xff]   ;;  %v253_v4 = vlaneseq }
  0xf9   :  { %1968 = vmatprep.subr.bf16.mxu0 %v5213_v51  ;;  %v5216_v53 = vld [vmem:[%s7385_s4 + $0xf4] ss:$8 sps:$4 sm:$0xff]   ;;  %v5214_v54 = vld [vmem:[%s7385_s4 + $0xf0] ss:$8 sps:$4 sm:$0xff]   ;;  %v5219_v55 = vld [vmem:[%s7385_s4 + $0x104] ss:$8 sps:$4 sm:$0xff]  }
  0xfa   :  { %v5244_v56 = vld [vmem:[%s7387_s6] sm:$0xff]   ;;  %v5245_v57 = vld [vmem:[%s7387_s6 + $0x8] sm:$0xff]   ;;  %v5246_v58 = vld [vmem:[%s7387_s6 + $0x10] sm:$0xff]   ;;  %v6489_v5 = vshrl.u32 %v253_v4, 7  ;;  %vm2141_vm5 = vcmask 1043456   ;;  %s5637_s23 = smov 2  }
  0xfb   :  { %1969 = vmatpush1.bf16.msra.mxu0 %v5211_v52  ;;  %2146 = vmatpush1.bf16.msra.mxu1 %v5244_v56  ;;  %v5247_v59 = vld [vmem:[%s7387_s6 + $0x18] sm:$0xff]   ;;  %v5248_v60 = vld [vmem:[%s7387_s6 + $0x20] sm:$0xff]   ;;  %v5249_v61 = vld [vmem:[%s7387_s6 + $0x28] sm:$0xff]   ;;  %vm2137_vm8 = vcmask 588800   ;;  %vm4247_vm15 = vcmask 125952  }
  0xfc   :  { %1970 = vmatprep.subr.bf16.mxu0 %v5216_v53  ;;  %2147 = vmatprep.subr.bf16.mxu1 %v5636_v2  ;;  %v5250_v62 = vld [vmem:[%s7387_s6 + $0x30] sm:$0xff]   ;;  %v5251_v63 = vld [vmem:[%s7387_s6 + $0x38] sm:$0xff]   ;;  %v5252_v0 = vld [vmem:[%s7387_s6 + $0x40] sm:$0xff]   ;;  %v6492_v6 = vsub.s32 0, %v6489_v5  ;;  %v6500_v8 = vsub.s32 1, %v6489_v5  ;;  %v6515_v27 = vsub.s32 3, %v6489_v5 }
  0xfd   :  { %v5253_v1 = vld [vmem:[%s7387_s6 + $0x48] sm:$0xff]   ;;  %v5254_v3 = vld [vmem:[%s7387_s6 + $0x50] sm:$0xff]   ;;  %v6497_v7 = vld [vmem:[%s7384_s3] sm:$0xf]  ;;  %v6545_v45 = vsub.s32 2, %v6489_v5 }
  0xfe   :  { %v256_v9 = vrot.slane %v6497_v7, %v6492_v6  ;;  %v260_v10 = vrot.slane %v6497_v7, %v6500_v8  ;;  %v5217_v24 = vld [vmem:[%s7385_s4 + $0x100] ss:$8 sps:$4 sm:$0xff]   ;;  %v5222_v26 = vld [vmem:[%s7385_s4 + $0x114] ss:$8 sps:$4 sm:$0xff]   ;;  %v5220_v28 = vld [vmem:[%s7385_s4 + $0x110] ss:$8 sps:$4 sm:$0xff]   ;;  %v268_v29 = vrot.slane %v6497_v7, %v6515_v27 }
  0xff   :  { %1971 = vmatpush1.bf16.msra.mxu0 %v5214_v54  ;;  %2148 = vmatpush1.bf16.msra.mxu1 %v5245_v57  ;;  %v5225_v30 = vld [vmem:[%s7385_s4 + $0x124] ss:$8 sps:$4 sm:$0xff]   ;;  %v5223_v33 = vld [vmem:[%s7385_s4 + $0x120] ss:$8 sps:$4 sm:$0xff]   ;;  %v5228_v36 = vld [vmem:[%s7385_s4 + $0x134] ss:$8 sps:$4 sm:$0xff]   ;;  %v264_v48 = vrot.slane %v6497_v7, %v6545_v45 }
 0x100   :  { %1981 = vmatprep.subr.bf16.mxu0 %v5219_v55  ;;  %2149 = vmatprep.subr.bf16.mxu1 %v5636_v2  ;;  %v5226_v39 = vld [vmem:[%s7385_s4 + $0x130] ss:$8 sps:$4 sm:$0xff]   ;;  %v5231_v41 = vld [vmem:[%s7385_s4 + $0x144] ss:$8 sps:$4 sm:$0xff]   ;;  %v5229_v43 = vld [vmem:[%s7385_s4 + $0x140] ss:$8 sps:$4 sm:$0xff]  }
 0x101   :  { %v5234_v44 = vld [vmem:[%s7385_s4 + $0x154] ss:$8 sps:$4 sm:$0xff]   ;;  %v5232_v46 = vld [vmem:[%s7385_s4 + $0x150] ss:$8 sps:$4 sm:$0xff]   ;;  %v5237_v47 = vld [vmem:[%s7385_s4 + $0x164] ss:$8 sps:$4 sm:$0xff]  }
 0x102   :  { %v5235_v49 = vld [vmem:[%s7385_s4 + $0x160] ss:$8 sps:$4 sm:$0xff]   ;;  %v5240_v50 = vld [vmem:[%s7385_s4 + $0x174] ss:$8 sps:$4 sm:$0xff]   ;;  %v5238_v52 = vld [vmem:[%s7385_s4 + $0x170] ss:$8 sps:$4 sm:$0xff]  }
 0x103   :  { %2150 = vmatpush1.bf16.msra.mxu1 %v5246_v58  ;;  %v5243_v53 = vld [vmem:[%s7385_s4 + $0x184] ss:$8 sps:$4 sm:$0xff]   ;;  %v5241_v55 = vld [vmem:[%s7385_s4 + $0x180] ss:$8 sps:$4 sm:$0xff]   ;;  %v5255_v58 = vld [vmem:[%s7387_s6 + $0x58] sm:$0xff]  }
 0x104   :  { %2151 = vmatprep.subr.bf16.mxu1 %v5636_v2 }
 0x107   :  { %2152 = vmatpush1.bf16.msra.mxu1 %v5247_v59  ;;  %v5256_v59 = vld [vmem:[%s7387_s6 + $0x60] ss:$0 sps:$4 sm:$0xff]  }
 0x108   :  { %2153 = vmatprep.subr.bf16.mxu1 %v5636_v2 }
 0x10b   :  { %2154 = vmatpush1.bf16.msra.mxu1 %v5248_v60  ;;  %v2143_v60 = vsel %vm2141_vm5, %v5256_v59, 0  ;;  %v5302_v59 = vld [vmem:[%s7391_s10 + $0xe8] ss:$16 sps:$4 sm:$0xff]  }
 0x10c   :  { %2155 = vmatprep.subr.bf16.mxu1 %v5636_v2 }
 0x10f   :  { %2156 = vmatpush1.bf16.msra.mxu1 %v5249_v61  ;;  %v2186_v61 = vld [vmem:[%s7382_s1] sm:$0xff] }
 0x110   :  { %2157 = vmatprep.subr.bf16.mxu1 %v5636_v2  ;;  %2188 = vrot.lane.b32.xlu0 %v2186_v61, %s5637_s23  ;;  %v5310_v61 = vld [vmem:[%s7391_s10 + $0x10c] ss:$16 sps:$4 sm:$0xff]  }
 0x113   :  { %2158 = vmatpush1.bf16.msra.mxu1 %v5250_v62  ;;  %v1675_v62 = vld [vmem:[%s7386_s5] sm:$0x3]  ;;  %s5639_s5 = smov 126  }
 0x114   :  { %2159 = vmatprep.subr.bf16.mxu1 %v5636_v2 }
 0x117   :  { %2160 = vmatpush1.bf16.msra.mxu1 %v5251_v63  ;;  %v1680_v63 = vrot.slane %v1675_v62, %v6492_v6 }
 0x118   :  { %2161 = vmatprep.subr.bf16.mxu1 %v5636_v2 }
 0x11b   :  { %2162 = vmatpush1.bf16.msra.mxu1 %v5252_v0  ;;  %v1684_v0 = vrot.slane %v1675_v62, %v6500_v8  ;;  %v5305_v62 = vld [vmem:[%s7391_s10 + $0x100] ss:$16 sps:$4 sm:$0xff]  }
 0x11c   :  { %2163 = vmatprep.subr.bf16.mxu1 %v5636_v2 }
 0x11f   :  { %2164 = vmatpush1.bf16.msra.mxu1 %v5253_v1 }
 0x120   :  { %2165 = vmatprep.subr.bf16.mxu1 %v5636_v2 }
 0x123   :  { %2166 = vmatpush1.bf16.msra.mxu1 %v5254_v3 }
 0x124   :  { %2167 = vmatprep.subr.bf16.mxu1 %v5636_v2 }
 0x127   :  { %2168 = vmatpush1.bf16.msra.mxu1 %v5255_v58  ;;  %v5299_v58 = vld [vmem:[%s7391_s10 + $0xe0] ss:$16 sps:$4 sm:$0xff]  }
 0x128   :  { %2169 = vmatprep.subr.bf16.mxu1 %v5636_v2 }
 0x12b   :  { %2170 = vmatpush1.bf16.msra.mxu1 %v2143_v60  ;;  %v5307_v60 = vld [vmem:[%s7391_s10 + $0x104] ss:$16 sps:$4 sm:$0xff]  }
 0x195   :  { %v1397_v11 = vpop.f32.mrb[0].mxu0 }
 0x196   :  { %v4810_v12 = vadd.f32 %v1397_v11, %v256_v9  ;;  %v1399_v13 = vpop.f32.mrb[1].mxu0 }
 0x197   :  { %v4812_v14 = vadd.f32 %v1399_v13, %v260_v10  ;;  %v1401_v15 = vpop.f32.mrb[2].mxu0 }
 0x198   :  { %v4811_v17 = vadd.f32 %v4810_v12, %v6387_v34  ;;  %v1402_v18 = vpop.f32.mrb[3].mxu0 }
 0x199   :  { %v4813_v19 = vadd.f32 %v4812_v14, %v6389_v35  ;;  %v5638_v18 = vmov 1  }
 0x19a   :  { %vm1609_vm1 = vcmp.gt.f32.partialorder %v4811_v17, 0.0  ;;  %v1613_v20 = vmul.f32 0.2, %v4811_v17  ;;  %4867 = vset.pattern.permute.xlu0 %v5638_v18 }
 0x19b   :  { %v1614_v21 = vmul.f32 0.2, %v4813_v19  ;;  %vm1610_vm2 = vcmp.gt.f32.partialorder %v4813_v19, 0.0 }
 0x19c   :  { %v1617_v16 = vsel %vm1609_vm1, %v4811_v17, %v1613_v20  ;;  %v5257_v20 = vld [vmem:[%s7391_s10] ss:$16 sps:$4 sm:$0xff]  }
 0x19d   :  { %v1618_v22 = vsel %vm1610_vm2, %v4813_v19, %v1614_v21  ;;  %v1621_v25 = vpack.c.bf16 %v1617_v16, %v1617_v16  ;;  %v4523_v19 = vld [vmem:[%s7388_s7] ss:$0 sm:$0xff]  ;;  %v5259_v21 = vld [vmem:[%s7391_s10 + $0x4] ss:$16 sps:$4 sm:$0xff]   ;;  %v5260_v16 = vld [vmem:[%s7391_s10 + $0x8] ss:$16 sps:$4 sm:$0xff]  }
 0x19e   :  { %v1622_v23 = vpack.c.bf16 %v1618_v22, %v1618_v22  ;;  %2609 = vmatprep.subr.bf16.mxu1 %v5259_v21 }
 0x1a0   :  { %1972 = vmatprep.mubr.bf16.mxu0 %v1622_v23  ;;  %v2189_v23 = vpop.permute.xlu0 %2188 }
 0x1a1   :  { %1973 = vmatmul.mubr.bf16.vlgmr.msra.gmra.mrb[4].mxu0 %v1621_v25 }
 0x1a2   :  { %1982 = vmatpush1.bf16.msra.mxu0 %v5217_v24  ;;  %v5262_v24 = vld [vmem:[%s7391_s10 + $0xc] ss:$16 sps:$4 sm:$0xff]  }
 0x1a3   :  { %1983 = vmatprep.subr.bf16.mxu0 %v5222_v26 }
 0x1a6   :  { %v1602_v31 = vpop.f32.mrb[4].mxu1  ;;  %1984 = vmatpush1.bf16.msra.mxu0 %v5220_v28  ;;  %v5265_v28 = vld [vmem:[%s7391_s10 + $0x24] ss:$16 sps:$4 sm:$0xff]  }
 0x1a7   :  { %v1604_v32 = vpop.f32.mrb[5].mxu1  ;;  %1985 = vmatprep.subr.bf16.mxu0 %v5225_v30  ;;  %v4814_v51 = vadd.f32 %v1602_v31, %v264_v48  ;;  %v5263_v30 = vld [vmem:[%s7391_s10 + $0x20] ss:$16 sps:$4 sm:$0xff]   ;;  %v5268_v31 = vld [vmem:[%s7391_s10 + $0x2c] ss:$16 sps:$4 sm:$0xff]  }
 0x1a8   :  { %v4815_v34 = vadd.f32 %v1604_v32, %v268_v29  ;;  %v1606_v35 = vpop.f32.mrb[6].mxu1  ;;  %v5289_v48 = vld [vmem:[%s7391_s10 + $0xa4] ss:$16 sps:$4 sm:$0xff]  }
 0x1a9   :  { %v1607_v37 = vpop.f32.mrb[7].mxu1  ;;  %v1615_v54 = vmul.f32 0.2, %v4814_v51  ;;  %vm1611_vm4 = vcmp.gt.f32.partialorder %v4814_v51, 0.0  ;;  %v5271_v35 = vld [vmem:[%s7391_s10 + $0x44] ss:$16 sps:$4 sm:$0xff]  }
 0x1aa   :  { %vm1612_vm3 = vcmp.gt.f32.partialorder %v4815_v34, 0.0  ;;  %v1616_v38 = vmul.f32 0.2, %v4815_v34  ;;  %1986 = vmatpush1.bf16.msra.mxu0 %v5223_v33  ;;  %v5269_v37 = vld [vmem:[%s7391_s10 + $0x40] ss:$16 sps:$4 sm:$0xff]  }
 0x1ab   :  { %1987 = vmatprep.subr.bf16.mxu0 %v5228_v36  ;;  %v1619_v56 = vsel %vm1611_vm4, %v4814_v51, %v1615_v54  ;;  %v5274_v36 = vld [vmem:[%s7391_s10 + $0x4c] ss:$16 sps:$4 sm:$0xff]   ;;  %v5290_v51 = vld [vmem:[%s7391_s10 + $0xa8] ss:$16 sps:$4 sm:$0xff]   ;;  %v5293_v54 = vld [vmem:[%s7391_s10 + $0xc0] ss:$16 sps:$4 sm:$0xff]  }
 0x1ac   :  { %v1620_v40 = vsel %vm1612_vm3, %v4815_v34, %v1616_v38  ;;  %v1623_v57 = vpack.c.bf16 %v1619_v56, %v1619_v56  ;;  %v5266_v34 = vld [vmem:[%s7391_s10 + $0x28] ss:$16 sps:$4 sm:$0xff]   ;;  %v5301_v56 = vld [vmem:[%s7391_s10 + $0xe4] ss:$16 sps:$4 sm:$0xff]  }
 0x1ad   :  { %v1624_v42 = vpack.c.bf16 %v1620_v40, %v1620_v40  ;;  %v5272_v38 = vld [vmem:[%s7391_s10 + $0x48] ss:$16 sps:$4 sm:$0xff]   ;;  %v5280_v40 = vld [vmem:[%s7391_s10 + $0x6c] ss:$16 sps:$4 sm:$0xff]  }
 0x1ae   :  { %1988 = vmatpush1.bf16.msra.mxu0 %v5226_v39  ;;  %v5277_v39 = vld [vmem:[%s7391_s10 + $0x64] ss:$16 sps:$4 sm:$0xff]  }
 0x1af   :  { %4522 = vmatprep.mubr.msk.bf16.mxu0 %vm1277_vm0, %v1624_v42  ;;  %1989 = vmatprep.subr.bf16.mxu0 %v5231_v41  ;;  %v5275_v41 = vld [vmem:[%s7391_s10 + $0x60] ss:$16 sps:$4 sm:$0xff]   ;;  %v5278_v42 = vld [vmem:[%s7391_s10 + $0x68] ss:$16 sps:$4 sm:$0xff]  }
 0x1b2   :  { %1990 = vmatpush1.bf16.msra.mxu0 %v5229_v43  ;;  %v5283_v43 = vld [vmem:[%s7391_s10 + $0x84] ss:$16 sps:$4 sm:$0xff]  }
 0x1b3   :  { %1991 = vmatprep.subr.bf16.mxu0 %v5234_v44  ;;  %v5286_v44 = vld [vmem:[%s7391_s10 + $0x8c] ss:$16 sps:$4 sm:$0xff]  }
 0x1b6   :  { %1992 = vmatpush1.bf16.msra.mxu0 %v5232_v46  ;;  %v5281_v46 = vld [vmem:[%s7391_s10 + $0x80] ss:$16 sps:$4 sm:$0xff]  }
 0x1b7   :  { %1993 = vmatprep.subr.bf16.mxu0 %v5237_v47  ;;  %v5284_v47 = vld [vmem:[%s7391_s10 + $0x88] ss:$16 sps:$4 sm:$0xff]  }
 0x1ba   :  { %1994 = vmatpush1.bf16.msra.mxu0 %v5235_v49  ;;  %v5292_v49 = vld [vmem:[%s7391_s10 + $0xac] ss:$16 sps:$4 sm:$0xff]  }
 0x1bb   :  { %1995 = vmatprep.subr.bf16.mxu0 %v5240_v50  ;;  %v5287_v50 = vld [vmem:[%s7391_s10 + $0xa0] ss:$16 sps:$4 sm:$0xff]  }
 0x1be   :  { %1996 = vmatpush1.bf16.msra.mxu0 %v5238_v52  ;;  %v5295_v52 = vld [vmem:[%s7391_s10 + $0xc4] ss:$16 sps:$4 sm:$0xff]  }
 0x1bf   :  { %1997 = vmatprep.subr.bf16.mxu0 %v5243_v53  ;;  %v5298_v53 = vld [vmem:[%s7391_s10 + $0xcc] ss:$16 sps:$4 sm:$0xff]  }
 0x1c2   :  { %1998 = vmatpush1.bf16.msra.mxu0 %v5241_v55  ;;  %v5296_v55 = vld [vmem:[%s7391_s10 + $0xc8] ss:$16 sps:$4 sm:$0xff]  }
 0x1c3   :  { %2650 = vmatprep.subr.bf16.mxu0 %v5262_v24 }
 0x1c5   :  { %2014 = vmatmul.mubr.bf16.vlgmr.msra.gmra.mrb[4].mxu0 %v1623_v57  ;;  %v5304_v57 = vld [vmem:[%s7391_s10 + $0xec] ss:$16 sps:$4 sm:$0xff]  }
 0x1c6   :  { %2651 = vmatpush1.bf16.msra.mxu0 %v5260_v16 }
 0x1c7   :  { %2652 = vmatprep.subr.bf16.mxu0 %v5268_v31 }
 0x1ca   :  { %2653 = vmatpush1.bf16.msra.mxu0 %v5266_v34 }
 0x1cb   :  { %2654 = vmatprep.subr.bf16.mxu0 %v5274_v36 }
 0x1ce   :  { %2655 = vmatpush1.bf16.msra.mxu0 %v5272_v38 }
 0x1cf   :  { %2656 = vmatprep.subr.bf16.mxu0 %v5280_v40 }
 0x1d2   :  { %2657 = vmatpush1.bf16.msra.mxu0 %v5278_v42 }
 0x1d3   :  { %2658 = vmatprep.subr.bf16.mxu0 %v5286_v44 }
 0x1d6   :  { %2659 = vmatpush1.bf16.msra.mxu0 %v5284_v47 }
 0x1d7   :  { %2660 = vmatprep.subr.bf16.mxu0 %v5292_v49 }
 0x1da   :  { %2661 = vmatpush1.bf16.msra.mxu0 %v5290_v51 }
 0x1db   :  { %2662 = vmatprep.subr.bf16.mxu0 %v5298_v53 }
 0x1de   :  { %2663 = vmatpush1.bf16.msra.mxu0 %v5296_v55 }
 0x1df   :  { %2664 = vmatprep.subr.bf16.mxu0 %v5304_v57 }
 0x1e2   :  { %2665 = vmatpush1.bf16.msra.mxu0 %v5302_v59  ;;  %v5336_v59 = vld [vmem:[%s7393_s12 + $0x8] ss:$28 sps:$4 sm:$0xff]  }
 0x1e3   :  { %2666 = vmatprep.subr.bf16.mxu0 %v5310_v61  ;;  %v5344_v61 = vld [vmem:[%s7393_s12 + $0x44] ss:$28 sps:$4 sm:$0xff]  }
 0x298   :  { %v2015_v1 = vpop.f32.mrb[4].mxu0 }
 0x299   :  { %v4816_v3 = vadd.f32 %v2015_v1, %v1680_v63  ;;  %v2017_v4 = vpop.f32.mrb[5].mxu0  ;;  %v5308_v63 = vld [vmem:[%s7391_s10 + $0x108] ss:$16 sps:$4 sm:$0xff]  }
 0x29a   :  { %v4817_v7 = vadd.f32 %v2017_v4, %v1684_v0  ;;  %v2019_v9 = vpop.f32.mrb[6].mxu0  ;;  %2667 = vmatpush1.bf16.msra.mxu0 %v5308_v63  ;;  %v5316_v4 = vld [vmem:[%s7391_s10 + $0x12c] ss:$16 sps:$4 sm:$0xff]  }
 0x29b   :  { %vm2022_vm6 = vcmp.gt.f32.partialorder %v4816_v3, 0.0  ;;  %v2024_v10 = vmul.f32 0.2, %v4816_v3  ;;  %v2020_v11 = vpop.f32.mrb[7].mxu0  ;;  %v5314_v9 = vld [vmem:[%s7391_s10 + $0x128] ss:$16 sps:$4 sm:$0xff]   ;;  %2668 = vmatprep.subr.bf16.mxu0 %v5316_v4 }
 0x29c   :  { %vm2023_vm7 = vcmp.gt.f32.partialorder %v4817_v7, 0.0  ;;  %v2025_v12 = vmul.f32 0.2, %v4817_v7  ;;  %v5322_v11 = vld [vmem:[%s7391_s10 + $0x14c] ss:$16 sps:$4 sm:$0xff]  }
 0x29d   :  { %v2026_v13 = vsel %vm2022_vm6, %v4816_v3, %v2024_v10  ;;  %v5313_v3 = vld [vmem:[%s7391_s10 + $0x124] ss:$16 sps:$4 sm:$0xff]   ;;  %v5342_v63 = vld [vmem:[%s7393_s12 + $0x40] ss:$28 sps:$4 sm:$0xff]  }
 0x29e   :  { %v2027_v14 = vsel %vm2023_vm7, %v4817_v7, %v2025_v12  ;;  %v2028_v17 = vpack.c.bf16 %v2026_v13, %v2026_v13  ;;  %v5311_v7 = vld [vmem:[%s7391_s10 + $0x120] ss:$16 sps:$4 sm:$0xff]   ;;  %2669 = vmatpush1.bf16.msra.mxu0 %v5314_v9  ;;  %v5319_v10 = vld [vmem:[%s7391_s10 + $0x144] ss:$16 sps:$4 sm:$0xff]   ;;  %v5320_v13 = vld [vmem:[%s7391_s10 + $0x148] ss:$16 sps:$4 sm:$0xff]  }
 0x29f   :  { %v2029_v15 = vpack.c.bf16 %v2027_v14, %v2027_v14  ;;  %v5317_v12 = vld [vmem:[%s7391_s10 + $0x140] ss:$16 sps:$4 sm:$0xff]   ;;  %2670 = vmatprep.subr.bf16.mxu0 %v5322_v11  ;;  %v5325_v14 = vld [vmem:[%s7391_s10 + $0x164] ss:$16 sps:$4 sm:$0xff]  }
 0x2a0   :  { %v5348_v4 = vld [vmem:[%s7393_s12 + $0x78] ss:$28 sps:$4 sm:$0xff]   ;;  %v5354_v11 = vld [vmem:[%s7393_s12 + $0xb0] ss:$28 sps:$4 sm:$0xff]  }
 0x2a1   :  { %4537 = vmatprep.mubr.msk.bf16.mxu1 %vm2137_vm8, %v2029_v15  ;;  %v5328_v15 = vld [vmem:[%s7391_s10 + $0x16c] ss:$16 sps:$4 sm:$0xff]   ;;  %v5356_v9 = vld [vmem:[%s7393_s12 + $0xb4] ss:$28 sps:$4 sm:$0xff]  }
 0x2a2   :  { %2178 = vmatmul.mubr.bf16.vlgmr.msra.gmra.mrb[8].mxu1 %v2028_v17  ;;  %2671 = vmatpush1.bf16.msra.mxu0 %v5320_v13  ;;  %v5323_v17 = vld [vmem:[%s7391_s10 + $0x160] ss:$16 sps:$4 sm:$0xff]   ;;  %v5362_v13 = vld [vmem:[%s7393_s12 + $0xec] ss:$28 sps:$4 sm:$0xff]  }
 0x2a3   :  { %2610 = vmatpush1.bf16.msra.mxu1 %v5257_v20  ;;  %2672 = vmatprep.subr.bf16.mxu0 %v5328_v15  ;;  %v2321_v20 = vld [vmem:[%s7391_s10 + $0x188] sm:$0xff] }
 0x2a4   :  { %2611 = vmatprep.subr.bf16.mxu1 %v5265_v28  ;;  %v4589_v16 = vcombine.high %v2321_v20, %v2321_v20  ;;  %v5338_v28 = vld [vmem:[%s7393_s12 + $0xc] ss:$28 sps:$4 sm:$0xff]  }
 0x2a5   :  { %v5360_v15 = vld [vmem:[%s7393_s12 + $0xe8] ss:$28 sps:$4 sm:$0xff]  }
 0x2a7   :  { %2612 = vmatpush1.bf16.msra.mxu1 %v5263_v30 }
 0x2a8   :  { %2613 = vmatprep.subr.bf16.mxu1 %v5271_v35 }
 0x2ab   :  { %2614 = vmatpush1.bf16.msra.mxu1 %v5269_v37 }
 0x2ac   :  { %2615 = vmatprep.subr.bf16.mxu1 %v5277_v39  ;;  %v2250_v39 = vld [vmem:[%s7390_s9] sm:$0x3] }
 0x2ad   :  { %v2255_v40 = vrot.slane %v2250_v39, %v6492_v6 }
 0x2af   :  { %2616 = vmatpush1.bf16.msra.mxu1 %v5275_v41  ;;  %v2259_v41 = vrot.slane %v2250_v39, %v6500_v8  ;;  %v5393_v39 = vld [vmem:[%s7393_s12 + $0x230] ss:$28 sps:$4 sm:$0xff]  }
 0x2b0   :  { %2617 = vmatprep.subr.bf16.mxu1 %v5283_v43 }
 0x2b3   :  { %2618 = vmatpush1.bf16.msra.mxu1 %v5281_v46 }
 0x2b4   :  { %2619 = vmatprep.subr.bf16.mxu1 %v5289_v48 }
 0x2b7   :  { %2620 = vmatpush1.bf16.msra.mxu1 %v5287_v50 }
 0x2b8   :  { %2621 = vmatprep.subr.bf16.mxu1 %v5295_v52 }
 0x2bb   :  { %2622 = vmatpush1.bf16.msra.mxu1 %v5293_v54 }
 0x2bc   :  { %2623 = vmatprep.subr.bf16.mxu1 %v5301_v56 }
 0x2bf   :  { %2624 = vmatpush1.bf16.msra.mxu1 %v5299_v58  ;;  %v5333_v58 = vld [vmem:[%s7393_s12] ss:$28 sps:$4 sm:$0xff]  }
 0x2c0   :  { %2625 = vmatprep.subr.bf16.mxu1 %v5307_v60  ;;  %v5341_v60 = vld [vmem:[%s7393_s12 + $0x3c] ss:$28 sps:$4 sm:$0xff]  }
 0x2c3   :  { %2626 = vmatpush1.bf16.msra.mxu1 %v5305_v62  ;;  %v5339_v62 = vld [vmem:[%s7393_s12 + $0x38] ss:$28 sps:$4 sm:$0xff]  }
 0x2c4   :  { %2627 = vmatprep.subr.bf16.mxu1 %v5313_v3  ;;  %v5345_v3 = vld [vmem:[%s7393_s12 + $0x70] ss:$28 sps:$4 sm:$0xff]  }
 0x2c7   :  { %2628 = vmatpush1.bf16.msra.mxu1 %v5311_v7  ;;  %v5353_v7 = vld [vmem:[%s7393_s12 + $0xac] ss:$28 sps:$4 sm:$0xff]  }
 0x2c8   :  { %2629 = vmatprep.subr.bf16.mxu1 %v5319_v10  ;;  %v5351_v10 = vld [vmem:[%s7393_s12 + $0xa8] ss:$28 sps:$4 sm:$0xff]  }
 0x2cb   :  { %2630 = vmatpush1.bf16.msra.mxu1 %v5317_v12  ;;  %v5359_v12 = vld [vmem:[%s7393_s12 + $0xe4] ss:$28 sps:$4 sm:$0xff]  }
 0x2cc   :  { %2631 = vmatprep.subr.bf16.mxu1 %v5325_v14  ;;  %v5357_v14 = vld [vmem:[%s7393_s12 + $0xe0] ss:$28 sps:$4 sm:$0xff]  }
 0x2cf   :  { %2632 = vmatpush1.bf16.msra.mxu1 %v5323_v17  ;;  %v5365_v17 = vld [vmem:[%s7393_s12 + $0x11c] ss:$28 sps:$4 sm:$0xff]  }
 0x375   :  { %v2179_v22 = vpop.f32.mrb[8].mxu1 }
 0x376   :  { %v6603_v25 = vadd.f32 %v4523_v19, %v2179_v22  ;;  %v2181_v26 = vpop.f32.mrb[9].mxu1  ;;  %v2320_v19 = vld [vmem:[%s7391_s10 + $0x180] sm:$0xff] }
 0x377   :  { %v2182_v29 = vpop.f32.mrb[10].mxu1  ;;  %v4587_v21 = vcombine.high %v2320_v19, %v2320_v19  ;;  %v4586_v22 = vcombine.low %v2320_v19, %v2320_v19  ;;  %v5335_v26 = vld [vmem:[%s7393_s12 + $0x4] ss:$28 sps:$4 sm:$0xff]   ;;  %v5363_v19 = vld [vmem:[%s7393_s12 + $0x118] ss:$28 sps:$4 sm:$0xff]  }
 0x378   :  { %2185 = vst [vmem:[%s7396_s15] sm:$0xff] %v6603_v25  ;;  %v2191_v32 = vmul.f32 %v2189_v23, %v6603_v25  ;;  %v2183_v33 = vpop.f32.mrb[11].mxu1  ;;  %v4588_v23 = vcombine.low %v2321_v20, %v2321_v20  ;;  %v2197_v29 = vld [vmem:[%s7389_s8] sm:$0xf] }
 0x379   :  { %4590 = vmatprep.subr.msk.bf16.mxu1 %vm2141_vm5, %v4587_v21  ;;  %v2598_v24 = vsel %vm2141_vm5, %v4586_v22, 0  ;;  %v2207_v30 = vrot.slane %v2197_v29, %v6492_v6  ;;  %v2211_v31 = vrot.slane %v2197_v29, %v6545_v45  ;;  %v2235_v33 = vrot.slane %v2197_v29, %v6515_v27  ;;  %v5366_v20 = vld [vmem:[%s7393_s12 + $0x120] ss:$28 sps:$4 sm:$0xff]   ;;  %v5371_v21 = vld [vmem:[%s7393_s12 + $0x154] ss:$28 sps:$4 sm:$0xff]  }
 0x37a   :  { %2193 = vrot.lane.b32.xlu0 %v2191_v32, %s5639_s5  ;;  %2634 = vmatpush1.bf16.msra.mxu1 %v2598_v24  ;;  %v2231_v32 = vrot.slane %v2197_v29, %v6500_v8  ;;  %v5369_v22 = vld [vmem:[%s7393_s12 + $0x150] ss:$28 sps:$4 sm:$0xff]   ;;  %v5383_v29 = vld [vmem:[%s7393_s12 + $0x1c4] ss:$28 sps:$4 sm:$0xff]  }
 0x37b   :  { %3847 = vmatprep.subr.bf16.mxu1 %v5335_v26  ;;  %v2217_v35 = vrot.slane %v2207_v30, %v6492_v6  ;;  %v2221_v36 = vrot.slane %v2211_v31, %v6492_v6  ;;  %v2245_v38 = vrot.slane %v2235_v33, %v6500_v8  ;;  %v5377_v24 = vld [vmem:[%s7393_s12 + $0x18c] ss:$28 sps:$4 sm:$0xff]   ;;  %v5381_v31 = vld [vmem:[%s7393_s12 + $0x1c0] ss:$28 sps:$4 sm:$0xff]  }
 0x37c   :  { %v2241_v37 = vrot.slane %v2231_v32, %v6500_v8  ;;  %v5375_v26 = vld [vmem:[%s7393_s12 + $0x188] ss:$28 sps:$4 sm:$0xff]   ;;  %v5389_v33 = vld [vmem:[%s7393_s12 + $0x1fc] ss:$28 sps:$4 sm:$0xff]  }
 0x37d   :  { %v5386_v30 = vld [vmem:[%s7393_s12 + $0x1cc] ss:$28 sps:$4 sm:$0xff]  }
 0x37e   :  { %v5384_v32 = vld [vmem:[%s7393_s12 + $0x1c8] ss:$28 sps:$4 sm:$0xff]  }
 0x3ec   :  { %v2194_v0 = vpop.permute.xlu0 %2193 }
 0x3ed   :  { %v2196_v1 = vadd.f32 %v2194_v0, %v6603_v25  ;;  %v2604_v25 = vsel %vm2141_vm5, %v4588_v23, 0  ;;  %v5347_v0 = vld [vmem:[%s7393_s12 + $0x74] ss:$28 sps:$4 sm:$0xff]  }
 0x3ee   :  { %v5372_v23 = vld [vmem:[%s7393_s12 + $0x158] ss:$28 sps:$4 sm:$0xff]  }
 0x3ef   :  { %2200 = vperm.xlu1 %4865, %v2196_v1  }
 0x3f3   :  { %4866 = vset.pattern.permute.xlu1 %v5638_v18  ;;  %v5326_v18 = vld [vmem:[%s7391_s10 + $0x168] ss:$16 sps:$4 sm:$0xff]  }
 0x3f4   :  { %2225 = vperm.xlu1 %4866, %v2196_v1   ;;  %2673 = vmatpush1.bf16.msra.mxu0 %v5326_v18  ;;  %v5350_v1 = vld [vmem:[%s7393_s12 + $0x7c] ss:$28 sps:$4 sm:$0xff]   ;;  %v5368_v18 = vld [vmem:[%s7393_s12 + $0x124] ss:$28 sps:$4 sm:$0xff]  }
 0x3f5   :  { %4592 = vmatprep.subr.msk.bf16.mxu0 %vm2141_vm5, %v4589_v16  ;;  %v5374_v16 = vld [vmem:[%s7393_s12 + $0x15c] ss:$28 sps:$4 sm:$0xff]  }
 0x3f8   :  { %2675 = vmatpush1.bf16.msra.mxu0 %v2604_v25  ;;  %v5380_v25 = vld [vmem:[%s7393_s12 + $0x194] ss:$28 sps:$4 sm:$0xff]  }
 0x3f9   :  { %3929 = vmatprep.subr.bf16.mxu0 %v5338_v28  ;;  %v5378_v28 = vld [vmem:[%s7393_s12 + $0x190] ss:$28 sps:$4 sm:$0xff]  }
 0x46e   :  { %v2201_v34 = vpop.permute.xlu1 %2200 }
 0x46f   :  { %v2222_v43 = vmul.f32 %v2217_v35, %v2201_v34  ;;  %v2223_v44 = vmul.f32 %v2221_v36, %v2201_v34  ;;  %v5392_v34 = vld [vmem:[%s7393_s12 + $0x204] ss:$28 sps:$4 sm:$0xff]   ;;  %v5387_v35 = vld [vmem:[%s7393_s12 + $0x1f8] ss:$28 sps:$4 sm:$0xff]  }
 0x470   :  { %v5390_v36 = vld [vmem:[%s7393_s12 + $0x200] ss:$28 sps:$4 sm:$0xff]  }
 0x473   :  { %v2226_v42 = vpop.permute.xlu1 %2225 }
 0x474   :  { %v2246_v46 = vmul.f32 %v2241_v37, %v2226_v42  ;;  %v2247_v47 = vmul.f32 %v2245_v38, %v2226_v42  ;;  %v5395_v37 = vld [vmem:[%s7393_s12 + $0x234] ss:$28 sps:$4 sm:$0xff]   ;;  %v5398_v38 = vld [vmem:[%s7393_s12 + $0x23c] ss:$28 sps:$4 sm:$0xff]  }
 0x475   :  { %v5404_v42 = vld [vmem:[%s7393_s12 + $0x274] ss:$28 sps:$4 sm:$0xff]  }
 0x476   :  { %v2248_v48 = vadd.f32 %v2246_v46, %v2222_v43  ;;  %v2249_v49 = vadd.f32 %v2247_v47, %v2223_v44  ;;  %v5399_v43 = vld [vmem:[%s7393_s12 + $0x268] ss:$28 sps:$4 sm:$0xff]   ;;  %v5402_v44 = vld [vmem:[%s7393_s12 + $0x270] ss:$28 sps:$4 sm:$0xff]  }
 0x477   :  { %v5407_v46 = vld [vmem:[%s7393_s12 + $0x2a4] ss:$28 sps:$4 sm:$0xff]   ;;  %v5410_v47 = vld [vmem:[%s7393_s12 + $0x2ac] ss:$28 sps:$4 sm:$0xff]  }
 0x478   :  { %v2262_v50 = vadd.f32 %v2255_v40, %v2248_v48  ;;  %v2263_v51 = vadd.f32 %v2259_v41, %v2249_v49  ;;  %v5396_v40 = vld [vmem:[%s7393_s12 + $0x238] ss:$28 sps:$4 sm:$0xff]   ;;  %v5401_v41 = vld [vmem:[%s7393_s12 + $0x26c] ss:$28 sps:$4 sm:$0xff]   ;;  %v5405_v48 = vld [vmem:[%s7393_s12 + $0x2a0] ss:$28 sps:$4 sm:$0xff]  }
 0x479   :  { %v5408_v49 = vld [vmem:[%s7393_s12 + $0x2a8] ss:$28 sps:$4 sm:$0xff]  }
 0x47a   :  { %vm2264_vm9 = vcmp.gt.f32.partialorder %v2262_v50, 0.0  ;;  %vm2265_vm10 = vcmp.gt.f32.partialorder %v2263_v51, 0.0  ;;  %v2266_v52 = vmul.f32 0.2, %v2262_v50  ;;  %v2267_v53 = vmul.f32 0.2, %v2263_v51 }
 0x47c   :  { %v2269_v54 = vsel %vm2265_vm10, %v2263_v51, %v2267_v53  ;;  %v2268_v55 = vsel %vm2264_vm9, %v2262_v50, %v2266_v52  ;;  %v5413_v50 = vld [vmem:[%s7393_s12 + $0x2dc] ss:$28 sps:$4 sm:$0xff]   ;;  %v5416_v51 = vld [vmem:[%s7393_s12 + $0x2e4] ss:$28 sps:$4 sm:$0xff]  }
 0x47d   :  { %v2271_v56 = vpack.c.bf16 %v2269_v54, %v2269_v54  ;;  %v2270_v57 = vpack.c.bf16 %v2268_v55, %v2268_v55  ;;  %v5411_v52 = vld [vmem:[%s7393_s12 + $0x2d8] ss:$28 sps:$4 sm:$0xff]   ;;  %v5414_v53 = vld [vmem:[%s7393_s12 + $0x2e0] ss:$28 sps:$4 sm:$0xff]  }
 0x47e   :  { %v5419_v54 = vld [vmem:[%s7393_s12 + $0x314] ss:$28 sps:$4 sm:$0xff]   ;;  %v5422_v55 = vld [vmem:[%s7393_s12 + $0x31c] ss:$28 sps:$4 sm:$0xff]  }
 0x47f   :  { %4591 = vmatprep.mubr.msk.bf16.mxu1 %vm2137_vm8, %v2271_v56  ;;  %4593 = vmatprep.mubr.msk.bf16.mxu0 %vm2137_vm8, %v2271_v56  ;;  %v5417_v56 = vld [vmem:[%s7393_s12 + $0x310] ss:$28 sps:$4 sm:$0xff]  }
 0x480   :  { %2642 = vmatmul.mubr.bf16.vlgmr.msra.gmra.mrb[12].mxu1 %v2270_v57  ;;  %2683 = vmatmul.mubr.bf16.vlgmr.msra.gmra.mrb[8].mxu0 %v2270_v57  ;;  %v5420_v57 = vld [vmem:[%s7393_s12 + $0x318] ss:$28 sps:$4 sm:$0xff]  }
 0x481   :  { %3848 = vmatpush1.bf16.msra.mxu1 %v5333_v58  ;;  %3930 = vmatpush1.bf16.msra.mxu0 %v5336_v59  ;;  %v5425_v58 = vld [vmem:[%s7393_s12 + $0x34c] ss:$28 sps:$4 sm:$0xff]   ;;  %v5428_v59 = vld [vmem:[%s7393_s12 + $0x354] ss:$28 sps:$4 sm:$0xff]  }
 0x482   :  { %3849 = vmatprep.subr.bf16.mxu1 %v5341_v60  ;;  %3931 = vmatprep.subr.bf16.mxu0 %v5344_v61  ;;  %v5423_v60 = vld [vmem:[%s7393_s12 + $0x348] ss:$28 sps:$4 sm:$0xff]   ;;  %v5426_v61 = vld [vmem:[%s7393_s12 + $0x350] ss:$28 sps:$4 sm:$0xff]  }
 0x485   :  { %3850 = vmatpush1.bf16.msra.mxu1 %v5339_v62  ;;  %3932 = vmatpush1.bf16.msra.mxu0 %v5342_v63  ;;  %v5431_v62 = vld [vmem:[%s7393_s12 + $0x384] ss:$28 sps:$4 sm:$0xff]   ;;  %v5434_v63 = vld [vmem:[%s7393_s12 + $0x38c] ss:$28 sps:$4 sm:$0xff]  }
 0x486   :  { %3851 = vmatprep.subr.bf16.mxu1 %v5347_v0  ;;  %3933 = vmatprep.subr.bf16.mxu0 %v5350_v1  ;;  %v6973_v0 = vld [vmem:[%s7392_s11] sm:$0xf] }
 0x487   :  { %v2327_v1 = vrot.slane %v6973_v0, %v6492_v6 }
 0x489   :  { %3852 = vmatpush1.bf16.msra.mxu1 %v5345_v3  ;;  %3934 = vmatpush1.bf16.msra.mxu0 %v5348_v4  ;;  %v2331_v3 = vrot.slane %v6973_v0, %v6500_v8  ;;  %v2339_v4 = vrot.slane %v6973_v0, %v6515_v27 }
 0x48a   :  { %3853 = vmatprep.subr.bf16.mxu1 %v5353_v7  ;;  %3935 = vmatprep.subr.bf16.mxu0 %v5356_v9 }
 0x48d   :  { %3854 = vmatpush1.bf16.msra.mxu1 %v5351_v10  ;;  %3936 = vmatpush1.bf16.msra.mxu0 %v5354_v11 }
 0x48e   :  { %3855 = vmatprep.subr.bf16.mxu1 %v5359_v12  ;;  %3937 = vmatprep.subr.bf16.mxu0 %v5362_v13 }
 0x491   :  { %3856 = vmatpush1.bf16.msra.mxu1 %v5357_v14  ;;  %3938 = vmatpush1.bf16.msra.mxu0 %v5360_v15 }
 0x492   :  { %3857 = vmatprep.subr.bf16.mxu1 %v5365_v17  ;;  %3939 = vmatprep.subr.bf16.mxu0 %v5368_v18 }
 0x495   :  { %3858 = vmatpush1.bf16.msra.mxu1 %v5363_v19  ;;  %3940 = vmatpush1.bf16.msra.mxu0 %v5366_v20 }
 0x496   :  { %3859 = vmatprep.subr.bf16.mxu1 %v5371_v21  ;;  %3941 = vmatprep.subr.bf16.mxu0 %v5374_v16 }
 0x499   :  { %3860 = vmatpush1.bf16.msra.mxu1 %v5369_v22  ;;  %3942 = vmatpush1.bf16.msra.mxu0 %v5372_v23 }
 0x49a   :  { %3861 = vmatprep.subr.bf16.mxu1 %v5377_v24  ;;  %3943 = vmatprep.subr.bf16.mxu0 %v5380_v25 }
 0x49d   :  { %3862 = vmatpush1.bf16.msra.mxu1 %v5375_v26  ;;  %3944 = vmatpush1.bf16.msra.mxu0 %v5378_v28  ;;  %v5429_v26 = vld [vmem:[%s7393_s12 + $0x380] ss:$28 sps:$4 sm:$0xff]   ;;  %v5432_v28 = vld [vmem:[%s7393_s12 + $0x388] ss:$28 sps:$4 sm:$0xff]  }
 0x49e   :  { %3863 = vmatprep.subr.bf16.mxu1 %v5383_v29  ;;  %3945 = vmatprep.subr.bf16.mxu0 %v5386_v30  ;;  %v5437_v30 = vld [vmem:[%s7393_s12 + $0x3bc] ss:$28 sps:$4 sm:$0xff]  }
 0x4a1   :  { %3864 = vmatpush1.bf16.msra.mxu1 %v5381_v31  ;;  %3946 = vmatpush1.bf16.msra.mxu0 %v5384_v32  ;;  %v5440_v31 = vld [vmem:[%s7393_s12 + $0x3c4] ss:$28 sps:$4 sm:$0xff]  }
 0x4a2   :  { %3865 = vmatprep.subr.bf16.mxu1 %v5389_v33  ;;  %3947 = vmatprep.subr.bf16.mxu0 %v5392_v34  ;;  %v5435_v33 = vld [vmem:[%s7393_s12 + $0x3b8] ss:$28 sps:$4 sm:$0xff]   ;;  %v5438_v34 = vld [vmem:[%s7393_s12 + $0x3c0] ss:$28 sps:$4 sm:$0xff]  }
 0x4a5   :  { %3866 = vmatpush1.bf16.msra.mxu1 %v5387_v35  ;;  %3948 = vmatpush1.bf16.msra.mxu0 %v5390_v36  ;;  %v5443_v35 = vld [vmem:[%s7393_s12 + $0x3f4] ss:$28 sps:$4 sm:$0xff]   ;;  %v5446_v36 = vld [vmem:[%s7393_s12 + $0x3fc] ss:$28 sps:$4 sm:$0xff]  }
 0x4a6   :  { %3867 = vmatprep.subr.bf16.mxu1 %v5395_v37  ;;  %3949 = vmatprep.subr.bf16.mxu0 %v5398_v38  ;;  %v5441_v37 = vld [vmem:[%s7393_s12 + $0x3f0] ss:$28 sps:$4 sm:$0xff]   ;;  %v5444_v38 = vld [vmem:[%s7393_s12 + $0x3f8] ss:$28 sps:$4 sm:$0xff]  }
 0x4a9   :  { %3868 = vmatpush1.bf16.msra.mxu1 %v5393_v39  ;;  %3950 = vmatpush1.bf16.msra.mxu0 %v5396_v40  ;;  %v5449_v39 = vld [vmem:[%s7393_s12 + $0x42c] ss:$28 sps:$4 sm:$0xff]   ;;  %v5452_v40 = vld [vmem:[%s7393_s12 + $0x434] ss:$28 sps:$4 sm:$0xff]  }
 0x4aa   :  { %3869 = vmatprep.subr.bf16.mxu1 %v5401_v41  ;;  %3951 = vmatprep.subr.bf16.mxu0 %v5404_v42  ;;  %v5447_v41 = vld [vmem:[%s7393_s12 + $0x428] ss:$28 sps:$4 sm:$0xff]   ;;  %v5450_v42 = vld [vmem:[%s7393_s12 + $0x430] ss:$28 sps:$4 sm:$0xff]  }
 0x4ad   :  { %3870 = vmatpush1.bf16.msra.mxu1 %v5399_v43  ;;  %3952 = vmatpush1.bf16.msra.mxu0 %v5402_v44  ;;  %v5455_v43 = vld [vmem:[%s7393_s12 + $0x464] ss:$28 sps:$4 sm:$0xff]   ;;  %v5458_v44 = vld [vmem:[%s7393_s12 + $0x46c] ss:$28 sps:$4 sm:$0xff]  }
 0x4ae   :  { %3871 = vmatprep.subr.bf16.mxu1 %v5407_v46  ;;  %3953 = vmatprep.subr.bf16.mxu0 %v5410_v47  ;;  %v5453_v46 = vld [vmem:[%s7393_s12 + $0x460] ss:$28 sps:$4 sm:$0xff]   ;;  %v5456_v47 = vld [vmem:[%s7393_s12 + $0x468] ss:$28 sps:$4 sm:$0xff]  }
 0x4b1   :  { %3872 = vmatpush1.bf16.msra.mxu1 %v5405_v48  ;;  %3954 = vmatpush1.bf16.msra.mxu0 %v5408_v49  ;;  %v5461_v48 = vld [vmem:[%s7393_s12 + $0x49c] ss:$28 sps:$4 sm:$0xff]   ;;  %v5464_v49 = vld [vmem:[%s7393_s12 + $0x4a4] ss:$28 sps:$4 sm:$0xff]  }
 0x4b2   :  { %3873 = vmatprep.subr.bf16.mxu1 %v5413_v50  ;;  %3955 = vmatprep.subr.bf16.mxu0 %v5416_v51  ;;  %v5459_v50 = vld [vmem:[%s7393_s12 + $0x498] ss:$28 sps:$4 sm:$0xff]   ;;  %v5462_v51 = vld [vmem:[%s7393_s12 + $0x4a0] ss:$28 sps:$4 sm:$0xff]  }
 0x4b5   :  { %3874 = vmatpush1.bf16.msra.mxu1 %v5411_v52  ;;  %3956 = vmatpush1.bf16.msra.mxu0 %v5414_v53  ;;  %v5467_v52 = vld [vmem:[%s7393_s12 + $0x4d4] ss:$28 sps:$4 sm:$0xff]   ;;  %v5470_v53 = vld [vmem:[%s7393_s12 + $0x4dc] ss:$28 sps:$4 sm:$0xff]  }
 0x4b6   :  { %3875 = vmatprep.subr.bf16.mxu1 %v5419_v54  ;;  %3957 = vmatprep.subr.bf16.mxu0 %v5422_v55  ;;  %v2335_v54 = vrot.slane %v6973_v0, %v6545_v45  ;;  %v5465_v55 = vld [vmem:[%s7393_s12 + $0x4d0] ss:$28 sps:$4 sm:$0xff]  }
 0x4b9   :  { %3876 = vmatpush1.bf16.msra.mxu1 %v5417_v56  ;;  %3958 = vmatpush1.bf16.msra.mxu0 %v5420_v57  ;;  %v5468_v56 = vld [vmem:[%s7393_s12 + $0x4d8] ss:$28 sps:$4 sm:$0xff]   ;;  %v5473_v57 = vld [vmem:[%s7393_s12 + $0x50c] ss:$28 sps:$4 sm:$0xff]  }
 0x4ba   :  { %3877 = vmatprep.subr.bf16.mxu1 %v5425_v58  ;;  %3959 = vmatprep.subr.bf16.mxu0 %v5428_v59  ;;  %v5476_v58 = vld [vmem:[%s7393_s12 + $0x514] ss:$28 sps:$4 sm:$0xff]  }
 0x4bd   :  { %3878 = vmatpush1.bf16.msra.mxu1 %v5423_v60  ;;  %3960 = vmatpush1.bf16.msra.mxu0 %v5426_v61  ;;  %v5471_v60 = vld [vmem:[%s7393_s12 + $0x508] ss:$28 sps:$4 sm:$0xff]   ;;  %v5474_v61 = vld [vmem:[%s7393_s12 + $0x510] ss:$28 sps:$4 sm:$0xff]  }
 0x4be   :  { %3888 = vmatprep.subr.bf16.mxu1 %v5431_v62  ;;  %3970 = vmatprep.subr.bf16.mxu0 %v5434_v63  ;;  %v5479_v62 = vld [vmem:[%s7393_s12 + $0x544] ss:$28 sps:$4 sm:$0xff]   ;;  %v5482_v63 = vld [vmem:[%s7393_s12 + $0x54c] ss:$28 sps:$4 sm:$0xff]  }
 0x553   :  { %v2643_v7 = vpop.f32.mrb[12].mxu1  ;;  %v6981_v9 = vpop.f32.mrb[8].mxu0 }
 0x554   :  { %v2644_v10 = vadd.f32 %v2643_v7, %v2327_v1  ;;  %v2645_v11 = vpop.f32.mrb[13].mxu1  ;;  %v2686_v12 = vpop.f32.mrb[9].mxu0  ;;  %v2685_v59 = vadd.f32 %v6981_v9, %v2335_v54  ;;  %v5477_v1 = vld [vmem:[%s7393_s12 + $0x540] ss:$28 sps:$4 sm:$0xff]   ;;  %v5486_v7 = vld [vmem:[%s7393_s12 + $0x1d8] ss:$28 sps:$4 sm:$0xff]  }
 0x555   :  { %v2646_v13 = vadd.f32 %v2645_v11, %v2331_v3  ;;  %v2687_v14 = vadd.f32 %v2686_v12, %v2339_v4  ;;  %v2647_v15 = vpop.f32.mrb[14].mxu1  ;;  %v2688_v17 = vpop.f32.mrb[10].mxu0  ;;  %v5480_v3 = vld [vmem:[%s7393_s12 + $0x548] ss:$28 sps:$4 sm:$0xff]   ;;  %v5485_v4 = vld [vmem:[%s7393_s12 + $0x14] ss:$28 sps:$4 sm:$0xff]  }
 0x556   :  { %vm2691_vm11 = vcmp.gt.f32.partialorder %v2644_v10, 0.0  ;;  %v2695_v18 = vmul.f32 0.2, %v2644_v10  ;;  %v2648_v16 = vpop.f32.mrb[15].mxu1  ;;  %v2689_v22 = vpop.f32.mrb[11].mxu0  ;;  %vm2693_vm14 = vcmp.gt.f32.partialorder %v2685_v59, 0.0 }
 0x557   :  { %vm2692_vm12 = vcmp.gt.f32.partialorder %v2646_v13, 0.0  ;;  %v2696_v19 = vmul.f32 0.2, %v2646_v13  ;;  %vm2694_vm13 = vcmp.gt.f32.partialorder %v2687_v14, 0.0  ;;  %v2698_v20 = vmul.f32 0.2, %v2687_v14 }
 0x558   :  { %v2699_v21 = vsel %vm2691_vm11, %v2644_v10, %v2695_v18  ;;  %v2697_v0 = vmul.f32 0.2, %v2685_v59  ;;  %v5483_v10 = vld [vmem:[%s7393_s12 + $0x10] ss:$28 sps:$4 sm:$0xff]   ;;  %v5487_v12 = vld [vmem:[%s7393_s12 + $0x18] ss:$28 sps:$4 sm:$0xff]  }
 0x559   :  { %v2700_v23 = vsel %vm2692_vm12, %v2646_v13, %v2696_v19  ;;  %v2702_v25 = vsel %vm2694_vm13, %v2687_v14, %v2698_v20  ;;  %v6991_v29 = vpack.c.bf16 %v2699_v21, %v2699_v21  ;;  %v5490_v13 = vld [vmem:[%s7393_s12 + $0x4c] ss:$28 sps:$4 sm:$0xff]   ;;  %v5495_v18 = vld [vmem:[%s7393_s12 + $0x84] ss:$28 sps:$4 sm:$0xff]   ;;  %v5500_v16 = vld [vmem:[%s7393_s12 + $0xbc] ss:$28 sps:$4 sm:$0xff]  }
 0x55a   :  { %v6983_v24 = vpack.c.bf16 %v2700_v23, %v2700_v23  ;;  %v7001_v32 = vpack.c.bf16 %v2702_v25, %v2702_v25  ;;  %v2701_v9 = vsel %vm2693_vm14, %v2685_v59, %v2697_v0  ;;  %v5491_v14 = vld [vmem:[%s7393_s12 + $0x210] ss:$28 sps:$4 sm:$0xff]   ;;  %v5488_v15 = vld [vmem:[%s7393_s12 + $0x48] ss:$28 sps:$4 sm:$0xff]   ;;  %v5493_v20 = vld [vmem:[%s7393_s12 + $0x80] ss:$28 sps:$4 sm:$0xff]  }
 0x55b   :  { %v7111_v11 = vpack.c.bf16 %v2701_v9, %v2701_v9  ;;  %v5492_v17 = vld [vmem:[%s7393_s12 + $0x50] ss:$28 sps:$4 sm:$0xff]   ;;  %v5496_v19 = vld [vmem:[%s7393_s12 + $0x248] ss:$28 sps:$4 sm:$0xff]   ;;  %v5501_v22 = vld [vmem:[%s7393_s12 + $0x280] ss:$28 sps:$4 sm:$0xff]  }
 0x55c   :  { %3879 = vmatprep.mubr.bf16.mxu1 %v6983_v24  ;;  %3961 = vmatprep.mubr.bf16.mxu0 %v6983_v24  ;;  %v5497_v21 = vld [vmem:[%s7393_s12 + $0x88] ss:$28 sps:$4 sm:$0xff]   ;;  %v5498_v23 = vld [vmem:[%s7393_s12 + $0xb8] ss:$28 sps:$4 sm:$0xff]   ;;  %v5547_v0 = vld [vmem:[%s7393_s12 + $0x320] ss:$28 sps:$4 sm:$0xff]  }
 0x55d   :  { %3880 = vmatmul.mubr.bf16.vlgmr.msra.gmra.mrb[16].mxu1 %v6991_v29  ;;  %3962 = vmatmul.mubr.bf16.vlgmr.msra.gmra.mrb[12].mxu0 %v6991_v29  ;;  %v5505_v25 = vld [vmem:[%s7393_s12 + $0xf4] ss:$28 sps:$4 sm:$0xff]   ;;  %v5537_v54 = vld [vmem:[%s7393_s12 + $0x27c] ss:$28 sps:$4 sm:$0xff]  }
 0x55e   :  { %3889 = vmatpush1.bf16.msra.mxu1 %v5429_v26  ;;  %3971 = vmatpush1.bf16.msra.mxu0 %v5432_v28  ;;  %v5506_v26 = vld [vmem:[%s7393_s12 + $0x2b8] ss:$28 sps:$4 sm:$0xff]   ;;  %v5503_v28 = vld [vmem:[%s7393_s12 + $0xf0] ss:$28 sps:$4 sm:$0xff]  }
 0x55f   :  { %4769 = vmatprep.mubr.msk.bf16.mxu1 %vm1277_vm0, %v7001_v32  ;;  %4770 = vmatprep.mubr.msk.bf16.mxu0 %vm1277_vm0, %v7001_v32  ;;  %v5542_v59 = vld [vmem:[%s7393_s12 + $0x478] ss:$28 sps:$4 sm:$0xff]  }
 0x560   :  { %3890 = vmatprep.subr.bf16.mxu1 %v5437_v30  ;;  %3972 = vmatprep.subr.bf16.mxu0 %v5440_v31  ;;  %v5507_v30 = vld [vmem:[%s7393_s12 + $0xf8] ss:$28 sps:$4 sm:$0xff]   ;;  %v5510_v31 = vld [vmem:[%s7393_s12 + $0x12c] ss:$28 sps:$4 sm:$0xff]  }
 0x561   :  { %v5557_v9 = vld [vmem:[%s7393_s12 + $0x394] ss:$28 sps:$4 sm:$0xff]  }
 0x562   :  { %3891 = vmatpush1.bf16.msra.mxu1 %v5435_v33  ;;  %3973 = vmatpush1.bf16.msra.mxu0 %v5438_v34  ;;  %v5511_v33 = vld [vmem:[%s7393_s12 + $0x2f0] ss:$28 sps:$4 sm:$0xff]   ;;  %v5508_v34 = vld [vmem:[%s7393_s12 + $0x128] ss:$28 sps:$4 sm:$0xff]  }
 0x563   :  { %3892 = vmatprep.subr.bf16.mxu1 %v5443_v35  ;;  %3974 = vmatprep.subr.bf16.mxu0 %v5446_v36  ;;  %v5512_v35 = vld [vmem:[%s7393_s12 + $0x130] ss:$28 sps:$4 sm:$0xff]   ;;  %v5515_v36 = vld [vmem:[%s7393_s12 + $0x164] ss:$28 sps:$4 sm:$0xff]  }
 0x566   :  { %3893 = vmatpush1.bf16.msra.mxu1 %v5441_v37  ;;  %3975 = vmatpush1.bf16.msra.mxu0 %v5444_v38  ;;  %v5516_v37 = vld [vmem:[%s7393_s12 + $0x328] ss:$28 sps:$4 sm:$0xff]   ;;  %v5513_v38 = vld [vmem:[%s7393_s12 + $0x160] ss:$28 sps:$4 sm:$0xff]  }
 0x567   :  { %3894 = vmatprep.subr.bf16.mxu1 %v5449_v39  ;;  %3976 = vmatprep.subr.bf16.mxu0 %v5452_v40  ;;  %v5517_v39 = vld [vmem:[%s7393_s12 + $0x168] ss:$28 sps:$4 sm:$0xff]   ;;  %v5520_v40 = vld [vmem:[%s7393_s12 + $0x19c] ss:$28 sps:$4 sm:$0xff]  }
 0x56a   :  { %3895 = vmatpush1.bf16.msra.mxu1 %v5447_v41  ;;  %3977 = vmatpush1.bf16.msra.mxu0 %v5450_v42  ;;  %v5521_v41 = vld [vmem:[%s7393_s12 + $0x360] ss:$28 sps:$4 sm:$0xff]   ;;  %v5518_v42 = vld [vmem:[%s7393_s12 + $0x198] ss:$28 sps:$4 sm:$0xff]  }
 0x56b   :  { %3896 = vmatprep.subr.bf16.mxu1 %v5455_v43  ;;  %3978 = vmatprep.subr.bf16.mxu0 %v5458_v44  ;;  %v5522_v43 = vld [vmem:[%s7393_s12 + $0x1a0] ss:$28 sps:$4 sm:$0xff]   ;;  %v5525_v44 = vld [vmem:[%s7393_s12 + $0x1d4] ss:$28 sps:$4 sm:$0xff]  }
 0x56e   :  { %3897 = vmatpush1.bf16.msra.mxu1 %v5453_v46  ;;  %3979 = vmatpush1.bf16.msra.mxu0 %v5456_v47  ;;  %v5523_v46 = vld [vmem:[%s7393_s12 + $0x1d0] ss:$28 sps:$4 sm:$0xff]   ;;  %v5526_v47 = vld [vmem:[%s7393_s12 + $0x398] ss:$28 sps:$4 sm:$0xff]  }
 0x56f   :  { %3898 = vmatprep.subr.bf16.mxu1 %v5461_v48  ;;  %3980 = vmatprep.subr.bf16.mxu0 %v5464_v49  ;;  %v5529_v48 = vld [vmem:[%s7393_s12 + $0x20c] ss:$28 sps:$4 sm:$0xff]  }
 0x570   :  { %v5527_v49 = vld [vmem:[%s7393_s12 + $0x208] ss:$28 sps:$4 sm:$0xff]  }
 0x572   :  { %3899 = vmatpush1.bf16.msra.mxu1 %v5459_v50  ;;  %3981 = vmatpush1.bf16.msra.mxu0 %v5462_v51  ;;  %v5530_v50 = vld [vmem:[%s7393_s12 + $0x3d0] ss:$28 sps:$4 sm:$0xff]   ;;  %v5533_v51 = vld [vmem:[%s7393_s12 + $0x244] ss:$28 sps:$4 sm:$0xff]  }
 0x573   :  { %3900 = vmatprep.subr.bf16.mxu1 %v5467_v52  ;;  %3982 = vmatprep.subr.bf16.mxu0 %v5470_v53  ;;  %v5531_v52 = vld [vmem:[%s7393_s12 + $0x240] ss:$28 sps:$4 sm:$0xff]   ;;  %v5534_v53 = vld [vmem:[%s7393_s12 + $0x408] ss:$28 sps:$4 sm:$0xff]  }
 0x576   :  { %3901 = vmatpush1.bf16.msra.mxu1 %v5465_v55  ;;  %3983 = vmatpush1.bf16.msra.mxu0 %v5468_v56  ;;  %v5535_v55 = vld [vmem:[%s7393_s12 + $0x278] ss:$28 sps:$4 sm:$0xff]   ;;  %v5538_v56 = vld [vmem:[%s7393_s12 + $0x440] ss:$28 sps:$4 sm:$0xff]  }
 0x577   :  { %3902 = vmatprep.subr.bf16.mxu1 %v5473_v57  ;;  %3984 = vmatprep.subr.bf16.mxu0 %v5476_v58  ;;  %v5541_v57 = vld [vmem:[%s7393_s12 + $0x2b4] ss:$28 sps:$4 sm:$0xff]  }
 0x578   :  { %v5539_v58 = vld [vmem:[%s7393_s12 + $0x2b0] ss:$28 sps:$4 sm:$0xff]  }
 0x57a   :  { %3903 = vmatpush1.bf16.msra.mxu1 %v5471_v60  ;;  %3985 = vmatpush1.bf16.msra.mxu0 %v5474_v61  ;;  %v5545_v60 = vld [vmem:[%s7393_s12 + $0x2ec] ss:$28 sps:$4 sm:$0xff]  }
 0x57b   :  { %3904 = vmatprep.subr.bf16.mxu1 %v5479_v62  ;;  %3986 = vmatprep.subr.bf16.mxu0 %v5482_v63  ;;  %v5543_v61 = vld [vmem:[%s7393_s12 + $0x2e8] ss:$28 sps:$4 sm:$0xff]   ;;  %v5546_v62 = vld [vmem:[%s7393_s12 + $0x4b0] ss:$28 sps:$4 sm:$0xff]  }
 0x57c   :  { %v5549_v63 = vld [vmem:[%s7393_s12 + $0x324] ss:$28 sps:$4 sm:$0xff]  }
 0x57e   :  { %3905 = vmatpush1.bf16.msra.mxu1 %v5477_v1  ;;  %3987 = vmatpush1.bf16.msra.mxu0 %v5480_v3  ;;  %v5550_v1 = vld [vmem:[%s7393_s12 + $0x4e8] ss:$28 sps:$4 sm:$0xff]   ;;  %v5553_v3 = vld [vmem:[%s7393_s12 + $0x35c] ss:$28 sps:$4 sm:$0xff]  }
 0x57f   :  { %4011 = vmatprep.subr.bf16.mxu1 %v5485_v4  ;;  %4788 = vmatprep.subr.bf16.mxu0 %v5486_v7  ;;  %v5551_v4 = vld [vmem:[%s7393_s12 + $0x358] ss:$28 sps:$4 sm:$0xff]   ;;  %v5554_v7 = vld [vmem:[%s7393_s12 + $0x520] ss:$28 sps:$4 sm:$0xff]  }
 0x581   :  { %3921 = vmatmul.mubr.bf16.vlgmr.msra.gmra.mrb[16].mxu1 %v7111_v11  ;;  %4003 = vmatmul.mubr.bf16.vlgmr.msra.gmra.mrb[12].mxu0 %v7111_v11 }
 0x582   :  { %4012 = vmatpush1.bf16.msra.mxu1 %v5483_v10  ;;  %4043 = vmatprep.mubr.bf16.mxu1 %v6983_v24  ;;  %v5555_v10 = vld [vmem:[%s7393_s12 + $0x390] ss:$28 sps:$4 sm:$0xff]  }
 0x583   :  { %4789 = vmatpush3.bf16.msra.mxu0 %v5487_v12  ;;  %4125 = vmatprep.mubr.bf16.mxu0 %v6983_v24  ;;  %v5502_v24 = vld [vmem:[%s7393_s12 + $0xc0] ss:$28 sps:$4 sm:$0xff]   ;;  %v5558_v12 = vld [vmem:[%s7393_s12 + $0x558] ss:$28 sps:$4 sm:$0xff]  }
 0x584   :  { %4013 = vmatprep.subr.bf16.mxu1 %v5490_v13  ;;  %4790 = vmatprep.subr.bf16.mxu0 %v5491_v14  ;;  %v5561_v13 = vld [vmem:[%s7393_s12 + $0x3cc] ss:$28 sps:$4 sm:$0xff]  }
 0x585   :  { %v5559_v14 = vld [vmem:[%s7393_s12 + $0x3c8] ss:$28 sps:$4 sm:$0xff]  }
 0x586   :  { %4014 = vmatpush1.bf16.msra.mxu1 %v5488_v15  ;;  %v5564_v15 = vld [vmem:[%s7393_s12 + $0x404] ss:$28 sps:$4 sm:$0xff]  }
 0x587   :  { %4791 = vmatpush3.bf16.msra.mxu0 %v5492_v17  ;;  %4015 = vmatprep.subr.bf16.mxu1 %v5495_v18  ;;  %v5570_v17 = vld [vmem:[%s7393_s12 + $0x474] ss:$28 sps:$4 sm:$0xff]  }
 0x588   :  { %4792 = vmatprep.subr.bf16.mxu0 %v5496_v19  ;;  %v5568_v18 = vld [vmem:[%s7393_s12 + $0x470] ss:$28 sps:$4 sm:$0xff]  }
 0x589   :  { %v5573_v19 = vld [vmem:[%s7393_s12 + $0x4ac] ss:$28 sps:$4 sm:$0xff]  }
 0x58a   :  { %4016 = vmatpush1.bf16.msra.mxu1 %v5493_v20  ;;  %v5571_v20 = vld [vmem:[%s7393_s12 + $0x4a8] ss:$28 sps:$4 sm:$0xff]  }
 0x58b   :  { %4793 = vmatpush3.bf16.msra.mxu0 %v5497_v21  ;;  %4017 = vmatprep.subr.bf16.mxu1 %v5500_v16  ;;  %v5576_v21 = vld [vmem:[%s7393_s12 + $0x4e4] ss:$28 sps:$4 sm:$0xff]  }
 0x58c   :  { %4794 = vmatprep.subr.bf16.mxu0 %v5501_v22  ;;  %v5574_v16 = vld [vmem:[%s7393_s12 + $0x4e0] ss:$28 sps:$4 sm:$0xff]  }
 0x58d   :  { %v5579_v22 = vld [vmem:[%s7393_s12 + $0x51c] ss:$28 sps:$4 sm:$0xff]  }
 0x58e   :  { %4018 = vmatpush1.bf16.msra.mxu1 %v5498_v23  ;;  %v5577_v23 = vld [vmem:[%s7393_s12 + $0x518] ss:$28 sps:$4 sm:$0xff]  }
 0x58f   :  { %4795 = vmatpush3.bf16.msra.mxu0 %v5502_v24  ;;  %4019 = vmatprep.subr.bf16.mxu1 %v5505_v25  ;;  %v5582_v24 = vld [vmem:[%s7393_s12 + $0x554] ss:$28 sps:$4 sm:$0xff]  }
 0x590   :  { %4796 = vmatprep.subr.bf16.mxu0 %v5506_v26  ;;  %v5580_v25 = vld [vmem:[%s7393_s12 + $0x550] ss:$28 sps:$4 sm:$0xff]   ;;  %v7353_v26 = vld [vmem:[%s7394_s13] sm:$0x7f] }
 0x592   :  { %4020 = vmatpush1.bf16.msra.mxu1 %v5503_v28  ;;  %v2912_v28 = vrot.slane %v7353_v26, %v6492_v6 }
 0x593   :  { %4797 = vmatpush3.bf16.msra.mxu0 %v5507_v30  ;;  %4021 = vmatprep.subr.bf16.mxu1 %v5510_v31  ;;  %v2920_v30 = vrot.slane %v7353_v26, %v6545_v45  ;;  %v2916_v31 = vrot.slane %v7353_v26, %v6500_v8 }
 0x594   :  { %4798 = vmatprep.subr.bf16.mxu0 %v5511_v33  ;;  %v2924_v33 = vrot.slane %v7353_v26, %v6515_v27 }
 0x596   :  { %4022 = vmatpush1.bf16.msra.mxu1 %v5508_v34 }
 0x597   :  { %4799 = vmatpush3.bf16.msra.mxu0 %v5512_v35  ;;  %4023 = vmatprep.subr.bf16.mxu1 %v5515_v36 }
 0x598   :  { %4800 = vmatprep.subr.bf16.mxu0 %v5516_v37 }
 0x59a   :  { %4024 = vmatpush1.bf16.msra.mxu1 %v5513_v38 }
 0x59b   :  { %4801 = vmatpush3.bf16.msra.mxu0 %v5517_v39  ;;  %4025 = vmatprep.subr.bf16.mxu1 %v5520_v40 }
 0x59c   :  { %4802 = vmatprep.subr.bf16.mxu0 %v5521_v41 }
 0x59e   :  { %4026 = vmatpush1.bf16.msra.mxu1 %v5518_v42 }
 0x59f   :  { %4803 = vmatpush3.bf16.msra.mxu0 %v5522_v43  ;;  %4027 = vmatprep.subr.bf16.mxu1 %v5525_v44 }
 0x5a0   :  { %4133 = vmatprep.subr.bf16.mxu0 %v5636_v2 }
 0x5a2   :  { %4126 = vmatmul.mubr.bf16.vlgmr.msra.gmra.mrb[16].mxu0 %v6991_v29  ;;  %4028 = vmatpush1.bf16.msra.mxu1 %v5523_v46 }
 0x5a3   :  { %4134 = vmatpush1.bf16.msra.mxu0 %v5526_v47  ;;  %4772 = vmatprep.mubr.msk.bf16.mxu0 %vm1277_vm0, %v7001_v32 }
 0x5a4   :  { %4029 = vmatprep.subr.bf16.mxu1 %v5529_v48  ;;  %4135 = vmatprep.subr.bf16.mxu0 %v5636_v2 }
 0x5a6   :  { %4030 = vmatpush1.bf16.msra.mxu1 %v5527_v49 }
 0x5a7   :  { %4136 = vmatpush1.bf16.msra.mxu0 %v5530_v50  ;;  %4031 = vmatprep.subr.bf16.mxu1 %v5533_v51 }
 0x5a8   :  { %4137 = vmatprep.subr.bf16.mxu0 %v5636_v2 }
 0x5aa   :  { %4032 = vmatpush1.bf16.msra.mxu1 %v5531_v52 }
 0x5ab   :  { %4138 = vmatpush1.bf16.msra.mxu0 %v5534_v53  ;;  %4033 = vmatprep.subr.bf16.mxu1 %v5537_v54 }
 0x5ac   :  { %4139 = vmatprep.subr.bf16.mxu0 %v5636_v2 }
 0x5ae   :  { %4034 = vmatpush1.bf16.msra.mxu1 %v5535_v55 }
 0x5af   :  { %4140 = vmatpush1.bf16.msra.mxu0 %v5538_v56  ;;  %4035 = vmatprep.subr.bf16.mxu1 %v5541_v57 }
 0x5b0   :  { %4141 = vmatprep.subr.bf16.mxu0 %v5636_v2 }
 0x5b2   :  { %4036 = vmatpush1.bf16.msra.mxu1 %v5539_v58 }
 0x5b3   :  { %4142 = vmatpush1.bf16.msra.mxu0 %v5542_v59  ;;  %4037 = vmatprep.subr.bf16.mxu1 %v5545_v60 }
 0x5b4   :  { %4143 = vmatprep.subr.bf16.mxu0 %v5636_v2 }
 0x5b6   :  { %4038 = vmatpush1.bf16.msra.mxu1 %v5543_v61 }
 0x5b7   :  { %4144 = vmatpush1.bf16.msra.mxu0 %v5546_v62  ;;  %4039 = vmatprep.subr.bf16.mxu1 %v5549_v63 }
 0x5b8   :  { %4145 = vmatprep.subr.bf16.mxu0 %v5636_v2 }
 0x5ba   :  { %4040 = vmatpush1.bf16.msra.mxu1 %v5547_v0 }
 0x5bb   :  { %4146 = vmatpush1.bf16.msra.mxu0 %v5550_v1  ;;  %4041 = vmatprep.subr.bf16.mxu1 %v5553_v3  ;;  %v2935_v1 = vsub.s32 6, %v6489_v5 }
 0x5bc   :  { %4147 = vmatprep.subr.bf16.mxu0 %v5636_v2 }
 0x5bd   :  { %v2936_v3 = vrot.slane %v7353_v26, %v2935_v1 }
 0x5be   :  { %4042 = vmatpush1.bf16.msra.mxu1 %v5551_v4 }
 0x5bf   :  { %4148 = vmatpush1.bf16.msra.mxu0 %v5554_v7  ;;  %4052 = vmatprep.subr.bf16.mxu1 %v5557_v9 }
 0x5c0   :  { %4149 = vmatprep.subr.bf16.mxu0 %v5636_v2  ;;  %v5562_v2 = vld [vmem:[%s7393_s12 + $0x400] ss:$28 sps:$4 sm:$0xff]  }
 0x5c1   :  { %4044 = vmatmul.mubr.bf16.vlgmr.msra.gmra.mrb[20].mxu1 %v6991_v29  ;;  %v5567_v29 = vld [vmem:[%s7393_s12 + $0x43c] ss:$28 sps:$4 sm:$0xff]  }
 0x5c2   :  { %4053 = vmatpush1.bf16.msra.mxu1 %v5555_v10  ;;  %4771 = vmatprep.mubr.msk.bf16.mxu1 %vm1277_vm0, %v7001_v32  ;;  %v5565_v32 = vld [vmem:[%s7393_s12 + $0x438] ss:$28 sps:$4 sm:$0xff]   ;;  %s5640_s12 = smov [#allocation2]  }
 0x5c3   :  { %4150 = vmatpush1.bf16.msra.mxu0 %v5558_v12  ;;  %4054 = vmatprep.subr.bf16.mxu1 %v5561_v13  ;;  %s4255_s13 = sshll.u32 %s5640_s12, 4  ;;  %s4256_s13 = int_to_ptr.vmem [resolvable:$true] %s4255_s13 }
 0x5c4   :  { %s5612_s29 = scalar_lea.vmem %s4256_s13, 448  ;;  %p5617_p1 = scmp.lt.s32.totalorder %s4256_s13, %s4256_s13 }
 0x5c5   :  { %p5613_p0 = scmp.ne.s32.totalorder %s4256_s13, %s5612_s29  ;;  %p5618_p2 = scmp.lt.s32.totalorder %s5612_s29, %s5612_s29 }
 0x5c6   :  { %4166 = vmatmul.mubr.bf16.vlgmr.msra.gmra.mrb[20].mxu0 %v7111_v11  ;;  %4055 = vmatpush1.bf16.msra.mxu1 %v5559_v14 }
 0x5c7   :  { %4056 = vmatprep.subr.bf16.mxu1 %v5564_v15  ;;  %p5619_p3 = por %p5618_p2, %p5617_p1 }
 0x5c9   :  { %p5620_p4 = pnand %p5619_p3, %p5613_p0 }
 0x5ca   :  { %4057 = vmatpush1.bf16.msra.mxu1 %v5562_v2 }
 0x5cb   :  { %4058 = vmatprep.subr.bf16.mxu1 %v5567_v29  ;;  %v2927_v29 = vsub.s32 4, %v6489_v5 }
 0x5ce   :  { %4059 = vmatpush1.bf16.msra.mxu1 %v5565_v32  ;;  %v2931_v32 = vsub.s32 5, %v6489_v5 }
 0x5cf   :  { %4060 = vmatprep.subr.bf16.mxu1 %v5570_v17 }
 0x5d2   :  { %4061 = vmatpush1.bf16.msra.mxu1 %v5568_v18  ;;  %v2928_v18 = vrot.slane %v7353_v26, %v2927_v29 }
 0x5d3   :  { %4062 = vmatprep.subr.bf16.mxu1 %v5573_v19 }
 0x5d6   :  { %4063 = vmatpush1.bf16.msra.mxu1 %v5571_v20  ;;  %v2932_v20 = vrot.slane %v7353_v26, %v2931_v32 }
 0x5d7   :  { %4064 = vmatprep.subr.bf16.mxu1 %v5576_v21 }
 0x5da   :  { %4065 = vmatpush1.bf16.msra.mxu1 %v5574_v16 }
 0x5db   :  { %4066 = vmatprep.subr.bf16.mxu1 %v5579_v22 }
 0x5de   :  { %4067 = vmatpush1.bf16.msra.mxu1 %v5577_v23 }
 0x5df   :  { %4068 = vmatprep.subr.bf16.mxu1 %v5582_v24 }
 0x5e2   :  { %4069 = vmatpush1.bf16.msra.mxu1 %v5580_v25 }
 0x5e5   :  { %4085 = vmatmul.mubr.bf16.vlgmr.msra.gmra.mrb[20].mxu1 %v7111_v11 }
 0x654   :  { %v3922_v34 = vpop.f32.mrb[16].mxu1  ;;  %v4004_v35 = vpop.f32.mrb[12].mxu0 }
 0x655   :  { %v4818_v11 = vadd.f32 %v3922_v34, %v2912_v28  ;;  %v4820_v36 = vadd.f32 %v4004_v35, %v2920_v30  ;;  %v3924_v37 = vpop.f32.mrb[17].mxu1  ;;  %v4006_v38 = vpop.f32.mrb[13].mxu0 }
 0x656   :  { %v4819_v39 = vadd.f32 %v3924_v37, %v2916_v31  ;;  %v4821_v40 = vadd.f32 %v4006_v38, %v2924_v33  ;;  %v3926_v41 = vpop.f32.mrb[18].mxu1  ;;  %v4008_v42 = vpop.f32.mrb[14].mxu0 }
 0x657   :  { %v4773_v6 = vmul.f32 -1.442695, %v4818_v11  ;;  %v4775_v43 = vmul.f32 -1.442695, %v4820_v36  ;;  %v3927_v44 = vpop.f32.mrb[19].mxu1  ;;  %v4009_v45 = vpop.f32.mrb[15].mxu0 }
 0x658   :  { %v4774_v46 = vmul.f32 -1.442695, %v4819_v39  ;;  %v4776_v47 = vmul.f32 -1.442695, %v4821_v40 }
 0x659   :  { %5583 = vpow2.f32 %v4773_v6 }
 0x65a   :  { %5585 = vpow2.f32 %v4775_v43 }
 0x65b   :  { %5587 = vpow2.f32 %v4774_v46 }
 0x65c   :  { %5589 = vpow2.f32 %v4776_v47 }
 0x663   :  { %v5584_v8 = vpop.eup %5583 }
 0x664   :  { %v5586_v27 = vpop.eup %5585  ;;  %v4194_v48 = vadd.f32 1.0, %v5584_v8 }
 0x665   :  { %v5588_v49 = vpop.eup %5587  ;;  %v4196_v50 = vadd.f32 1.0, %v5586_v27 }
 0x666   :  { %v5590_v51 = vpop.eup %5589  ;;  %5591 = vrcp.f32 %v4194_v48  ;;  %v4195_v52 = vadd.f32 1.0, %v5588_v49 }
 0x667   :  { %5593 = vrcp.f32 %v4196_v50  ;;  %v4197_v53 = vadd.f32 1.0, %v5590_v51 }
 0x668   :  { %5595 = vrcp.f32 %v4195_v52 }
 0x669   :  { %5597 = vrcp.f32 %v4197_v53 }
 0x670   :  { %v5592_v54 = vpop.eup %5591 }
 0x671   :  { %v5594_v55 = vpop.eup %5593 }
 0x672   :  { %v5596_v56 = vpop.eup %5595 }
 0x673   :  { %v5598_v57 = vpop.eup %5597  ;;  %v4784_v58 = vpack.c.bf16 %v5596_v56, %v5592_v54 }
 0x674   :  { %v4785_v59 = vpack.c.bf16 %v5598_v57, %v5594_v55 }
 0x675   :  { %v4804_v60 = vpop.f32.mrb[16].mxu0  ;;  %4244 = vst [vmem:[#allocation2] sm:$0xff] %v4784_v58 }
 0x676   :  { %v4805_v61 = vpop.f32.mrb[17].mxu0  ;;  %4245 = vst [vmem:[#allocation2 + $0x8] sm:$0xff] %v4785_v59 }
 0x677   :  { %v4806_v62 = vadd.f32 %v4805_v61, %v4804_v60  ;;  %v4807_v63 = vpop.f32.mrb[18].mxu0 }
 0x678   :  { %v4808_v0 = vpop.f32.mrb[19].mxu0 }
 0x679   :  { %v4128_v4 = vadd.f32 %v4806_v62, %v2936_v3 }
 0x699   :  { %v4167_v7 = vpop.f32.mrb[20].mxu0 }
 0x69a   :  { %v4168_v9 = vadd.f32 %v4167_v7, %v4128_v4  ;;  %v4169_v10 = vpop.f32.mrb[21].mxu0 }
 0x69b   :  { %v4170_v12 = vpop.f32.mrb[22].mxu0 }
 0x69c   :  { %v4779_v13 = vmul.f32 -1.442695, %v4168_v9  ;;  %v4171_v14 = vpop.f32.mrb[23].mxu0 }
 0x69e   :  { %5599 = vpow2.f32 %v4779_v13 }
 0x6a8   :  { %v5600_v15 = vpop.eup %5599 }
 0x6a9   :  { %v4200_v2 = vadd.f32 1.0, %v5600_v15 }
 0x6ab   :  { %5601 = vrcp.f32 %v4200_v2 }
 0x6b5   :  { %v5602_v17 = vpop.eup %5601 }
 0x6b6   :  { %v4787_v19 = vpack.c.bf16 %v5602_v17, %v5602_v17 }
 0x6b8   :  { %v4086_v21 = vpop.f32.mrb[20].mxu1  ;;  %4248 = vst.msk [vmem:[#allocation2 + $0x18] sm:$0xf] %vm4247_vm15, %v4787_v19 }
 0x6b9   :  { %v4822_v16 = vadd.f32 %v4086_v21, %v2928_v18  ;;  %v4088_v22 = vpop.f32.mrb[21].mxu1 }
 0x6ba   :  { %v4823_v23 = vadd.f32 %v4088_v22, %v2932_v20  ;;  %v4090_v24 = vpop.f32.mrb[22].mxu1 }
 0x6bb   :  { %v4777_v25 = vmul.f32 -1.442695, %v4822_v16  ;;  %v4091_v28 = vpop.f32.mrb[23].mxu1 }
 0x6bc   :  { %v4778_v30 = vmul.f32 -1.442695, %v4823_v23 }
 0x6bd   :  { %5603 = vpow2.f32 %v4777_v25 }
 0x6be   :  { %5605 = vpow2.f32 %v4778_v30 }
 0x6c7   :  { %v5604_v31 = vpop.eup %5603 }
 0x6c8   :  { %v5606_v5 = vpop.eup %5605  ;;  %v4198_v33 = vadd.f32 1.0, %v5604_v31 }
 0x6c9   :  { %v4199_v34 = vadd.f32 1.0, %v5606_v5 }
 0x6ca   :  { %5607 = vrcp.f32 %v4198_v33 }
 0x6cb   :  { %5609 = vrcp.f32 %v4199_v34 }
 0x6d4   :  { %v5608_v26 = vpop.eup %5607 }
 0x6d5   :  { %v5610_v35 = vpop.eup %5609 }
 0x6d6   :  { %v4786_v11 = vpack.c.bf16 %v5610_v35, %v5608_v26 }
 0x6d8   :  { %4246 = vst [vmem:[#allocation2 + $0x10] sm:$0xff] %v4786_v11 }
 0x6d9   :  { %5623 = shalt.err (!%p5620_p4)
}
 0x6da   :  { %s5624_s10 = scalar_lea.hbm %s7395_s14, 448 }
 0x6db   :  { %p5625_p5 = scmp.ne.s32.totalorder %s7395_s14, %s5624_s10  ;;  %p5628_p6 = scmp.lt.u32.totalorder %s5624_s10, %s7395_s14 }
 0x6dd   :  { %p5630_p7 = pnand %p5628_p6, %p5625_p5 }
 0x6df   :  { %5633 = shalt.err (!%p5630_p7)
}
 0x6e0   :  { %4258 = dma.vmem_to_hbm [thread:$0]  %s4256_s13, 448, %s7395_s14, [#allocation3]  }
 0x6e1   :  { %5634 = dma.done.wait [#allocation3], 448  }
 0x6e2   :  { %5635 = vsyncadd [#allocation3], 4294966848 }
 0x6e3   :  { %4266 = vsyncpa [#allocation3], 1 }

</bundles_post_ra>
